<compile_context>
chip_gen: v7x
topology: tpu7x:2x2x1
jax: 0.10.0
libtpu: 0.0.40
codegen_flags: <defaults>
</compile_context>

<pallas_src>
import functools

import jax
import jax.numpy as jnp
from jax.experimental import pallas as pl
from jax.experimental.pallas import tpu as pltpu


# ---------------------------------------------------------------------------
# Fused forward kernel (one grid step = one batch tile of TB samples)
# ---------------------------------------------------------------------------
def _fused_forward_kernel(x_ref, w1_ref, b1_ref, w2_ref, b2_ref, fcw_ref, fcb_ref,
                          o_ref, xpad_ref, ppad_ref, feat_ref, *,
                          TB, H, W, Cin, C1, C2, NC):
    H2, W2 = H // 2, W // 2          # after pool 1
    H4, W4 = H // 4, W // 4          # after pool 2

    # ---- zero-pad the input tile into VMEM scratch (3x3 'same' conv) ----
    xpad_ref[...] = jnp.zeros_like(xpad_ref)
    xpad_ref[:, 1:H + 1, 1:W + 1, :] = x_ref[...]

    # ---- conv1: 9 shifted-tap GEMMs accumulated in f32, + bias + ReLU ----
    M1 = TB * H * W
    acc1 = jnp.zeros((M1, C1), jnp.float32)
    for kh in range(3):
        for kw in range(3):
            patch = xpad_ref[:, kh:kh + H, kw:kw + W, :]          # (TB, H, W, Cin)
            acc1 = acc1 + jnp.dot(patch.reshape(M1, Cin),
                                  w1_ref[kh * 3 + kw],
                                  preferred_element_type=jnp.float32)
    act1 = jnp.maximum(acc1 + b1_ref[...], 0.0).reshape(TB, H2, 2, W, C1)

    # ---- maxpool 2x2 #1 -> written into zero-padded scratch for conv2 ----
    hmax1 = jnp.maximum(act1[:, :, 0], act1[:, :, 1])             # (TB, H2, W, C1)
    ppad_ref[...] = jnp.zeros_like(ppad_ref)
    for wp in range(W2):
        ppad_ref[:, 1:H2 + 1, 1 + wp:2 + wp, :] = jnp.maximum(
            hmax1[:, :, 2 * wp:2 * wp + 1, :],
            hmax1[:, :, 2 * wp + 1:2 * wp + 2, :])

    # ---- conv2: 9 shifted-tap GEMMs + bias + ReLU ----
    M2 = TB * H2 * W2
    acc2 = jnp.zeros((M2, C2), jnp.float32)
    for kh in range(3):
        for kw in range(3):
            patch = ppad_ref[:, kh:kh + H2, kw:kw + W2, :]        # (TB, H2, W2, C1)
            acc2 = acc2 + jnp.dot(patch.reshape(M2, C1),
                                  w2_ref[kh * 3 + kw],
                                  preferred_element_type=jnp.float32)
    act2 = jnp.maximum(acc2 + b2_ref[...], 0.0).reshape(TB, H4, 2, W2, C2)

    # ---- maxpool 2x2 #2 -> flattened feature buffer (matches permuted fc weight) ----
    hmax2 = jnp.maximum(act2[:, :, 0], act2[:, :, 1])             # (TB, H4, W2, C2)
    for h in range(H4):
        for wp in range(W4):
            base = (h * W4 + wp) * C2
            feat_ref[:, base:base + C2] = jnp.maximum(
                hmax2[:, h, 2 * wp, :], hmax2[:, h, 2 * wp + 1, :])

    # ---- classifier: Linear(feat_dim, num_class), fused epilogue ----
    scores = jnp.dot(feat_ref[...], fcw_ref[...],
                     preferred_element_type=jnp.float32) + fcb_ref[...]
    o_ref[...] = scores.reshape(1, TB, NC)


# ---------------------------------------------------------------------------
# Wrapper
# ---------------------------------------------------------------------------
def _pick_batch_tile(B, max_tb=8):
    divs = [t for t in range(1, min(B, max_tb) + 1) if B % t == 0]
    multi = [t for t in divs if B // t >= 2]   # keep >= 2 grid steps (v7x: 2 TCs)
    return max(multi) if multi else max(divs)


def baseline_train_forward(x_nchw, params):
    # public layout is NCHW (PyTorch); transpose to NHWC so channels sit on lanes
    x = jnp.transpose(x_nchw, (0, 2, 3, 1)).astype(jnp.float32)
    B, H, W, Cin = x.shape
    assert H % 4 == 0 and W % 4 == 0, "backbone needs two 2x2 maxpools"
    C1 = params["conv1_w"].shape[0]
    C2 = params["conv2_w"].shape[0]
    NC = params["fc_w"].shape[0]
    H4, W4 = H // 4, W // 4
    feat_dim = C2 * H4 * W4
    assert params["fc_w"].shape[1] == feat_dim

    # Weight re-layouts are done ONCE outside the kernel on tiny arrays.
    w1 = jnp.transpose(params["conv1_w"], (2, 3, 1, 0)).reshape(9, Cin, C1).astype(jnp.float32)
    w2 = jnp.transpose(params["conv2_w"], (2, 3, 1, 0)).reshape(9, C1, C2).astype(jnp.float32)
    # PyTorch flattens NCHW; permute fc weight so the kernel's NHWC flatten matches.
    fcw = (params["fc_w"].reshape(NC, C2, H4, W4)
           .transpose(2, 3, 1, 0).reshape(feat_dim, NC).astype(jnp.float32))
    b1 = params["conv1_b"].reshape(1, C1).astype(jnp.float32)
    b2 = params["conv2_b"].reshape(1, C2).astype(jnp.float32)
    fcb = params["fc_b"].reshape(1, NC).astype(jnp.float32)

    TB = _pick_batch_tile(B)
    G = B // TB

    kernel = functools.partial(_fused_forward_kernel, TB=TB, H=H, W=W,
                               Cin=Cin, C1=C1, C2=C2, NC=NC)
    out = pl.pallas_call(
        kernel,
        out_shape=jax.ShapeDtypeStruct((G, TB, NC), jnp.float32),
        grid_spec=pltpu.PrefetchScalarGridSpec(
            num_scalar_prefetch=0,
            grid=(G,),
            in_specs=[
                pl.BlockSpec((TB, H, W, Cin), lambda i: (i, 0, 0, 0)),  # batch tile
                pl.BlockSpec((9, Cin, C1), lambda i: (0, 0, 0)),        # conv1 w (resident)
                pl.BlockSpec((1, C1), lambda i: (0, 0)),                # conv1 b
                pl.BlockSpec((9, C1, C2), lambda i: (0, 0, 0)),         # conv2 w (resident)
                pl.BlockSpec((1, C2), lambda i: (0, 0)),                # conv2 b
                pl.BlockSpec((feat_dim, NC), lambda i: (0, 0)),         # fc w (resident)
                pl.BlockSpec((1, NC), lambda i: (0, 0)),                # fc b
            ],
            out_specs=pl.BlockSpec((1, TB, NC), lambda i: (i, 0, 0)),
            scratch_shapes=[
                pltpu.VMEM((TB, H + 2, W + 2, Cin), jnp.float32),       # padded input
                pltpu.VMEM((TB, H // 2 + 2, W // 2 + 2, C1), jnp.float32),  # padded pool1
                pltpu.VMEM((TB, feat_dim), jnp.float32),                # flattened features
            ],
        ),
        compiler_params=pltpu.CompilerParams(dimension_semantics=("parallel",)),
    )(x, w1, b1, w2, b2, fcw, fcb)
    return out.reshape(B, NC)


def init_params(key, num_class=10):
    k1, k2, k3 = jax.random.split(key, 3)
    return {
        "conv1_w": 0.1 * jax.random.normal(k1, (8, 3, 3, 3), jnp.float32),
        "conv1_b": jnp.zeros((8,), jnp.float32),
        "conv2_w": 0.1 * jax.random.normal(k2, (16, 8, 3, 3), jnp.float32),
        "conv2_b": jnp.zeros((16,), jnp.float32),
        "fc_w": 0.05 * jax.random.normal(k3, (num_class, 256), jnp.float32),
        "fc_b": jnp.zeros((num_class,), jnp.float32),  # classifier.bias.data.fill_(0)
    }


# Pure-jnp reference with identical math (validates the fused Pallas path).
def _reference_forward(x_nchw, params):
    x = jnp.transpose(x_nchw, (0, 2, 3, 1)).astype(jnp.float32)

    def conv(xh, w, b):
        B, H, W, Cin = xh.shape
        Cout = w.shape[0]
        xp = jnp.pad(xh, ((0, 0), (1, 1), (1, 1), (0, 0)))
        cols = jnp.stack([xp[:, dh:dh + H, dw:dw + W, :]
                          for dh in range(3) for dw in range(3)], axis=-2)
        cols = cols.reshape(B * H * W, 9 * Cin)
        wm = jnp.transpose(w, (2, 3, 1, 0)).reshape(9 * Cin, Cout)
        return jnp.maximum(cols @ wm + b, 0.0).reshape(B, H, W, Cout)

    def pool(xh):
        B, H, W, C = xh.shape
        return jnp.max(xh.reshape(B, H // 2, 2, W // 2, 2, C), axis=(2, 4))

    x = pool(conv(x, params["conv1_w"], params["conv1_b"]))
    x = pool(conv(x, params["conv2_w"], params["conv2_b"]))
    feats = jnp.transpose(x, (0, 3, 1, 2)).reshape(x.shape[0], -1)  # NCHW flatten
    return feats @ params["fc_w"].T + params["fc_b"]


# TODO(synk): train_loop / set_forward_adaptation / DBindex are host-side training &
# analysis procedures (SGD fine-tuning, CrossEntropyLoss backward), not forward compute.

if __name__ == "__main__":
    key = jax.random.PRNGKey(0)
    kx, kp = jax.random.split(key)
    num_class = 10
    x = jax.random.normal(kx, (2, 3, 16, 16), jnp.float32)   # NCHW, like PyTorch
    params = init_params(kp, num_class=num_class)

    scores = jax.block_until_ready(baseline_train_forward(x, params))
    assert scores.shape == (2, num_class)

    ref = _reference_forward(x, params)
    assert jnp.allclose(scores, ref, atol=1e-4, rtol=1e-4), float(jnp.max(jnp.abs(scores - ref)))

    print("KERNEL_OK")
</pallas_src>

<mosaic_0001>
module attributes {stable_mosaic.version = 11 : i64} {
  func.func @_fused_forward_kernel(%arg0: i32, %arg1: memref<1x16x16x3xf32, #tpu.memory_space<vmem>>, %arg2: memref<9x3x8xf32, #tpu.memory_space<vmem>>, %arg3: memref<1x8xf32, #tpu.memory_space<vmem>>, %arg4: memref<9x8x16xf32, #tpu.memory_space<vmem>>, %arg5: memref<1x16xf32, #tpu.memory_space<vmem>>, %arg6: memref<256x10xf32, #tpu.memory_space<vmem>>, %arg7: memref<1x10xf32, #tpu.memory_space<vmem>>, %arg8: memref<1x1x10xf32, #tpu.memory_space<vmem>>, %arg9: memref<1x18x18x3xf32, #tpu.memory_space<vmem>>, %arg10: memref<1x10x10x8xf32, #tpu.memory_space<vmem>>, %arg11: memref<1x256xf32, #tpu.memory_space<vmem>>) attributes {dimension_semantics = [#tpu.dimension_semantics<parallel>], iteration_bounds = array<i64: 2>, scalar_prefetch = 0 : i64, scratch_operands = 3 : i64, tpu.core_type = #tpu.core_type<tc>, window_params = [{transform_indices = @transform_0, window_bounds = array<i64: 1, 16, 16, 3>}, {pipeline_mode = #tpu.pipeline_mode<synchronous>, transform_indices = @transform_1, window_bounds = array<i64: 9, 3, 8>}, {pipeline_mode = #tpu.pipeline_mode<synchronous>, transform_indices = @transform_2, window_bounds = array<i64: 1, 8>}, {pipeline_mode = #tpu.pipeline_mode<synchronous>, transform_indices = @transform_3, window_bounds = array<i64: 9, 8, 16>}, {pipeline_mode = #tpu.pipeline_mode<synchronous>, transform_indices = @transform_4, window_bounds = array<i64: 1, 16>}, {pipeline_mode = #tpu.pipeline_mode<synchronous>, transform_indices = @transform_5, window_bounds = array<i64: 256, 10>}, {pipeline_mode = #tpu.pipeline_mode<synchronous>, transform_indices = @transform_6, window_bounds = array<i64: 1, 10>}, {transform_indices = @transform_7, window_bounds = array<i64: 1, 1, 10>}]} {
    %cst = arith.constant 0.000000e+00 : f32
    %0 = vector.broadcast %cst : f32 to vector<1x18x18x3xf32>
    %c0 = arith.constant 0 : index
    %c0_0 = arith.constant 0 : index
    %c0_1 = arith.constant 0 : index
    %c0_2 = arith.constant 0 : index
    %1 = vector.load %arg9[%c0, %c0_0, %c0_1, %c0_2] : memref<1x18x18x3xf32, #tpu.memory_space<vmem>>, vector<1x18x18x3xf32>
    tpu.vector_store %arg9[%c0, %c0_0, %c0_1, %c0_2], %0 {strides = array<i32>} : memref<1x18x18x3xf32, #tpu.memory_space<vmem>>, vector<1x18x18x3xf32>,
    %c0_3 = arith.constant 0 : index
    %c0_4 = arith.constant 0 : index
    %c0_5 = arith.constant 0 : index
    %c0_6 = arith.constant 0 : index
    %2 = vector.load %arg1[%c0_3, %c0_4, %c0_5, %c0_6] : memref<1x16x16x3xf32, #tpu.memory_space<vmem>>, vector<1x16x16x3xf32>
    %c0_7 = arith.constant 0 : index
    %c1 = arith.constant 1 : index
    %c1_8 = arith.constant 1 : index
    %c0_9 = arith.constant 0 : index
    %3 = vector.load %arg9[%c0_7, %c1, %c1_8, %c0_9] : memref<1x18x18x3xf32, #tpu.memory_space<vmem>>, vector<1x16x16x3xf32>
    tpu.vector_store %arg9[%c0_7, %c1, %c1_8, %c0_9], %2 {strides = array<i32>} : memref<1x18x18x3xf32, #tpu.memory_space<vmem>>, vector<1x16x16x3xf32>,
    %cst_10 = arith.constant 0.000000e+00 : f32
    %4 = vector.broadcast %cst_10 : f32 to vector<256x8xf32>
    %c0_11 = arith.constant 0 : index
    %c0_12 = arith.constant 0 : index
    %c0_13 = arith.constant 0 : index
    %c0_14 = arith.constant 0 : index
    %5 = vector.load %arg9[%c0_11, %c0_12, %c0_13, %c0_14] : memref<1x18x18x3xf32, #tpu.memory_space<vmem>>, vector<1x16x16x3xf32>
    %6 = vector.shape_cast %5 : vector<1x16x16x3xf32> to vector<256x3xf32>
    %c0_15 = arith.constant 0 : index
    %c0_16 = arith.constant 0 : index
    %c0_17 = arith.constant 0 : index
    %7 = vector.load %arg2[%c0_15, %c0_16, %c0_17] : memref<9x3x8xf32, #tpu.memory_space<vmem>>, vector<1x3x8xf32>
    %8 = vector.shape_cast %7 : vector<1x3x8xf32> to vector<3x8xf32>
    %cst_18 = arith.constant dense<0.000000e+00> : vector<256x8xf32>
    %9 = tpu.matmul %6, %8, %cst_18 {dimension_numbers = #tpu.dot_dimension_numbers<[1], [0], [0], [1], [0, 0, 1, 1], [], []>} : vector<256x3xf32>, vector<3x8xf32>, vector<256x8xf32> -> vector<256x8xf32>
    %10 = arith.addf %4, %9 : vector<256x8xf32>
    %c0_19 = arith.constant 0 : index
    %c0_20 = arith.constant 0 : index
    %c1_21 = arith.constant 1 : index
    %c0_22 = arith.constant 0 : index
    %11 = vector.load %arg9[%c0_19, %c0_20, %c1_21, %c0_22] : memref<1x18x18x3xf32, #tpu.memory_space<vmem>>, vector<1x16x16x3xf32>
    %12 = vector.shape_cast %11 : vector<1x16x16x3xf32> to vector<256x3xf32>
    %c1_23 = arith.constant 1 : index
    %c0_24 = arith.constant 0 : index
    %c0_25 = arith.constant 0 : index
    %13 = vector.load %arg2[%c1_23, %c0_24, %c0_25] : memref<9x3x8xf32, #tpu.memory_space<vmem>>, vector<1x3x8xf32>
    %14 = vector.shape_cast %13 : vector<1x3x8xf32> to vector<3x8xf32>
    %cst_26 = arith.constant dense<0.000000e+00> : vector<256x8xf32>
    %15 = tpu.matmul %12, %14, %cst_26 {dimension_numbers = #tpu.dot_dimension_numbers<[1], [0], [0], [1], [0, 0, 1, 1], [], []>} : vector<256x3xf32>, vector<3x8xf32>, vector<256x8xf32> -> vector<256x8xf32>
    %16 = arith.addf %10, %15 : vector<256x8xf32>
    %c0_27 = arith.constant 0 : index
    %c0_28 = arith.constant 0 : index
    %c2 = arith.constant 2 : index
    %c0_29 = arith.constant 0 : index
    %17 = vector.load %arg9[%c0_27, %c0_28, %c2, %c0_29] : memref<1x18x18x3xf32, #tpu.memory_space<vmem>>, vector<1x16x16x3xf32>
    %18 = vector.shape_cast %17 : vector<1x16x16x3xf32> to vector<256x3xf32>
    %c2_30 = arith.constant 2 : index
    %c0_31 = arith.constant 0 : index
    %c0_32 = arith.constant 0 : index
    %19 = vector.load %arg2[%c2_30, %c0_31, %c0_32] : memref<9x3x8xf32, #tpu.memory_space<vmem>>, vector<1x3x8xf32>
    %20 = vector.shape_cast %19 : vector<1x3x8xf32> to vector<3x8xf32>
    %cst_33 = arith.constant dense<0.000000e+00> : vector<256x8xf32>
    %21 = tpu.matmul %18, %20, %cst_33 {dimension_numbers = #tpu.dot_dimension_numbers<[1], [0], [0], [1], [0, 0, 1, 1], [], []>} : vector<256x3xf32>, vector<3x8xf32>, vector<256x8xf32> -> vector<256x8xf32>
    %22 = arith.addf %16, %21 : vector<256x8xf32>
    %c0_34 = arith.constant 0 : index
    %c1_35 = arith.constant 1 : index
    %c0_36 = arith.constant 0 : index
    %c0_37 = arith.constant 0 : index
    %23 = vector.load %arg9[%c0_34, %c1_35, %c0_36, %c0_37] : memref<1x18x18x3xf32, #tpu.memory_space<vmem>>, vector<1x16x16x3xf32>
    %24 = vector.shape_cast %23 : vector<1x16x16x3xf32> to vector<256x3xf32>
    %c3 = arith.constant 3 : index
    %c0_38 = arith.constant 0 : index
    %c0_39 = arith.constant 0 : index
    %25 = vector.load %arg2[%c3, %c0_38, %c0_39] : memref<9x3x8xf32, #tpu.memory_space<vmem>>, vector<1x3x8xf32>
    %26 = vector.shape_cast %25 : vector<1x3x8xf32> to vector<3x8xf32>
    %cst_40 = arith.constant dense<0.000000e+00> : vector<256x8xf32>
    %27 = tpu.matmul %24, %26, %cst_40 {dimension_numbers = #tpu.dot_dimension_numbers<[1], [0], [0], [1], [0, 0, 1, 1], [], []>} : vector<256x3xf32>, vector<3x8xf32>, vector<256x8xf32> -> vector<256x8xf32>
    %28 = arith.addf %22, %27 : vector<256x8xf32>
    %c0_41 = arith.constant 0 : index
    %c1_42 = arith.constant 1 : index
    %c1_43 = arith.constant 1 : index
    %c0_44 = arith.constant 0 : index
    %29 = vector.load %arg9[%c0_41, %c1_42, %c1_43, %c0_44] : memref<1x18x18x3xf32, #tpu.memory_space<vmem>>, vector<1x16x16x3xf32>
    %30 = vector.shape_cast %29 : vector<1x16x16x3xf32> to vector<256x3xf32>
    %c4 = arith.constant 4 : index
    %c0_45 = arith.constant 0 : index
    %c0_46 = arith.constant 0 : index
    %31 = vector.load %arg2[%c4, %c0_45, %c0_46] : memref<9x3x8xf32, #tpu.memory_space<vmem>>, vector<1x3x8xf32>
    %32 = vector.shape_cast %31 : vector<1x3x8xf32> to vector<3x8xf32>
    %cst_47 = arith.constant dense<0.000000e+00> : vector<256x8xf32>
    %33 = tpu.matmul %30, %32, %cst_47 {dimension_numbers = #tpu.dot_dimension_numbers<[1], [0], [0], [1], [0, 0, 1, 1], [], []>} : vector<256x3xf32>, vector<3x8xf32>, vector<256x8xf32> -> vector<256x8xf32>
    %34 = arith.addf %28, %33 : vector<256x8xf32>
    %c0_48 = arith.constant 0 : index
    %c1_49 = arith.constant 1 : index
    %c2_50 = arith.constant 2 : index
    %c0_51 = arith.constant 0 : index
    %35 = vector.load %arg9[%c0_48, %c1_49, %c2_50, %c0_51] : memref<1x18x18x3xf32, #tpu.memory_space<vmem>>, vector<1x16x16x3xf32>
    %36 = vector.shape_cast %35 : vector<1x16x16x3xf32> to vector<256x3xf32>
    %c5 = arith.constant 5 : index
    %c0_52 = arith.constant 0 : index
    %c0_53 = arith.constant 0 : index
    %37 = vector.load %arg2[%c5, %c0_52, %c0_53] : memref<9x3x8xf32, #tpu.memory_space<vmem>>, vector<1x3x8xf32>
    %38 = vector.shape_cast %37 : vector<1x3x8xf32> to vector<3x8xf32>
    %cst_54 = arith.constant dense<0.000000e+00> : vector<256x8xf32>
    %39 = tpu.matmul %36, %38, %cst_54 {dimension_numbers = #tpu.dot_dimension_numbers<[1], [0], [0], [1], [0, 0, 1, 1], [], []>} : vector<256x3xf32>, vector<3x8xf32>, vector<256x8xf32> -> vector<256x8xf32>
    %40 = arith.addf %34, %39 : vector<256x8xf32>
    %c0_55 = arith.constant 0 : index
    %c2_56 = arith.constant 2 : index
    %c0_57 = arith.constant 0 : index
    %c0_58 = arith.constant 0 : index
    %41 = vector.load %arg9[%c0_55, %c2_56, %c0_57, %c0_58] : memref<1x18x18x3xf32, #tpu.memory_space<vmem>>, vector<1x16x16x3xf32>
    %42 = vector.shape_cast %41 : vector<1x16x16x3xf32> to vector<256x3xf32>
    %c6 = arith.constant 6 : index
    %c0_59 = arith.constant 0 : index
    %c0_60 = arith.constant 0 : index
    %43 = vector.load %arg2[%c6, %c0_59, %c0_60] : memref<9x3x8xf32, #tpu.memory_space<vmem>>, vector<1x3x8xf32>
    %44 = vector.shape_cast %43 : vector<1x3x8xf32> to vector<3x8xf32>
    %cst_61 = arith.constant dense<0.000000e+00> : vector<256x8xf32>
    %45 = tpu.matmul %42, %44, %cst_61 {dimension_numbers = #tpu.dot_dimension_numbers<[1], [0], [0], [1], [0, 0, 1, 1], [], []>} : vector<256x3xf32>, vector<3x8xf32>, vector<256x8xf32> -> vector<256x8xf32>
    %46 = arith.addf %40, %45 : vector<256x8xf32>
    %c0_62 = arith.constant 0 : index
    %c2_63 = arith.constant 2 : index
    %c1_64 = arith.constant 1 : index
    %c0_65 = arith.constant 0 : index
    %47 = vector.load %arg9[%c0_62, %c2_63, %c1_64, %c0_65] : memref<1x18x18x3xf32, #tpu.memory_space<vmem>>, vector<1x16x16x3xf32>
    %48 = vector.shape_cast %47 : vector<1x16x16x3xf32> to vector<256x3xf32>
    %c7 = arith.constant 7 : index
    %c0_66 = arith.constant 0 : index
    %c0_67 = arith.constant 0 : index
    %49 = vector.load %arg2[%c7, %c0_66, %c0_67] : memref<9x3x8xf32, #tpu.memory_space<vmem>>, vector<1x3x8xf32>
    %50 = vector.shape_cast %49 : vector<1x3x8xf32> to vector<3x8xf32>
    %cst_68 = arith.constant dense<0.000000e+00> : vector<256x8xf32>
    %51 = tpu.matmul %48, %50, %cst_68 {dimension_numbers = #tpu.dot_dimension_numbers<[1], [0], [0], [1], [0, 0, 1, 1], [], []>} : vector<256x3xf32>, vector<3x8xf32>, vector<256x8xf32> -> vector<256x8xf32>
    %52 = arith.addf %46, %51 : vector<256x8xf32>
    %c0_69 = arith.constant 0 : index
    %c2_70 = arith.constant 2 : index
    %c2_71 = arith.constant 2 : index
    %c0_72 = arith.constant 0 : index
    %53 = vector.load %arg9[%c0_69, %c2_70, %c2_71, %c0_72] : memref<1x18x18x3xf32, #tpu.memory_space<vmem>>, vector<1x16x16x3xf32>
    %54 = vector.shape_cast %53 : vector<1x16x16x3xf32> to vector<256x3xf32>
    %c8 = arith.constant 8 : index
    %c0_73 = arith.constant 0 : index
    %c0_74 = arith.constant 0 : index
    %55 = vector.load %arg2[%c8, %c0_73, %c0_74] : memref<9x3x8xf32, #tpu.memory_space<vmem>>, vector<1x3x8xf32>
    %56 = vector.shape_cast %55 : vector<1x3x8xf32> to vector<3x8xf32>
    %cst_75 = arith.constant dense<0.000000e+00> : vector<256x8xf32>
    %57 = tpu.matmul %54, %56, %cst_75 {dimension_numbers = #tpu.dot_dimension_numbers<[1], [0], [0], [1], [0, 0, 1, 1], [], []>} : vector<256x3xf32>, vector<3x8xf32>, vector<256x8xf32> -> vector<256x8xf32>
    %58 = arith.addf %52, %57 : vector<256x8xf32>
    %c0_76 = arith.constant 0 : index
    %c0_77 = arith.constant 0 : index
    %59 = vector.load %arg3[%c0_76, %c0_77] : memref<1x8xf32, #tpu.memory_space<vmem>>, vector<1x8xf32>
    %60 = vector.broadcast %59 : vector<1x8xf32> to vector<256x8xf32>
    %61 = arith.addf %58, %60 : vector<256x8xf32>
    %cst_78 = arith.constant 0.000000e+00 : f32
    %62 = vector.broadcast %cst_78 : f32 to vector<256x8xf32>
    %63 = arith.maximumf %61, %62 : vector<256x8xf32>
    %64 = vector.shape_cast %63 : vector<256x8xf32> to vector<1x8x2x16x8xf32>
    %65 = vector.extract_strided_slice %64 {offsets = [0, 0, 0, 0, 0], sizes = [1, 8, 1, 16, 8], strides = [1, 1, 1, 1, 1]} : vector<1x8x2x16x8xf32> to vector<1x8x1x16x8xf32>
    %66 = vector.shape_cast %65 : vector<1x8x1x16x8xf32> to vector<1x8x16x8xf32>
    %67 = vector.extract_strided_slice %64 {offsets = [0, 0, 1, 0, 0], sizes = [1, 8, 1, 16, 8], strides = [1, 1, 1, 1, 1]} : vector<1x8x2x16x8xf32> to vector<1x8x1x16x8xf32>
    %68 = vector.shape_cast %67 : vector<1x8x1x16x8xf32> to vector<1x8x16x8xf32>
    %69 = arith.maximumf %66, %68 : vector<1x8x16x8xf32>
    %cst_79 = arith.constant 0.000000e+00 : f32
    %70 = vector.broadcast %cst_79 : f32 to vector<1x10x10x8xf32>
    %c0_80 = arith.constant 0 : index
    %c0_81 = arith.constant 0 : index
    %c0_82 = arith.constant 0 : index
    %c0_83 = arith.constant 0 : index
    %71 = vector.load %arg10[%c0_80, %c0_81, %c0_82, %c0_83] : memref<1x10x10x8xf32, #tpu.memory_space<vmem>>, vector<1x10x10x8xf32>
    tpu.vector_store %arg10[%c0_80, %c0_81, %c0_82, %c0_83], %70 {strides = array<i32>} : memref<1x10x10x8xf32, #tpu.memory_space<vmem>>, vector<1x10x10x8xf32>,
    %72 = vector.extract_strided_slice %69 {offsets = [0, 0, 0, 0], sizes = [1, 8, 1, 8], strides = [1, 1, 1, 1]} : vector<1x8x16x8xf32> to vector<1x8x1x8xf32>
    %73 = vector.extract_strided_slice %69 {offsets = [0, 0, 1, 0], sizes = [1, 8, 1, 8], strides = [1, 1, 1, 1]} : vector<1x8x16x8xf32> to vector<1x8x1x8xf32>
    %74 = arith.maximumf %72, %73 : vector<1x8x1x8xf32>
    %c0_84 = arith.constant 0 : index
    %c1_85 = arith.constant 1 : index
    %c1_86 = arith.constant 1 : index
    %c0_87 = arith.constant 0 : index
    %75 = vector.load %arg10[%c0_84, %c1_85, %c1_86, %c0_87] : memref<1x10x10x8xf32, #tpu.memory_space<vmem>>, vector<1x8x1x8xf32>
    tpu.vector_store %arg10[%c0_84, %c1_85, %c1_86, %c0_87], %74 {strides = array<i32>} : memref<1x10x10x8xf32, #tpu.memory_space<vmem>>, vector<1x8x1x8xf32>,
    %76 = vector.extract_strided_slice %69 {offsets = [0, 0, 2, 0], sizes = [1, 8, 1, 8], strides = [1, 1, 1, 1]} : vector<1x8x16x8xf32> to vector<1x8x1x8xf32>
    %77 = vector.extract_strided_slice %69 {offsets = [0, 0, 3, 0], sizes = [1, 8, 1, 8], strides = [1, 1, 1, 1]} : vector<1x8x16x8xf32> to vector<1x8x1x8xf32>
    %78 = arith.maximumf %76, %77 : vector<1x8x1x8xf32>
    %c0_88 = arith.constant 0 : index
    %c1_89 = arith.constant 1 : index
    %c2_90 = arith.constant 2 : index
    %c0_91 = arith.constant 0 : index
    %79 = vector.load %arg10[%c0_88, %c1_89, %c2_90, %c0_91] : memref<1x10x10x8xf32, #tpu.memory_space<vmem>>, vector<1x8x1x8xf32>
    tpu.vector_store %arg10[%c0_88, %c1_89, %c2_90, %c0_91], %78 {strides = array<i32>} : memref<1x10x10x8xf32, #tpu.memory_space<vmem>>, vector<1x8x1x8xf32>,
    %80 = vector.extract_strided_slice %69 {offsets = [0, 0, 4, 0], sizes = [1, 8, 1, 8], strides = [1, 1, 1, 1]} : vector<1x8x16x8xf32> to vector<1x8x1x8xf32>
    %81 = vector.extract_strided_slice %69 {offsets = [0, 0, 5, 0], sizes = [1, 8, 1, 8], strides = [1, 1, 1, 1]} : vector<1x8x16x8xf32> to vector<1x8x1x8xf32>
    %82 = arith.maximumf %80, %81 : vector<1x8x1x8xf32>
    %c0_92 = arith.constant 0 : index
    %c1_93 = arith.constant 1 : index
    %c3_94 = arith.constant 3 : index
    %c0_95 = arith.constant 0 : index
    %83 = vector.load %arg10[%c0_92, %c1_93, %c3_94, %c0_95] : memref<1x10x10x8xf32, #tpu.memory_space<vmem>>, vector<1x8x1x8xf32>
    tpu.vector_store %arg10[%c0_92, %c1_93, %c3_94, %c0_95], %82 {strides = array<i32>} : memref<1x10x10x8xf32, #tpu.memory_space<vmem>>, vector<1x8x1x8xf32>,
    %84 = vector.extract_strided_slice %69 {offsets = [0, 0, 6, 0], sizes = [1, 8, 1, 8], strides = [1, 1, 1, 1]} : vector<1x8x16x8xf32> to vector<1x8x1x8xf32>
    %85 = vector.extract_strided_slice %69 {offsets = [0, 0, 7, 0], sizes = [1, 8, 1, 8], strides = [1, 1, 1, 1]} : vector<1x8x16x8xf32> to vector<1x8x1x8xf32>
    %86 = arith.maximumf %84, %85 : vector<1x8x1x8xf32>
    %c0_96 = arith.constant 0 : index
    %c1_97 = arith.constant 1 : index
    %c4_98 = arith.constant 4 : index
    %c0_99 = arith.constant 0 : index
    %87 = vector.load %arg10[%c0_96, %c1_97, %c4_98, %c0_99] : memref<1x10x10x8xf32, #tpu.memory_space<vmem>>, vector<1x8x1x8xf32>
    tpu.vector_store %arg10[%c0_96, %c1_97, %c4_98, %c0_99], %86 {strides = array<i32>} : memref<1x10x10x8xf32, #tpu.memory_space<vmem>>, vector<1x8x1x8xf32>,
    %88 = vector.extract_strided_slice %69 {offsets = [0, 0, 8, 0], sizes = [1, 8, 1, 8], strides = [1, 1, 1, 1]} : vector<1x8x16x8xf32> to vector<1x8x1x8xf32>
    %89 = vector.extract_strided_slice %69 {offsets = [0, 0, 9, 0], sizes = [1, 8, 1, 8], strides = [1, 1, 1, 1]} : vector<1x8x16x8xf32> to vector<1x8x1x8xf32>
    %90 = arith.maximumf %88, %89 : vector<1x8x1x8xf32>
    %c0_100 = arith.constant 0 : index
    %c1_101 = arith.constant 1 : index
    %c5_102 = arith.constant 5 : index
    %c0_103 = arith.constant 0 : index
    %91 = vector.load %arg10[%c0_100, %c1_101, %c5_102, %c0_103] : memref<1x10x10x8xf32, #tpu.memory_space<vmem>>, vector<1x8x1x8xf32>
    tpu.vector_store %arg10[%c0_100, %c1_101, %c5_102, %c0_103], %90 {strides = array<i32>} : memref<1x10x10x8xf32, #tpu.memory_space<vmem>>, vector<1x8x1x8xf32>,
    %92 = vector.extract_strided_slice %69 {offsets = [0, 0, 10, 0], sizes = [1, 8, 1, 8], strides = [1, 1, 1, 1]} : vector<1x8x16x8xf32> to vector<1x8x1x8xf32>
    %93 = vector.extract_strided_slice %69 {offsets = [0, 0, 11, 0], sizes = [1, 8, 1, 8], strides = [1, 1, 1, 1]} : vector<1x8x16x8xf32> to vector<1x8x1x8xf32>
    %94 = arith.maximumf %92, %93 : vector<1x8x1x8xf32>
    %c0_104 = arith.constant 0 : index
    %c1_105 = arith.constant 1 : index
    %c6_106 = arith.constant 6 : index
    %c0_107 = arith.constant 0 : index
    %95 = vector.load %arg10[%c0_104, %c1_105, %c6_106, %c0_107] : memref<1x10x10x8xf32, #tpu.memory_space<vmem>>, vector<1x8x1x8xf32>
    tpu.vector_store %arg10[%c0_104, %c1_105, %c6_106, %c0_107], %94 {strides = array<i32>} : memref<1x10x10x8xf32, #tpu.memory_space<vmem>>, vector<1x8x1x8xf32>,
    %96 = vector.extract_strided_slice %69 {offsets = [0, 0, 12, 0], sizes = [1, 8, 1, 8], strides = [1, 1, 1, 1]} : vector<1x8x16x8xf32> to vector<1x8x1x8xf32>
    %97 = vector.extract_strided_slice %69 {offsets = [0, 0, 13, 0], sizes = [1, 8, 1, 8], strides = [1, 1, 1, 1]} : vector<1x8x16x8xf32> to vector<1x8x1x8xf32>
    %98 = arith.maximumf %96, %97 : vector<1x8x1x8xf32>
    %c0_108 = arith.constant 0 : index
    %c1_109 = arith.constant 1 : index
    %c7_110 = arith.constant 7 : index
    %c0_111 = arith.constant 0 : index
    %99 = vector.load %arg10[%c0_108, %c1_109, %c7_110, %c0_111] : memref<1x10x10x8xf32, #tpu.memory_space<vmem>>, vector<1x8x1x8xf32>
    tpu.vector_store %arg10[%c0_108, %c1_109, %c7_110, %c0_111], %98 {strides = array<i32>} : memref<1x10x10x8xf32, #tpu.memory_space<vmem>>, vector<1x8x1x8xf32>,
    %100 = vector.extract_strided_slice %69 {offsets = [0, 0, 14, 0], sizes = [1, 8, 1, 8], strides = [1, 1, 1, 1]} : vector<1x8x16x8xf32> to vector<1x8x1x8xf32>
    %101 = vector.extract_strided_slice %69 {offsets = [0, 0, 15, 0], sizes = [1, 8, 1, 8], strides = [1, 1, 1, 1]} : vector<1x8x16x8xf32> to vector<1x8x1x8xf32>
    %102 = arith.maximumf %100, %101 : vector<1x8x1x8xf32>
    %c0_112 = arith.constant 0 : index
    %c1_113 = arith.constant 1 : index
    %c8_114 = arith.constant 8 : index
    %c0_115 = arith.constant 0 : index
    %103 = vector.load %arg10[%c0_112, %c1_113, %c8_114, %c0_115] : memref<1x10x10x8xf32, #tpu.memory_space<vmem>>, vector<1x8x1x8xf32>
    tpu.vector_store %arg10[%c0_112, %c1_113, %c8_114, %c0_115], %102 {strides = array<i32>} : memref<1x10x10x8xf32, #tpu.memory_space<vmem>>, vector<1x8x1x8xf32>,
    %cst_116 = arith.constant 0.000000e+00 : f32
    %104 = vector.broadcast %cst_116 : f32 to vector<64x16xf32>
    %c0_117 = arith.constant 0 : index
    %c0_118 = arith.constant 0 : index
    %c0_119 = arith.constant 0 : index
    %c0_120 = arith.constant 0 : index
    %105 = vector.load %arg10[%c0_117, %c0_118, %c0_119, %c0_120] : memref<1x10x10x8xf32, #tpu.memory_space<vmem>>, vector<1x8x8x8xf32>
    %106 = vector.shape_cast %105 : vector<1x8x8x8xf32> to vector<64x8xf32>
    %c0_121 = arith.constant 0 : index
    %c0_122 = arith.constant 0 : index
    %c0_123 = arith.constant 0 : index
    %107 = vector.load %arg4[%c0_121, %c0_122, %c0_123] : memref<9x8x16xf32, #tpu.memory_space<vmem>>, vector<1x8x16xf32>
    %108 = vector.shape_cast %107 : vector<1x8x16xf32> to vector<8x16xf32>
    %cst_124 = arith.constant dense<0.000000e+00> : vector<64x16xf32>
    %109 = tpu.matmul %106, %108, %cst_124 {dimension_numbers = #tpu.dot_dimension_numbers<[1], [0], [0], [1], [0, 0, 1, 1], [], []>} : vector<64x8xf32>, vector<8x16xf32>, vector<64x16xf32> -> vector<64x16xf32>
    %110 = arith.addf %104, %109 : vector<64x16xf32>
    %c0_125 = arith.constant 0 : index
    %c0_126 = arith.constant 0 : index
    %c1_127 = arith.constant 1 : index
    %c0_128 = arith.constant 0 : index
    %111 = vector.load %arg10[%c0_125, %c0_126, %c1_127, %c0_128] : memref<1x10x10x8xf32, #tpu.memory_space<vmem>>, vector<1x8x8x8xf32>
    %112 = vector.shape_cast %111 : vector<1x8x8x8xf32> to vector<64x8xf32>
    %c1_129 = arith.constant 1 : index
    %c0_130 = arith.constant 0 : index
    %c0_131 = arith.constant 0 : index
    %113 = vector.load %arg4[%c1_129, %c0_130, %c0_131] : memref<9x8x16xf32, #tpu.memory_space<vmem>>, vector<1x8x16xf32>
    %114 = vector.shape_cast %113 : vector<1x8x16xf32> to vector<8x16xf32>
    %cst_132 = arith.constant dense<0.000000e+00> : vector<64x16xf32>
    %115 = tpu.matmul %112, %114, %cst_132 {dimension_numbers = #tpu.dot_dimension_numbers<[1], [0], [0], [1], [0, 0, 1, 1], [], []>} : vector<64x8xf32>, vector<8x16xf32>, vector<64x16xf32> -> vector<64x16xf32>
    %116 = arith.addf %110, %115 : vector<64x16xf32>
    %c0_133 = arith.constant 0 : index
    %c0_134 = arith.constant 0 : index
    %c2_135 = arith.constant 2 : index
    %c0_136 = arith.constant 0 : index
    %117 = vector.load %arg10[%c0_133, %c0_134, %c2_135, %c0_136] : memref<1x10x10x8xf32, #tpu.memory_space<vmem>>, vector<1x8x8x8xf32>
    %118 = vector.shape_cast %117 : vector<1x8x8x8xf32> to vector<64x8xf32>
    %c2_137 = arith.constant 2 : index
    %c0_138 = arith.constant 0 : index
    %c0_139 = arith.constant 0 : index
    %119 = vector.load %arg4[%c2_137, %c0_138, %c0_139] : memref<9x8x16xf32, #tpu.memory_space<vmem>>, vector<1x8x16xf32>
    %120 = vector.shape_cast %119 : vector<1x8x16xf32> to vector<8x16xf32>
    %cst_140 = arith.constant dense<0.000000e+00> : vector<64x16xf32>
    %121 = tpu.matmul %118, %120, %cst_140 {dimension_numbers = #tpu.dot_dimension_numbers<[1], [0], [0], [1], [0, 0, 1, 1], [], []>} : vector<64x8xf32>, vector<8x16xf32>, vector<64x16xf32> -> vector<64x16xf32>
    %122 = arith.addf %116, %121 : vector<64x16xf32>
    %c0_141 = arith.constant 0 : index
    %c1_142 = arith.constant 1 : index
    %c0_143 = arith.constant 0 : index
    %c0_144 = arith.constant 0 : index
    %123 = vector.load %arg10[%c0_141, %c1_142, %c0_143, %c0_144] : memref<1x10x10x8xf32, #tpu.memory_space<vmem>>, vector<1x8x8x8xf32>
    %124 = vector.shape_cast %123 : vector<1x8x8x8xf32> to vector<64x8xf32>
    %c3_145 = arith.constant 3 : index
    %c0_146 = arith.constant 0 : index
    %c0_147 = arith.constant 0 : index
    %125 = vector.load %arg4[%c3_145, %c0_146, %c0_147] : memref<9x8x16xf32, #tpu.memory_space<vmem>>, vector<1x8x16xf32>
    %126 = vector.shape_cast %125 : vector<1x8x16xf32> to vector<8x16xf32>
    %cst_148 = arith.constant dense<0.000000e+00> : vector<64x16xf32>
    %127 = tpu.matmul %124, %126, %cst_148 {dimension_numbers = #tpu.dot_dimension_numbers<[1], [0], [0], [1], [0, 0, 1, 1], [], []>} : vector<64x8xf32>, vector<8x16xf32>, vector<64x16xf32> -> vector<64x16xf32>
    %128 = arith.addf %122, %127 : vector<64x16xf32>
    %c0_149 = arith.constant 0 : index
    %c1_150 = arith.constant 1 : index
    %c1_151 = arith.constant 1 : index
    %c0_152 = arith.constant 0 : index
    %129 = vector.load %arg10[%c0_149, %c1_150, %c1_151, %c0_152] : memref<1x10x10x8xf32, #tpu.memory_space<vmem>>, vector<1x8x8x8xf32>
    %130 = vector.shape_cast %129 : vector<1x8x8x8xf32> to vector<64x8xf32>
    %c4_153 = arith.constant 4 : index
    %c0_154 = arith.constant 0 : index
    %c0_155 = arith.constant 0 : index
    %131 = vector.load %arg4[%c4_153, %c0_154, %c0_155] : memref<9x8x16xf32, #tpu.memory_space<vmem>>, vector<1x8x16xf32>
    %132 = vector.shape_cast %131 : vector<1x8x16xf32> to vector<8x16xf32>
    %cst_156 = arith.constant dense<0.000000e+00> : vector<64x16xf32>
    %133 = tpu.matmul %130, %132, %cst_156 {dimension_numbers = #tpu.dot_dimension_numbers<[1], [0], [0], [1], [0, 0, 1, 1], [], []>} : vector<64x8xf32>, vector<8x16xf32>, vector<64x16xf32> -> vector<64x16xf32>
    %134 = arith.addf %128, %133 : vector<64x16xf32>
    %c0_157 = arith.constant 0 : index
    %c1_158 = arith.constant 1 : index
    %c2_159 = arith.constant 2 : index
    %c0_160 = arith.constant 0 : index
    %135 = vector.load %arg10[%c0_157, %c1_158, %c2_159, %c0_160] : memref<1x10x10x8xf32, #tpu.memory_space<vmem>>, vector<1x8x8x8xf32>
    %136 = vector.shape_cast %135 : vector<1x8x8x8xf32> to vector<64x8xf32>
    %c5_161 = arith.constant 5 : index
    %c0_162 = arith.constant 0 : index
    %c0_163 = arith.constant 0 : index
    %137 = vector.load %arg4[%c5_161, %c0_162, %c0_163] : memref<9x8x16xf32, #tpu.memory_space<vmem>>, vector<1x8x16xf32>
    %138 = vector.shape_cast %137 : vector<1x8x16xf32> to vector<8x16xf32>
    %cst_164 = arith.constant dense<0.000000e+00> : vector<64x16xf32>
    %139 = tpu.matmul %136, %138, %cst_164 {dimension_numbers = #tpu.dot_dimension_numbers<[1], [0], [0], [1], [0, 0, 1, 1], [], []>} : vector<64x8xf32>, vector<8x16xf32>, vector<64x16xf32> -> vector<64x16xf32>
    %140 = arith.addf %134, %139 : vector<64x16xf32>
    %c0_165 = arith.constant 0 : index
    %c2_166 = arith.constant 2 : index
    %c0_167 = arith.constant 0 : index
    %c0_168 = arith.constant 0 : index
    %141 = vector.load %arg10[%c0_165, %c2_166, %c0_167, %c0_168] : memref<1x10x10x8xf32, #tpu.memory_space<vmem>>, vector<1x8x8x8xf32>
    %142 = vector.shape_cast %141 : vector<1x8x8x8xf32> to vector<64x8xf32>
    %c6_169 = arith.constant 6 : index
    %c0_170 = arith.constant 0 : index
    %c0_171 = arith.constant 0 : index
    %143 = vector.load %arg4[%c6_169, %c0_170, %c0_171] : memref<9x8x16xf32, #tpu.memory_space<vmem>>, vector<1x8x16xf32>
    %144 = vector.shape_cast %143 : vector<1x8x16xf32> to vector<8x16xf32>
    %cst_172 = arith.constant dense<0.000000e+00> : vector<64x16xf32>
    %145 = tpu.matmul %142, %144, %cst_172 {dimension_numbers = #tpu.dot_dimension_numbers<[1], [0], [0], [1], [0, 0, 1, 1], [], []>} : vector<64x8xf32>, vector<8x16xf32>, vector<64x16xf32> -> vector<64x16xf32>
    %146 = arith.addf %140, %145 : vector<64x16xf32>
    %c0_173 = arith.constant 0 : index
    %c2_174 = arith.constant 2 : index
    %c1_175 = arith.constant 1 : index
    %c0_176 = arith.constant 0 : index
    %147 = vector.load %arg10[%c0_173, %c2_174, %c1_175, %c0_176] : memref<1x10x10x8xf32, #tpu.memory_space<vmem>>, vector<1x8x8x8xf32>
    %148 = vector.shape_cast %147 : vector<1x8x8x8xf32> to vector<64x8xf32>
    %c7_177 = arith.constant 7 : index
    %c0_178 = arith.constant 0 : index
    %c0_179 = arith.constant 0 : index
    %149 = vector.load %arg4[%c7_177, %c0_178, %c0_179] : memref<9x8x16xf32, #tpu.memory_space<vmem>>, vector<1x8x16xf32>
    %150 = vector.shape_cast %149 : vector<1x8x16xf32> to vector<8x16xf32>
    %cst_180 = arith.constant dense<0.000000e+00> : vector<64x16xf32>
    %151 = tpu.matmul %148, %150, %cst_180 {dimension_numbers = #tpu.dot_dimension_numbers<[1], [0], [0], [1], [0, 0, 1, 1], [], []>} : vector<64x8xf32>, vector<8x16xf32>, vector<64x16xf32> -> vector<64x16xf32>
    %152 = arith.addf %146, %151 : vector<64x16xf32>
    %c0_181 = arith.constant 0 : index
    %c2_182 = arith.constant 2 : index
    %c2_183 = arith.constant 2 : index
    %c0_184 = arith.constant 0 : index
    %153 = vector.load %arg10[%c0_181, %c2_182, %c2_183, %c0_184] : memref<1x10x10x8xf32, #tpu.memory_space<vmem>>, vector<1x8x8x8xf32>
    %154 = vector.shape_cast %153 : vector<1x8x8x8xf32> to vector<64x8xf32>
    %c8_185 = arith.constant 8 : index
    %c0_186 = arith.constant 0 : index
    %c0_187 = arith.constant 0 : index
    %155 = vector.load %arg4[%c8_185, %c0_186, %c0_187] : memref<9x8x16xf32, #tpu.memory_space<vmem>>, vector<1x8x16xf32>
    %156 = vector.shape_cast %155 : vector<1x8x16xf32> to vector<8x16xf32>
    %cst_188 = arith.constant dense<0.000000e+00> : vector<64x16xf32>
    %157 = tpu.matmul %154, %156, %cst_188 {dimension_numbers = #tpu.dot_dimension_numbers<[1], [0], [0], [1], [0, 0, 1, 1], [], []>} : vector<64x8xf32>, vector<8x16xf32>, vector<64x16xf32> -> vector<64x16xf32>
    %158 = arith.addf %152, %157 : vector<64x16xf32>
    %c0_189 = arith.constant 0 : index
    %c0_190 = arith.constant 0 : index
    %159 = vector.load %arg5[%c0_189, %c0_190] : memref<1x16xf32, #tpu.memory_space<vmem>>, vector<1x16xf32>
    %160 = vector.broadcast %159 : vector<1x16xf32> to vector<64x16xf32>
    %161 = arith.addf %158, %160 : vector<64x16xf32>
    %cst_191 = arith.constant 0.000000e+00 : f32
    %162 = vector.broadcast %cst_191 : f32 to vector<64x16xf32>
    %163 = arith.maximumf %161, %162 : vector<64x16xf32>
    %164 = vector.shape_cast %163 : vector<64x16xf32> to vector<1x4x2x8x16xf32>
    %165 = vector.extract_strided_slice %164 {offsets = [0, 0, 0, 0, 0], sizes = [1, 4, 1, 8, 16], strides = [1, 1, 1, 1, 1]} : vector<1x4x2x8x16xf32> to vector<1x4x1x8x16xf32>
    %166 = vector.shape_cast %165 : vector<1x4x1x8x16xf32> to vector<1x4x8x16xf32>
    %167 = vector.extract_strided_slice %164 {offsets = [0, 0, 1, 0, 0], sizes = [1, 4, 1, 8, 16], strides = [1, 1, 1, 1, 1]} : vector<1x4x2x8x16xf32> to vector<1x4x1x8x16xf32>
    %168 = vector.shape_cast %167 : vector<1x4x1x8x16xf32> to vector<1x4x8x16xf32>
    %169 = arith.maximumf %166, %168 : vector<1x4x8x16xf32>
    %170 = vector.extract_strided_slice %169 {offsets = [0, 0, 0, 0], sizes = [1, 1, 1, 16], strides = [1, 1, 1, 1]} : vector<1x4x8x16xf32> to vector<1x1x1x16xf32>
    %171 = vector.shape_cast %170 : vector<1x1x1x16xf32> to vector<1x16xf32>
    %172 = vector.extract_strided_slice %169 {offsets = [0, 0, 1, 0], sizes = [1, 1, 1, 16], strides = [1, 1, 1, 1]} : vector<1x4x8x16xf32> to vector<1x1x1x16xf32>
    %173 = vector.shape_cast %172 : vector<1x1x1x16xf32> to vector<1x16xf32>
    %174 = arith.maximumf %171, %173 : vector<1x16xf32>
    %c0_192 = arith.constant 0 : index
    %c0_193 = arith.constant 0 : index
    %175 = vector.load %arg11[%c0_192, %c0_193] : memref<1x256xf32, #tpu.memory_space<vmem>>, vector<1x16xf32>
    tpu.vector_store %arg11[%c0_192, %c0_193], %174 {strides = array<i32>} : memref<1x256xf32, #tpu.memory_space<vmem>>, vector<1x16xf32>,
    %176 = vector.extract_strided_slice %169 {offsets = [0, 0, 2, 0], sizes = [1, 1, 1, 16], strides = [1, 1, 1, 1]} : vector<1x4x8x16xf32> to vector<1x1x1x16xf32>
    %177 = vector.shape_cast %176 : vector<1x1x1x16xf32> to vector<1x16xf32>
    %178 = vector.extract_strided_slice %169 {offsets = [0, 0, 3, 0], sizes = [1, 1, 1, 16], strides = [1, 1, 1, 1]} : vector<1x4x8x16xf32> to vector<1x1x1x16xf32>
    %179 = vector.shape_cast %178 : vector<1x1x1x16xf32> to vector<1x16xf32>
    %180 = arith.maximumf %177, %179 : vector<1x16xf32>
    %c0_194 = arith.constant 0 : index
    %c16 = arith.constant 16 : index
    %181 = vector.load %arg11[%c0_194, %c16] : memref<1x256xf32, #tpu.memory_space<vmem>>, vector<1x16xf32>
    tpu.vector_store %arg11[%c0_194, %c16], %180 {strides = array<i32>} : memref<1x256xf32, #tpu.memory_space<vmem>>, vector<1x16xf32>,
    %182 = vector.extract_strided_slice %169 {offsets = [0, 0, 4, 0], sizes = [1, 1, 1, 16], strides = [1, 1, 1, 1]} : vector<1x4x8x16xf32> to vector<1x1x1x16xf32>
    %183 = vector.shape_cast %182 : vector<1x1x1x16xf32> to vector<1x16xf32>
    %184 = vector.extract_strided_slice %169 {offsets = [0, 0, 5, 0], sizes = [1, 1, 1, 16], strides = [1, 1, 1, 1]} : vector<1x4x8x16xf32> to vector<1x1x1x16xf32>
    %185 = vector.shape_cast %184 : vector<1x1x1x16xf32> to vector<1x16xf32>
    %186 = arith.maximumf %183, %185 : vector<1x16xf32>
    %c0_195 = arith.constant 0 : index
    %c32 = arith.constant 32 : index
    %187 = vector.load %arg11[%c0_195, %c32] : memref<1x256xf32, #tpu.memory_space<vmem>>, vector<1x16xf32>
    tpu.vector_store %arg11[%c0_195, %c32], %186 {strides = array<i32>} : memref<1x256xf32, #tpu.memory_space<vmem>>, vector<1x16xf32>,
    %188 = vector.extract_strided_slice %169 {offsets = [0, 0, 6, 0], sizes = [1, 1, 1, 16], strides = [1, 1, 1, 1]} : vector<1x4x8x16xf32> to vector<1x1x1x16xf32>
    %189 = vector.shape_cast %188 : vector<1x1x1x16xf32> to vector<1x16xf32>
    %190 = vector.extract_strided_slice %169 {offsets = [0, 0, 7, 0], sizes = [1, 1, 1, 16], strides = [1, 1, 1, 1]} : vector<1x4x8x16xf32> to vector<1x1x1x16xf32>
    %191 = vector.shape_cast %190 : vector<1x1x1x16xf32> to vector<1x16xf32>
    %192 = arith.maximumf %189, %191 : vector<1x16xf32>
    %c0_196 = arith.constant 0 : index
    %c48 = arith.constant 48 : index
    %193 = vector.load %arg11[%c0_196, %c48] : memref<1x256xf32, #tpu.memory_space<vmem>>, vector<1x16xf32>
    tpu.vector_store %arg11[%c0_196, %c48], %192 {strides = array<i32>} : memref<1x256xf32, #tpu.memory_space<vmem>>, vector<1x16xf32>,
    %194 = vector.extract_strided_slice %169 {offsets = [0, 1, 0, 0], sizes = [1, 1, 1, 16], strides = [1, 1, 1, 1]} : vector<1x4x8x16xf32> to vector<1x1x1x16xf32>
    %195 = vector.shape_cast %194 : vector<1x1x1x16xf32> to vector<1x16xf32>
    %196 = vector.extract_strided_slice %169 {offsets = [0, 1, 1, 0], sizes = [1, 1, 1, 16], strides = [1, 1, 1, 1]} : vector<1x4x8x16xf32> to vector<1x1x1x16xf32>
    %197 = vector.shape_cast %196 : vector<1x1x1x16xf32> to vector<1x16xf32>
    %198 = arith.maximumf %195, %197 : vector<1x16xf32>
    %c0_197 = arith.constant 0 : index
    %c64 = arith.constant 64 : index
    %199 = vector.load %arg11[%c0_197, %c64] : memref<1x256xf32, #tpu.memory_space<vmem>>, vector<1x16xf32>
    tpu.vector_store %arg11[%c0_197, %c64], %198 {strides = array<i32>} : memref<1x256xf32, #tpu.memory_space<vmem>>, vector<1x16xf32>,
    %200 = vector.extract_strided_slice %169 {offsets = [0, 1, 2, 0], sizes = [1, 1, 1, 16], strides = [1, 1, 1, 1]} : vector<1x4x8x16xf32> to vector<1x1x1x16xf32>
    %201 = vector.shape_cast %200 : vector<1x1x1x16xf32> to vector<1x16xf32>
    %202 = vector.extract_strided_slice %169 {offsets = [0, 1, 3, 0], sizes = [1, 1, 1, 16], strides = [1, 1, 1, 1]} : vector<1x4x8x16xf32> to vector<1x1x1x16xf32>
    %203 = vector.shape_cast %202 : vector<1x1x1x16xf32> to vector<1x16xf32>
    %204 = arith.maximumf %201, %203 : vector<1x16xf32>
    %c0_198 = arith.constant 0 : index
    %c80 = arith.constant 80 : index
    %205 = vector.load %arg11[%c0_198, %c80] : memref<1x256xf32, #tpu.memory_space<vmem>>, vector<1x16xf32>
    tpu.vector_store %arg11[%c0_198, %c80], %204 {strides = array<i32>} : memref<1x256xf32, #tpu.memory_space<vmem>>, vector<1x16xf32>,
    %206 = vector.extract_strided_slice %169 {offsets = [0, 1, 4, 0], sizes = [1, 1, 1, 16], strides = [1, 1, 1, 1]} : vector<1x4x8x16xf32> to vector<1x1x1x16xf32>
    %207 = vector.shape_cast %206 : vector<1x1x1x16xf32> to vector<1x16xf32>
    %208 = vector.extract_strided_slice %169 {offsets = [0, 1, 5, 0], sizes = [1, 1, 1, 16], strides = [1, 1, 1, 1]} : vector<1x4x8x16xf32> to vector<1x1x1x16xf32>
    %209 = vector.shape_cast %208 : vector<1x1x1x16xf32> to vector<1x16xf32>
    %210 = arith.maximumf %207, %209 : vector<1x16xf32>
    %c0_199 = arith.constant 0 : index
    %c96 = arith.constant 96 : index
    %211 = vector.load %arg11[%c0_199, %c96] : memref<1x256xf32, #tpu.memory_space<vmem>>, vector<1x16xf32>
    tpu.vector_store %arg11[%c0_199, %c96], %210 {strides = array<i32>} : memref<1x256xf32, #tpu.memory_space<vmem>>, vector<1x16xf32>,
    %212 = vector.extract_strided_slice %169 {offsets = [0, 1, 6, 0], sizes = [1, 1, 1, 16], strides = [1, 1, 1, 1]} : vector<1x4x8x16xf32> to vector<1x1x1x16xf32>
    %213 = vector.shape_cast %212 : vector<1x1x1x16xf32> to vector<1x16xf32>
    %214 = vector.extract_strided_slice %169 {offsets = [0, 1, 7, 0], sizes = [1, 1, 1, 16], strides = [1, 1, 1, 1]} : vector<1x4x8x16xf32> to vector<1x1x1x16xf32>
    %215 = vector.shape_cast %214 : vector<1x1x1x16xf32> to vector<1x16xf32>
    %216 = arith.maximumf %213, %215 : vector<1x16xf32>
    %c0_200 = arith.constant 0 : index
    %c112 = arith.constant 112 : index
    %217 = vector.load %arg11[%c0_200, %c112] : memref<1x256xf32, #tpu.memory_space<vmem>>, vector<1x16xf32>
    tpu.vector_store %arg11[%c0_200, %c112], %216 {strides = array<i32>} : memref<1x256xf32, #tpu.memory_space<vmem>>, vector<1x16xf32>,
    %218 = vector.extract_strided_slice %169 {offsets = [0, 2, 0, 0], sizes = [1, 1, 1, 16], strides = [1, 1, 1, 1]} : vector<1x4x8x16xf32> to vector<1x1x1x16xf32>
    %219 = vector.shape_cast %218 : vector<1x1x1x16xf32> to vector<1x16xf32>
    %220 = vector.extract_strided_slice %169 {offsets = [0, 2, 1, 0], sizes = [1, 1, 1, 16], strides = [1, 1, 1, 1]} : vector<1x4x8x16xf32> to vector<1x1x1x16xf32>
    %221 = vector.shape_cast %220 : vector<1x1x1x16xf32> to vector<1x16xf32>
    %222 = arith.maximumf %219, %221 : vector<1x16xf32>
    %c0_201 = arith.constant 0 : index
    %c128 = arith.constant 128 : index
    %223 = vector.load %arg11[%c0_201, %c128] : memref<1x256xf32, #tpu.memory_space<vmem>>, vector<1x16xf32>
    tpu.vector_store %arg11[%c0_201, %c128], %222 {strides = array<i32>} : memref<1x256xf32, #tpu.memory_space<vmem>>, vector<1x16xf32>,
    %224 = vector.extract_strided_slice %169 {offsets = [0, 2, 2, 0], sizes = [1, 1, 1, 16], strides = [1, 1, 1, 1]} : vector<1x4x8x16xf32> to vector<1x1x1x16xf32>
    %225 = vector.shape_cast %224 : vector<1x1x1x16xf32> to vector<1x16xf32>
    %226 = vector.extract_strided_slice %169 {offsets = [0, 2, 3, 0], sizes = [1, 1, 1, 16], strides = [1, 1, 1, 1]} : vector<1x4x8x16xf32> to vector<1x1x1x16xf32>
    %227 = vector.shape_cast %226 : vector<1x1x1x16xf32> to vector<1x16xf32>
    %228 = arith.maximumf %225, %227 : vector<1x16xf32>
    %c0_202 = arith.constant 0 : index
    %c144 = arith.constant 144 : index
    %229 = vector.load %arg11[%c0_202, %c144] : memref<1x256xf32, #tpu.memory_space<vmem>>, vector<1x16xf32>
    tpu.vector_store %arg11[%c0_202, %c144], %228 {strides = array<i32>} : memref<1x256xf32, #tpu.memory_space<vmem>>, vector<1x16xf32>,
    %230 = vector.extract_strided_slice %169 {offsets = [0, 2, 4, 0], sizes = [1, 1, 1, 16], strides = [1, 1, 1, 1]} : vector<1x4x8x16xf32> to vector<1x1x1x16xf32>
    %231 = vector.shape_cast %230 : vector<1x1x1x16xf32> to vector<1x16xf32>
    %232 = vector.extract_strided_slice %169 {offsets = [0, 2, 5, 0], sizes = [1, 1, 1, 16], strides = [1, 1, 1, 1]} : vector<1x4x8x16xf32> to vector<1x1x1x16xf32>
    %233 = vector.shape_cast %232 : vector<1x1x1x16xf32> to vector<1x16xf32>
    %234 = arith.maximumf %231, %233 : vector<1x16xf32>
    %c0_203 = arith.constant 0 : index
    %c160 = arith.constant 160 : index
    %235 = vector.load %arg11[%c0_203, %c160] : memref<1x256xf32, #tpu.memory_space<vmem>>, vector<1x16xf32>
    tpu.vector_store %arg11[%c0_203, %c160], %234 {strides = array<i32>} : memref<1x256xf32, #tpu.memory_space<vmem>>, vector<1x16xf32>,
    %236 = vector.extract_strided_slice %169 {offsets = [0, 2, 6, 0], sizes = [1, 1, 1, 16], strides = [1, 1, 1, 1]} : vector<1x4x8x16xf32> to vector<1x1x1x16xf32>
    %237 = vector.shape_cast %236 : vector<1x1x1x16xf32> to vector<1x16xf32>
    %238 = vector.extract_strided_slice %169 {offsets = [0, 2, 7, 0], sizes = [1, 1, 1, 16], strides = [1, 1, 1, 1]} : vector<1x4x8x16xf32> to vector<1x1x1x16xf32>
    %239 = vector.shape_cast %238 : vector<1x1x1x16xf32> to vector<1x16xf32>
    %240 = arith.maximumf %237, %239 : vector<1x16xf32>
    %c0_204 = arith.constant 0 : index
    %c176 = arith.constant 176 : index
    %241 = vector.load %arg11[%c0_204, %c176] : memref<1x256xf32, #tpu.memory_space<vmem>>, vector<1x16xf32>
    tpu.vector_store %arg11[%c0_204, %c176], %240 {strides = array<i32>} : memref<1x256xf32, #tpu.memory_space<vmem>>, vector<1x16xf32>,
    %242 = vector.extract_strided_slice %169 {offsets = [0, 3, 0, 0], sizes = [1, 1, 1, 16], strides = [1, 1, 1, 1]} : vector<1x4x8x16xf32> to vector<1x1x1x16xf32>
    %243 = vector.shape_cast %242 : vector<1x1x1x16xf32> to vector<1x16xf32>
    %244 = vector.extract_strided_slice %169 {offsets = [0, 3, 1, 0], sizes = [1, 1, 1, 16], strides = [1, 1, 1, 1]} : vector<1x4x8x16xf32> to vector<1x1x1x16xf32>
    %245 = vector.shape_cast %244 : vector<1x1x1x16xf32> to vector<1x16xf32>
    %246 = arith.maximumf %243, %245 : vector<1x16xf32>
    %c0_205 = arith.constant 0 : index
    %c192 = arith.constant 192 : index
    %247 = vector.load %arg11[%c0_205, %c192] : memref<1x256xf32, #tpu.memory_space<vmem>>, vector<1x16xf32>
    tpu.vector_store %arg11[%c0_205, %c192], %246 {strides = array<i32>} : memref<1x256xf32, #tpu.memory_space<vmem>>, vector<1x16xf32>,
    %248 = vector.extract_strided_slice %169 {offsets = [0, 3, 2, 0], sizes = [1, 1, 1, 16], strides = [1, 1, 1, 1]} : vector<1x4x8x16xf32> to vector<1x1x1x16xf32>
    %249 = vector.shape_cast %248 : vector<1x1x1x16xf32> to vector<1x16xf32>
    %250 = vector.extract_strided_slice %169 {offsets = [0, 3, 3, 0], sizes = [1, 1, 1, 16], strides = [1, 1, 1, 1]} : vector<1x4x8x16xf32> to vector<1x1x1x16xf32>
    %251 = vector.shape_cast %250 : vector<1x1x1x16xf32> to vector<1x16xf32>
    %252 = arith.maximumf %249, %251 : vector<1x16xf32>
    %c0_206 = arith.constant 0 : index
    %c208 = arith.constant 208 : index
    %253 = vector.load %arg11[%c0_206, %c208] : memref<1x256xf32, #tpu.memory_space<vmem>>, vector<1x16xf32>
    tpu.vector_store %arg11[%c0_206, %c208], %252 {strides = array<i32>} : memref<1x256xf32, #tpu.memory_space<vmem>>, vector<1x16xf32>,
    %254 = vector.extract_strided_slice %169 {offsets = [0, 3, 4, 0], sizes = [1, 1, 1, 16], strides = [1, 1, 1, 1]} : vector<1x4x8x16xf32> to vector<1x1x1x16xf32>
    %255 = vector.shape_cast %254 : vector<1x1x1x16xf32> to vector<1x16xf32>
    %256 = vector.extract_strided_slice %169 {offsets = [0, 3, 5, 0], sizes = [1, 1, 1, 16], strides = [1, 1, 1, 1]} : vector<1x4x8x16xf32> to vector<1x1x1x16xf32>
    %257 = vector.shape_cast %256 : vector<1x1x1x16xf32> to vector<1x16xf32>
    %258 = arith.maximumf %255, %257 : vector<1x16xf32>
    %c0_207 = arith.constant 0 : index
    %c224 = arith.constant 224 : index
    %259 = vector.load %arg11[%c0_207, %c224] : memref<1x256xf32, #tpu.memory_space<vmem>>, vector<1x16xf32>
    tpu.vector_store %arg11[%c0_207, %c224], %258 {strides = array<i32>} : memref<1x256xf32, #tpu.memory_space<vmem>>, vector<1x16xf32>,
    %260 = vector.extract_strided_slice %169 {offsets = [0, 3, 6, 0], sizes = [1, 1, 1, 16], strides = [1, 1, 1, 1]} : vector<1x4x8x16xf32> to vector<1x1x1x16xf32>
    %261 = vector.shape_cast %260 : vector<1x1x1x16xf32> to vector<1x16xf32>
    %262 = vector.extract_strided_slice %169 {offsets = [0, 3, 7, 0], sizes = [1, 1, 1, 16], strides = [1, 1, 1, 1]} : vector<1x4x8x16xf32> to vector<1x1x1x16xf32>
    %263 = vector.shape_cast %262 : vector<1x1x1x16xf32> to vector<1x16xf32>
    %264 = arith.maximumf %261, %263 : vector<1x16xf32>
    %c0_208 = arith.constant 0 : index
    %c240 = arith.constant 240 : index
    %265 = vector.load %arg11[%c0_208, %c240] : memref<1x256xf32, #tpu.memory_space<vmem>>, vector<1x16xf32>
    tpu.vector_store %arg11[%c0_208, %c240], %264 {strides = array<i32>} : memref<1x256xf32, #tpu.memory_space<vmem>>, vector<1x16xf32>,
    %c0_209 = arith.constant 0 : index
    %c0_210 = arith.constant 0 : index
    %266 = vector.load %arg11[%c0_209, %c0_210] : memref<1x256xf32, #tpu.memory_space<vmem>>, vector<1x256xf32>
    %c0_211 = arith.constant 0 : index
    %c0_212 = arith.constant 0 : index
    %267 = vector.load %arg6[%c0_211, %c0_212] : memref<256x10xf32, #tpu.memory_space<vmem>>, vector<256x10xf32>
    %cst_213 = arith.constant dense<0.000000e+00> : vector<1x10xf32>
    %268 = tpu.matmul %266, %267, %cst_213 {dimension_numbers = #tpu.dot_dimension_numbers<[1], [0], [0], [1], [0, 0, 1, 1], [], []>} : vector<1x256xf32>, vector<256x10xf32>, vector<1x10xf32> -> vector<1x10xf32>
    %c0_214 = arith.constant 0 : index
    %c0_215 = arith.constant 0 : index
    %269 = vector.load %arg7[%c0_214, %c0_215] : memref<1x10xf32, #tpu.memory_space<vmem>>, vector<1x10xf32>
    %270 = arith.addf %268, %269 : vector<1x10xf32>
    %271 = vector.shape_cast %270 : vector<1x10xf32> to vector<1x1x10xf32>
    %c0_216 = arith.constant 0 : index
    %c0_217 = arith.constant 0 : index
    %c0_218 = arith.constant 0 : index
    %272 = vector.load %arg8[%c0_216, %c0_217, %c0_218] : memref<1x1x10xf32, #tpu.memory_space<vmem>>, vector<1x1x10xf32>
    tpu.vector_store %arg8[%c0_216, %c0_217, %c0_218], %271 {strides = array<i32>} : memref<1x1x10xf32, #tpu.memory_space<vmem>>, vector<1x1x10xf32>,
    return
  }
  func.func @transform_0(%arg0: i32) -> (i32, i32, i32, i32) {
    %c0_i32 = arith.constant 0 : i32
    %c0_i32_0 = arith.constant 0 : i32
    %c0_i32_1 = arith.constant 0 : i32
    %c0_i32_2 = arith.constant 0 : i32
    return %arg0, %c0_i32, %c0_i32_0, %c0_i32_1 : i32, i32, i32, i32
  }
  func.func @transform_1(%arg0: i32) -> (i32, i32, i32) {
    %c0_i32 = arith.constant 0 : i32
    %c0_i32_0 = arith.constant 0 : i32
    %c0_i32_1 = arith.constant 0 : i32
    %c0_i32_2 = arith.constant 0 : i32
    return %c0_i32, %c0_i32_0, %c0_i32_1 : i32, i32, i32
  }
  func.func @transform_2(%arg0: i32) -> (i32, i32) {
    %c0_i32 = arith.constant 0 : i32
    %c0_i32_0 = arith.constant 0 : i32
    %c0_i32_1 = arith.constant 0 : i32
    return %c0_i32, %c0_i32_0 : i32, i32
  }
  func.func @transform_3(%arg0: i32) -> (i32, i32, i32) {
    %c0_i32 = arith.constant 0 : i32
    %c0_i32_0 = arith.constant 0 : i32
    %c0_i32_1 = arith.constant 0 : i32
    %c0_i32_2 = arith.constant 0 : i32
    return %c0_i32, %c0_i32_0, %c0_i32_1 : i32, i32, i32
  }
  func.func @transform_4(%arg0: i32) -> (i32, i32) {
    %c0_i32 = arith.constant 0 : i32
    %c0_i32_0 = arith.constant 0 : i32
    %c0_i32_1 = arith.constant 0 : i32
    return %c0_i32, %c0_i32_0 : i32, i32
  }
  func.func @transform_5(%arg0: i32) -> (i32, i32) {
    %c0_i32 = arith.constant 0 : i32
    %c0_i32_0 = arith.constant 0 : i32
    %c0_i32_1 = arith.constant 0 : i32
    return %c0_i32, %c0_i32_0 : i32, i32
  }
  func.func @transform_6(%arg0: i32) -> (i32, i32) {
    %c0_i32 = arith.constant 0 : i32
    %c0_i32_0 = arith.constant 0 : i32
    %c0_i32_1 = arith.constant 0 : i32
    return %c0_i32, %c0_i32_0 : i32, i32
  }
  func.func @transform_7(%arg0: i32) -> (i32, i32, i32) {
    %c0_i32 = arith.constant 0 : i32
    %c0_i32_0 = arith.constant 0 : i32
    %c0_i32_1 = arith.constant 0 : i32
    return %arg0, %c0_i32, %c0_i32_0 : i32, i32, i32
  }
}

</mosaic_0001>

<bundles_post_ra>
// kernel: tpu_custom_call.1
= control target key start
LH: loop header
LB: loop body
LE: loop exit
PB: predicated region body
PF: predicated region fallthrough
CT: control target
= control target key end

     0   :  { %12 = vsyncpa [#allocation6], 0  ;;  %s9543_s0 = inlined_call_operand.vmem [shape: f32[2,16,16,3], index: 0, kind: input, shape index: {}]   ;;  %s9544_s1 = inlined_call_operand.vmem [shape: f32[9,3,8], index: 1, kind: input, shape index: {}]   ;;  %s9545_s2 = inlined_call_operand.vmem [shape: f32[1,8], index: 2, kind: input, shape index: {}]   ;;  %s9546_s3 = inlined_call_operand.vmem [shape: f32[9,8,16], index: 3, kind: input, shape index: {}]   ;;  %s9547_s4 = inlined_call_operand.vmem [shape: f32[1,16], index: 4, kind: input, shape index: {}]   ;;  %s9548_s5 = inlined_call_operand.vmem [shape: f32[256,10], index: 5, kind: input, shape index: {}]   ;;  %s9549_s6 = inlined_call_operand.vmem [shape: f32[1,10], index: 6, kind: input, shape index: {}]   ;;  %s9550_s7 = inlined_call_operand.hbm [shape: f32[2,1,10], index: 7, kind: output, shape index: {}]  }
   0x1   :  { %14 = vsyncpa [#allocation6 + $0x1], 0  ;;  %s7734_s24 = smov 0   ;;  %s7736_s25 = smov 0  }
   0x2   :  { %s7738_s26 = smov 0   ;;  %s7740_s27 = smov 0  }
   0x3 LB: > { %s7755_s28 = sadd.s32 4294967295, %s7682_s27   ;;  %s5832_s29 = sadd.s32 4294967294, %s7682_s27   ;;  %s7682_s27 = sphi %s7740_s27, %s9667_s27   ;;  %s7678_s26 = sphi %s7738_s26, %s9666_s26   ;;  %s7674_s25 = sphi %s7736_s25, %s9665_s25   ;;  %s7670_s24 = sphi %s7734_s24, %s9664_s24  }
   0x4   : > { %s7759_s30 = sadd.s32 1, %s7682_s27   ;;  %s179_s8 = sadd.s32 1, %s7678_s26 }
   0x5   : > { %s176_s9 = ssub.s32 %s7682_s27, %s7759_s30  ;;  %p189_p0 = scmp.ne.s32.totalorder %s7678_s26, %s7674_s25 }
   0x6   : > { %p177_p1 = scmp.eq.s32.totalorder %s176_s9, 0  ;;  %p190_p2 = scmp.eq.s32.totalorder %s7755_s28, 1 }
   0x7   : > { %p195_p3 = scmp.ne.s32.totalorder %s7674_s25, %s7670_s24  ;;  %p196_p4 = scmp.eq.s32.totalorder %s5832_s29, 1 }
   0x8   : > { %s7770_s10 = scalar_select %p177_p1, %s7678_s26, %s179_s8  }
   0x9   : > { %p7772_p5 = por %p190_p2, %p189_p0  ;;  %p7776_p6 = por %p196_p4, %p195_p3 }
   0xa   : > { %p5835_p7 = scmp.ge.s32.totalorder %s7682_s27, 1  ;;  %p240_p8 = scmp.lt.s32.totalorder %s7682_s27, 3 }
   0xc   : > { %p241_p9 = pnand %p5835_p7, %p240_p8 }
   0xe   : > { %244 = sbr.rel (%p241_p9) target bundleno = 1384 (0x568), region = 48 }
  0x15   : > { %vm560_vm0 = vcmask 1042432   ;;  %v7785_v0 = vld [vmem:[%s9544_s1 + $0xc] sm:$0x7]  ;;  %p271_p10 = scmp.lt.s32.totalorder %s7755_s28, 1  ;;  %vm276_vm1 = vcmask 23552   ;;  %v9551_v1 = vmov 0.0  }
  0x16   : > { %6792 = vmatprep.subr.msk.mxu0 %vm560_vm0, %v7785_v0  ;;  %281 = vst.msk [vmem:[#allocation2 + $0x18] sm:$0xff] %vm276_vm1, %v9551_v1  ;;  %282 = vst.msk [vmem:[#allocation2 + $0x20] sm:$0xff] %vm276_vm1, %v9551_v1  ;;  %v7865_v2 = vld [vmem:[%s9544_s1 + $0x10] sm:$0x7]  ;;  %vm279_vm2 = vcmask 17408   ;;  %vm3931_vm3 = vcmask 64512  }
  0x17   : > { %277 = vst.msk [vmem:[#allocation2] sm:$0xff] %vm276_vm1, %v9551_v1  ;;  %278 = vst.msk [vmem:[#allocation2 + $0x8] sm:$0xff] %vm276_vm1, %v9551_v1  ;;  %v5838_v3 = vld [vmem:[%s9544_s1 + $0x4] sm:$0x7]  ;;  %6793 = vmatpush3.msk.msra.mxu0 %vm560_vm0, %v7785_v0  ;;  %s272_s19 = scalar_select %p271_p10, %s7755_s28, 1  ;;  %vm3933_vm4 = vcmask 58368  }
  0x18   : > { %284 = vst.msk [vmem:[#allocation2 + $0x30] sm:$0xff] %vm276_vm1, %v9551_v1  ;;  %285 = vst.msk [vmem:[#allocation2 + $0x38] sm:$0xff] %vm276_vm1, %v9551_v1  ;;  %6642 = vmatprep.subr.msk.mxu1 %vm560_vm0, %v5838_v3  ;;  %v429_v4 = vld [vmem:[%s9544_s1] sm:$0x7]  ;;  %6842 = vmatprep.subr.msk.mxu0 %vm560_vm0, %v7865_v2  ;;  %v7982_v32 = vld [vmem:[%s9544_s1 + $0x14] sm:$0x7] }
  0x19   : > { %287 = vst.msk [vmem:[#allocation2 + $0x48] sm:$0xff] %vm276_vm1, %v9551_v1  ;;  %288 = vst.msk [vmem:[#allocation2 + $0x50] sm:$0xff] %vm276_vm1, %v9551_v1  ;;  %6643 = vmatpush3.msk.msra.mxu1 %vm560_vm0, %v5838_v3  ;;  %s6228_s22 = sshll.u32 %s272_s19, 8  ;;  %vm3986_vm5 = vcmask 57344   ;;  %vm3995_vm6 = vcmask 59394   ;;  %vm4004_vm7 = vcmask 61444  }
  0x1a   : > { %290 = vst.msk [vmem:[#allocation2 + $0x60] sm:$0xff] %vm276_vm1, %v9551_v1  ;;  %291 = vst.msk [vmem:[#allocation2 + $0x68] sm:$0xff] %vm276_vm1, %v9551_v1  ;;  %6692 = vmatprep.subr.msk.mxu1 %vm560_vm0, %v429_v4  ;;  %s7922_s8 = scalar_lea.vmem %s9543_s0, %s6228_s22  ;;  %vm4013_vm8 = vcmask 63494   ;;  %s7686_s18 = smov 32  }
  0x1b   : > { %293 = vst.msk [vmem:[#allocation2 + $0x78] sm:$0xff] %vm276_vm1, %v9551_v1  ;;  %294 = vst.msk [vmem:[#allocation2 + $0x80] sm:$0xff] %vm276_vm1, %v9551_v1  ;;  %v332_v5 = vld [vmem:[%s7922_s8] sm:$0xff]  ;;  %v333_v6 = vld [vmem:[%s7922_s8 + $0x8] sm:$0xff]  ;;  %s7687_s23 = smov 16   ;;  %s7688_s19 = smov 48  }
  0x1c   : > { %296 = vst.msk [vmem:[#allocation2 + $0x90] sm:$0xff] %vm276_vm1, %v9551_v1  ;;  %297 = vst.msk [vmem:[#allocation2 + $0x98] sm:$0xff] %vm276_vm1, %v9551_v1  ;;  %v334_v7 = vld [vmem:[%s7922_s8 + $0x10] sm:$0xff]  ;;  %v335_v8 = vld [vmem:[%s7922_s8 + $0x18] sm:$0xff]  ;;  %s7689_s15 = smov 64   ;;  %s7690_s9 = smov 80  }
  0x1d   : > { %299 = vst.msk [vmem:[#allocation2 + $0xa8] sm:$0xff] %vm276_vm1, %v9551_v1  ;;  %300 = vst.msk [vmem:[#allocation2 + $0xb0] sm:$0xff] %vm276_vm1, %v9551_v1  ;;  %v336_v9 = vld [vmem:[%s7922_s8 + $0x20] sm:$0xff]  ;;  %v337_v10 = vld [vmem:[%s7922_s8 + $0x28] sm:$0xff]  ;;  %s7691_s22 = smov 96   ;;  %s6225_s13 = sshll.u32 %s7755_s28, 4 }
  0x1e   : > { %302 = vst.msk [vmem:[#allocation2 + $0xc0] sm:$0xff] %vm276_vm1, %v9551_v1  ;;  %303 = vst.msk [vmem:[#allocation2 + $0xc8] sm:$0xff] %vm276_vm1, %v9551_v1  ;;  %v338_v11 = vld [vmem:[%s7922_s8 + $0x30] sm:$0xff]  ;;  %v339_v12 = vld [vmem:[%s7922_s8 + $0x38] sm:$0xff]  ;;  %s7693_s28 = smov [#allocation5]  }
  0x1f   : > { %305 = vst.msk [vmem:[#allocation2 + $0xd8] sm:$0xff] %vm276_vm1, %v9551_v1  ;;  %306 = vst.msk [vmem:[#allocation2 + $0xe0] sm:$0xff] %vm276_vm1, %v9551_v1  ;;  %v340_v13 = vld [vmem:[%s7922_s8 + $0x40] sm:$0xff]  ;;  %v341_v14 = vld [vmem:[%s7922_s8 + $0x48] sm:$0xff] }
  0x20   : > { %308 = vst.msk [vmem:[#allocation2 + $0xf0] sm:$0xff] %vm276_vm1, %v9551_v1  ;;  %309 = vst.msk [vmem:[#allocation2 + $0xf8] sm:$0xff] %vm276_vm1, %v9551_v1  ;;  %v342_v15 = vld [vmem:[%s7922_s8 + $0x50] sm:$0xff]  ;;  %v343_v16 = vld [vmem:[%s7922_s8 + $0x58] sm:$0xff] }
  0x21   : > { %311 = vst.msk [vmem:[#allocation2 + $0x108] sm:$0xff] %vm276_vm1, %v9551_v1  ;;  %312 = vst.msk [vmem:[#allocation2 + $0x110] sm:$0xff] %vm276_vm1, %v9551_v1  ;;  %v344_v17 = vld [vmem:[%s7922_s8 + $0x60] sm:$0xff]  ;;  %v345_v18 = vld [vmem:[%s7922_s8 + $0x68] sm:$0xff] }
  0x22   : > { %314 = vst.msk [vmem:[#allocation2 + $0x120] sm:$0xff] %vm276_vm1, %v9551_v1  ;;  %315 = vst.msk [vmem:[#allocation2 + $0x128] sm:$0xff] %vm276_vm1, %v9551_v1  ;;  %v430_v19 = vld [vmem:[#allocation2 + $0x1] sm:$0xff]  ;;  %v346_v21 = vld [vmem:[%s7922_s8 + $0x70] sm:$0xff] }
  0x23   : > { %317 = vst.msk [vmem:[#allocation2 + $0x138] sm:$0xff] %vm276_vm1, %v9551_v1  ;;  %318 = vst.msk [vmem:[#allocation2 + $0x140] sm:$0xff] %vm276_vm1, %v9551_v1  ;;  %6644 = vmatprep.mubr.msk.f32.mxu1 %vm276_vm1, %v430_v19  ;;  %v347_v22 = vld [vmem:[%s7922_s8 + $0x78] sm:$0xff]  ;;  %v348_v23 = vld [vmem:[%s7922_s8 + $0x80] sm:$0xff] }
  0x24   : > { %320 = vst.msk [vmem:[#allocation2 + $0x150] sm:$0xff] %vm276_vm1, %v9551_v1  ;;  %321 = vst.msk [vmem:[#allocation2 + $0x158] sm:$0xff] %vm276_vm1, %v9551_v1  ;;  %v349_v24 = vld [vmem:[%s7922_s8 + $0x88] sm:$0xff]  ;;  %v350_v25 = vld [vmem:[%s7922_s8 + $0x90] sm:$0xff] }
  0x25   : > { %323 = vst.msk [vmem:[#allocation2 + $0x168] sm:$0xff] %vm276_vm1, %v9551_v1  ;;  %324 = vst.msk [vmem:[#allocation2 + $0x170] sm:$0xff] %vm276_vm1, %v9551_v1  ;;  %v351_v26 = vld [vmem:[%s7922_s8 + $0x98] sm:$0xff]  ;;  %v352_v27 = vld [vmem:[%s7922_s8 + $0xa0] sm:$0xff] }
  0x26   : > { %326 = vst.msk [vmem:[#allocation2 + $0x180] sm:$0xff] %vm276_vm1, %v9551_v1  ;;  %327 = vst.msk [vmem:[#allocation2 + $0x188] sm:$0xff] %vm276_vm1, %v9551_v1  ;;  %v353_v28 = vld [vmem:[%s7922_s8 + $0xa8] sm:$0xff]  ;;  %v354_v43 = vld [vmem:[%s7922_s8 + $0xb0] sm:$0xff] }
  0x27   : > { %329 = vst.msk [vmem:[#allocation2 + $0x198] sm:$0xff] %vm276_vm1, %v9551_v1  ;;  %330 = vst.msk [vmem:[#allocation2 + $0x1a0] sm:$0xff] %vm276_vm1, %v9551_v1  ;;  %v355_v44 = vld [vmem:[%s7922_s8 + $0xb8] sm:$0xff]  ;;  %v356_v46 = vld [vmem:[%s7922_s8 + $0xc0] sm:$0xff] }
  0x28   : > { %283 = vst.msk [vmem:[#allocation2 + $0x28] sm:$0x3] %vm279_vm2, %v9551_v1  ;;  %280 = vst.msk [vmem:[#allocation2 + $0x10] sm:$0x3] %vm279_vm2, %v9551_v1  ;;  %v357_v47 = vld [vmem:[%s7922_s8 + $0xc8] sm:$0xff]  ;;  %v358_v54 = vld [vmem:[%s7922_s8 + $0xd0] sm:$0xff] }
  0x29   : > { %286 = vst.msk [vmem:[#allocation2 + $0x40] sm:$0x3] %vm279_vm2, %v9551_v1  ;;  %289 = vst.msk [vmem:[#allocation2 + $0x58] sm:$0x3] %vm279_vm2, %v9551_v1  ;;  %v359_v55 = vld [vmem:[%s7922_s8 + $0xd8] sm:$0xff]  ;;  %v360_v56 = vld [vmem:[%s7922_s8 + $0xe0] sm:$0xff] }
  0x2a   : > { %292 = vst.msk [vmem:[#allocation2 + $0x70] sm:$0x3] %vm279_vm2, %v9551_v1  ;;  %295 = vst.msk [vmem:[#allocation2 + $0x88] sm:$0x3] %vm279_vm2, %v9551_v1  ;;  %v361_v57 = vld [vmem:[%s7922_s8 + $0xe8] sm:$0xff]  ;;  %v362_v62 = vld [vmem:[%s7922_s8 + $0xf0] sm:$0xff] }
  0x2b   : > { %298 = vst.msk [vmem:[#allocation2 + $0xa0] sm:$0x3] %vm279_vm2, %v9551_v1  ;;  %301 = vst.msk [vmem:[#allocation2 + $0xb8] sm:$0x3] %vm279_vm2, %v9551_v1  ;;  %v363_v63 = vld [vmem:[%s7922_s8 + $0xf8] sm:$0xff] }
  0x2c   : > { %304 = vst.msk [vmem:[#allocation2 + $0xd0] sm:$0x3] %vm279_vm2, %v9551_v1  ;;  %307 = vst.msk [vmem:[#allocation2 + $0xe8] sm:$0x3] %vm279_vm2, %v9551_v1 }
  0x2d   : > { %310 = vst.msk [vmem:[#allocation2 + $0x100] sm:$0x3] %vm279_vm2, %v9551_v1  ;;  %313 = vst.msk [vmem:[#allocation2 + $0x118] sm:$0x3] %vm279_vm2, %v9551_v1 }
  0x2e   : > { %316 = vst.msk [vmem:[#allocation2 + $0x130] sm:$0x3] %vm279_vm2, %v9551_v1  ;;  %319 = vst.msk [vmem:[#allocation2 + $0x148] sm:$0x3] %vm279_vm2, %v9551_v1 }
  0x2f   : > { %322 = vst.msk [vmem:[#allocation2 + $0x160] sm:$0x3] %vm279_vm2, %v9551_v1  ;;  %325 = vst.msk [vmem:[#allocation2 + $0x178] sm:$0x3] %vm279_vm2, %v9551_v1  ;;  %v431_v20 = vld [vmem:[#allocation2 + $0x9] sm:$0xff] }
  0x30   : > { %328 = vst.msk [vmem:[#allocation2 + $0x190] sm:$0x3] %vm279_vm2, %v9551_v1  ;;  %331 = vst.msk [vmem:[#allocation2 + $0x1a8] sm:$0x3] %vm279_vm2, %v9551_v1  ;;  %6645 = vmatmul.mubr.msk.f32.vlgmr.msra.gmra.mrb[0].mxu1 %vm276_vm1, %v431_v20 }
  0x31   : > { %365 = vst.msk [vmem:[#allocation2 + $0x19] sm:$0xff] %vm276_vm1, %v332_v5  ;;  %366 = vst.msk [vmem:[#allocation2 + $0x21] sm:$0xff] %vm276_vm1, %v333_v6  ;;  %6693 = vmatpush3.msk.msra.mxu1 %vm560_vm0, %v429_v4 }
  0x32   : > { %367 = vst.msk [vmem:[#allocation2 + $0x31] sm:$0xff] %vm276_vm1, %v334_v7  ;;  %368 = vst.msk [vmem:[#allocation2 + $0x39] sm:$0xff] %vm276_vm1, %v335_v8 }
  0x33   : > { %369 = vst.msk [vmem:[#allocation2 + $0x49] sm:$0xff] %vm276_vm1, %v336_v9  ;;  %370 = vst.msk [vmem:[#allocation2 + $0x51] sm:$0xff] %vm276_vm1, %v337_v10 }
  0x34   : > { %371 = vst.msk [vmem:[#allocation2 + $0x61] sm:$0xff] %vm276_vm1, %v338_v11  ;;  %372 = vst.msk [vmem:[#allocation2 + $0x69] sm:$0xff] %vm276_vm1, %v339_v12  ;;  %v8135_v12 = vld [vmem:[%s9544_s1 + $0x8] sm:$0x7] }
  0x35   : > { %373 = vst.msk [vmem:[#allocation2 + $0x79] sm:$0xff] %vm276_vm1, %v340_v13  ;;  %374 = vst.msk [vmem:[#allocation2 + $0x81] sm:$0xff] %vm276_vm1, %v341_v14  ;;  %6742 = vmatprep.subr.msk.mxu1 %vm560_vm0, %v8135_v12 }
  0x36   : > { %375 = vst.msk [vmem:[#allocation2 + $0x91] sm:$0xff] %vm276_vm1, %v342_v15  ;;  %376 = vst.msk [vmem:[#allocation2 + $0x99] sm:$0xff] %vm276_vm1, %v343_v16 }
  0x37   : > { %377 = vst.msk [vmem:[#allocation2 + $0xa9] sm:$0xff] %vm276_vm1, %v344_v17  ;;  %378 = vst.msk [vmem:[#allocation2 + $0xb1] sm:$0xff] %vm276_vm1, %v345_v18 }
  0x38   : > { %379 = vst.msk [vmem:[#allocation2 + $0xc1] sm:$0xff] %vm276_vm1, %v346_v21  ;;  %380 = vst.msk [vmem:[#allocation2 + $0xc9] sm:$0xff] %vm276_vm1, %v347_v22  ;;  %v7968_v29 = vld [vmem:[#allocation2 + $0x18] sm:$0xff]  ;;  %v7970_v30 = vld [vmem:[#allocation2 + $0x20] sm:$0xff] }
  0x39   : > { %381 = vst.msk [vmem:[#allocation2 + $0xd9] sm:$0xff] %vm276_vm1, %v348_v23  ;;  %382 = vst.msk [vmem:[#allocation2 + $0xe1] sm:$0xff] %vm276_vm1, %v349_v24  ;;  %v7972_v31 = vld [vmem:[#allocation2 + $0x30] sm:$0xff]  ;;  %6794 = vmatprep.mubr.msk.f32.mxu0 %vm276_vm1, %v7968_v29  ;;  %v7990_v33 = vld [vmem:[#allocation2 + $0x38] sm:$0xff] }
  0x3a   : > { %383 = vst.msk [vmem:[#allocation2 + $0xf1] sm:$0xff] %vm276_vm1, %v350_v25  ;;  %384 = vst.msk [vmem:[#allocation2 + $0xf9] sm:$0xff] %vm276_vm1, %v351_v26  ;;  %6795 = vmatmul.mubr.msk.f32.vlgmr.msra.gmra.mrb[0].mxu0 %vm276_vm1, %v7970_v30  ;;  %v7992_v34 = vld [vmem:[#allocation2 + $0x48] sm:$0xff]  ;;  %v7994_v35 = vld [vmem:[#allocation2 + $0x19] sm:$0xff] }
  0x3b   : > { %385 = vst.msk [vmem:[#allocation2 + $0x109] sm:$0xff] %vm276_vm1, %v352_v27  ;;  %386 = vst.msk [vmem:[#allocation2 + $0x111] sm:$0xff] %vm276_vm1, %v353_v28  ;;  %6843 = vmatpush3.msk.msra.mxu0 %vm560_vm0, %v7865_v2  ;;  %6797 = vmatprep.mubr.msk.f32.mxu0 %vm276_vm1, %v7972_v31  ;;  %v8000_v36 = vld [vmem:[#allocation2 + $0x21] sm:$0xff]  ;;  %v8006_v37 = vld [vmem:[#allocation2 + $0x31] sm:$0xff] }
  0x3c   : > { %6892 = vmatprep.subr.msk.mxu0 %vm560_vm0, %v7982_v32  ;;  %6647 = vmatprep.mubr.msk.f32.mxu1 %vm276_vm1, %v7994_v35  ;;  %v8010_v38 = vld [vmem:[#allocation2 + $0x50] sm:$0xff]  ;;  %v8014_v39 = vld [vmem:[#allocation2 + $0x39] sm:$0xff]  ;;  %v8022_v42 = vld [vmem:[#allocation2 + $0x68] sm:$0xff]  ;;  %387 = vst.msk [vmem:[#allocation2 + $0x121] sm:$0xff] %vm276_vm1, %v354_v43 }
  0x3d   : > { %6648 = vmatmul.mubr.msk.f32.gmra.mrb[2].mxu1 %vm276_vm1, %v8000_v36  ;;  %v8016_v40 = vld [vmem:[#allocation2 + $0x60] sm:$0xff]  ;;  %v8018_v41 = vld [vmem:[#allocation2 + $0x49] sm:$0xff]  ;;  %v8032_v45 = vld [vmem:[#allocation2 + $0x51] sm:$0xff]  ;;  %388 = vst.msk [vmem:[#allocation2 + $0x129] sm:$0xff] %vm276_vm1, %v355_v44 }
  0x3e   : > { %6798 = vmatmul.mubr.msk.f32.gmra.mrb[2].mxu0 %vm276_vm1, %v7990_v33  ;;  %6650 = vmatprep.mubr.msk.f32.mxu1 %vm276_vm1, %v8006_v37  ;;  %v8038_v48 = vld [vmem:[#allocation2 + $0x78] sm:$0xff]  ;;  %v8040_v49 = vld [vmem:[#allocation2 + $0x61] sm:$0xff]  ;;  %389 = vst.msk [vmem:[#allocation2 + $0x139] sm:$0xff] %vm276_vm1, %v356_v46  ;;  %390 = vst.msk [vmem:[#allocation2 + $0x141] sm:$0xff] %vm276_vm1, %v357_v47 }
  0x3f   : > { %6800 = vmatprep.mubr.msk.f32.mxu0 %vm276_vm1, %v7992_v34  ;;  %v8046_v50 = vld [vmem:[#allocation2 + $0x80] sm:$0xff]  ;;  %v8052_v51 = vld [vmem:[#allocation2 + $0x90] sm:$0xff]  ;;  %391 = vst.msk [vmem:[#allocation2 + $0x151] sm:$0xff] %vm276_vm1, %v358_v54  ;;  %392 = vst.msk [vmem:[#allocation2 + $0x159] sm:$0xff] %vm276_vm1, %v359_v55 }
  0x40   : > { %v8056_v52 = vld [vmem:[#allocation2 + $0x69] sm:$0xff]  ;;  %v8058_v53 = vld [vmem:[#allocation2 + $0x79] sm:$0xff]  ;;  %393 = vst.msk [vmem:[#allocation2 + $0x169] sm:$0xff] %vm276_vm1, %v360_v56  ;;  %394 = vst.msk [vmem:[#allocation2 + $0x171] sm:$0xff] %vm276_vm1, %v361_v57 }
  0x41   : > { %6651 = vmatmul.mubr.msk.f32.gmra.mrb[4].mxu1 %vm276_vm1, %v8014_v39  ;;  %v8074_v58 = vld [vmem:[#allocation2 + $0x98] sm:$0xff]  ;;  %v8078_v59 = vld [vmem:[#allocation2 + $0x81] sm:$0xff]  ;;  %395 = vst.msk [vmem:[#allocation2 + $0x181] sm:$0xff] %vm276_vm1, %v362_v62  ;;  %396 = vst.msk [vmem:[#allocation2 + $0x189] sm:$0xff] %vm276_vm1, %v363_v63 }
  0x42   : > { %6801 = vmatmul.mubr.msk.f32.gmra.mrb[4].mxu0 %vm276_vm1, %v8010_v38  ;;  %6653 = vmatprep.mubr.msk.f32.mxu1 %vm276_vm1, %v8018_v41  ;;  %v8080_v60 = vld [vmem:[#allocation2 + $0xa8] sm:$0xff]  ;;  %v8082_v61 = vld [vmem:[#allocation2 + $0x91] sm:$0xff]  ;;  %v8098_v3 = vld [vmem:[#allocation2 + $0x99] sm:$0xff] }
  0x43   : > { %6803 = vmatprep.mubr.msk.f32.mxu0 %vm276_vm1, %v8016_v40  ;;  %v8094_v2 = vld [vmem:[#allocation2 + $0xb0] sm:$0xff]  ;;  %v8100_v4 = vld [vmem:[#allocation2 + $0xc0] sm:$0xff]  ;;  %v8110_v6 = vld [vmem:[#allocation2 + $0xc8] sm:$0xff] }
  0x44   : > { %v8102_v5 = vld [vmem:[#allocation2 + $0xa9] sm:$0xff]  ;;  %v8114_v7 = vld [vmem:[#allocation2 + $0xb1] sm:$0xff]  ;;  %v8118_v9 = vld [vmem:[#allocation2 + $0xc1] sm:$0xff] }
  0x45   : > { %6654 = vmatmul.mubr.msk.f32.gmra.mrb[6].mxu1 %vm276_vm1, %v8032_v45  ;;  %v8116_v8 = vld [vmem:[#allocation2 + $0xd8] sm:$0xff]  ;;  %v8126_v10 = vld [vmem:[#allocation2 + $0xe0] sm:$0xff]  ;;  %v8130_v11 = vld [vmem:[#allocation2 + $0xc9] sm:$0xff] }
  0x46   : > { %6804 = vmatmul.mubr.msk.f32.gmra.mrb[6].mxu0 %vm276_vm1, %v8022_v42  ;;  %6656 = vmatprep.mubr.msk.f32.mxu1 %vm276_vm1, %v8040_v49  ;;  %v8137_v13 = vld [vmem:[#allocation2 + $0xf0] sm:$0xff]  ;;  %v8139_v14 = vld [vmem:[#allocation2 + $0xd9] sm:$0xff]  ;;  %v8153_v16 = vld [vmem:[#allocation2 + $0xe1] sm:$0xff] }
  0x47   : > { %6806 = vmatprep.mubr.msk.f32.mxu0 %vm276_vm1, %v8038_v48  ;;  %v8149_v15 = vld [vmem:[#allocation2 + $0xf8] sm:$0xff]  ;;  %v8155_v17 = vld [vmem:[#allocation2 + $0x108] sm:$0xff]  ;;  %v8165_v19 = vld [vmem:[#allocation2 + $0x110] sm:$0xff] }
  0x48   : > { %v8157_v18 = vld [vmem:[#allocation2 + $0xf1] sm:$0xff]  ;;  %v8169_v20 = vld [vmem:[#allocation2 + $0xf9] sm:$0xff]  ;;  %v8173_v22 = vld [vmem:[#allocation2 + $0x109] sm:$0xff] }
  0x49   : > { %6657 = vmatmul.mubr.msk.f32.gmra.mrb[8].mxu1 %vm276_vm1, %v8056_v52  ;;  %v8171_v21 = vld [vmem:[#allocation2 + $0x120] sm:$0xff]  ;;  %v8181_v23 = vld [vmem:[#allocation2 + $0x128] sm:$0xff]  ;;  %v8185_v24 = vld [vmem:[#allocation2 + $0x111] sm:$0xff] }
  0x4a   : > { %6807 = vmatmul.mubr.msk.f32.gmra.mrb[8].mxu0 %vm276_vm1, %v8046_v50  ;;  %6659 = vmatprep.mubr.msk.f32.mxu1 %vm276_vm1, %v8058_v53  ;;  %v8187_v25 = vld [vmem:[#allocation2 + $0x138] sm:$0xff]  ;;  %v8189_v26 = vld [vmem:[#allocation2 + $0x121] sm:$0xff]  ;;  %v8201_v28 = vld [vmem:[#allocation2 + $0x129] sm:$0xff] }
  0x4b   : > { %6809 = vmatprep.mubr.msk.f32.mxu0 %vm276_vm1, %v8052_v51  ;;  %v8197_v27 = vld [vmem:[#allocation2 + $0x140] sm:$0xff]  ;;  %9583 = vst [vmem:[#allocation8_spill] sm:$0xff] %v8201_v28  ;;  %v8215_v46 = vld [vmem:[#allocation2 + $0x151] sm:$0xff]  ;;  %v8234_v54 = vld [vmem:[#allocation2 + $0x169] sm:$0xff] }
  0x4c   : > { %v8203_v43 = vld [vmem:[#allocation2 + $0x139] sm:$0xff]  ;;  %v8213_v44 = vld [vmem:[#allocation2 + $0x141] sm:$0xff]  ;;  %9586 = vst [vmem:[#allocation11_spill] sm:$0xff] %v8215_v46  ;;  %9588 = vst [vmem:[#allocation13_spill] sm:$0xff] %v8234_v54 }
  0x4d   : > { %6660 = vmatmul.mubr.msk.f32.gmra.mrb[10].mxu1 %vm276_vm1, %v8078_v59  ;;  %9584 = vst [vmem:[#allocation9_spill] sm:$0xff] %v8203_v43  ;;  %9585 = vst [vmem:[#allocation10_spill] sm:$0xff] %v8213_v44  ;;  %v8220_v47 = vld [vmem:[%s9544_s1 + $0x18] sm:$0x7]  ;;  %v398_v55 = vld [vmem:[#allocation2 + $0x8] sm:$0xff] }
  0x4e   : > { %6810 = vmatmul.mubr.msk.f32.gmra.mrb[10].mxu0 %vm276_vm1, %v8074_v58  ;;  %6662 = vmatprep.mubr.msk.f32.mxu1 %vm276_vm1, %v8082_v61  ;;  %v2283_v56 = vld [vmem:[#allocation2 + $0x1a] sm:$0xff]  ;;  %v2284_v57 = vld [vmem:[#allocation2 + $0x22] sm:$0xff]  ;;  %v8365_v62 = vld [vmem:[#allocation2 + $0x32] sm:$0xff] }
  0x4f   : > { %6812 = vmatprep.mubr.msk.f32.mxu0 %vm276_vm1, %v8080_v60  ;;  %v8367_v63 = vld [vmem:[#allocation2 + $0x150] sm:$0xff] }
  0x50   : > { %v8385_v1 = vld [vmem:[#allocation2 + $0x4a] sm:$0xff] }
  0x51   : > { %6663 = vmatmul.mubr.msk.f32.gmra.mrb[12].mxu1 %vm276_vm1, %v8098_v3  ;;  %9593 = vst [vmem:[#allocation18_spill] sm:$0xff] %v8385_v1 }
  0x52   : > { %6813 = vmatmul.mubr.msk.f32.gmra.mrb[12].mxu0 %vm276_vm1, %v8094_v2  ;;  %6665 = vmatprep.mubr.msk.f32.mxu1 %vm276_vm1, %v8102_v5 }
  0x53   : > { %6815 = vmatprep.mubr.msk.f32.mxu0 %vm276_vm1, %v8100_v4 }
  0x55   : > { %6666 = vmatmul.mubr.msk.f32.gmra.mrb[14].mxu1 %vm276_vm1, %v8114_v7 }
  0x56   : > { %6816 = vmatmul.mubr.msk.f32.gmra.mrb[14].mxu0 %vm276_vm1, %v8110_v6  ;;  %6668 = vmatprep.mubr.msk.f32.mxu1 %vm276_vm1, %v8118_v9 }
  0x57   : > { %6818 = vmatprep.mubr.msk.f32.mxu0 %vm276_vm1, %v8116_v8 }
  0x59   : > { %6669 = vmatmul.mubr.msk.f32.gmra.mrb[16].mxu1 %vm276_vm1, %v8130_v11 }
  0x5a   : > { %6819 = vmatmul.mubr.msk.f32.gmra.mrb[16].mxu0 %vm276_vm1, %v8126_v10  ;;  %6671 = vmatprep.mubr.msk.f32.mxu1 %vm276_vm1, %v8139_v14 }
  0x5b   : > { %6821 = vmatprep.mubr.msk.f32.mxu0 %vm276_vm1, %v8137_v13 }
  0x5d   : > { %6672 = vmatmul.mubr.msk.f32.gmra.mrb[18].mxu1 %vm276_vm1, %v8153_v16 }
  0x5e   : > { %6822 = vmatmul.mubr.msk.f32.gmra.mrb[18].mxu0 %vm276_vm1, %v8149_v15  ;;  %6674 = vmatprep.mubr.msk.f32.mxu1 %vm276_vm1, %v8157_v18 }
  0x5f   : > { %6824 = vmatprep.mubr.msk.f32.mxu0 %vm276_vm1, %v8155_v17 }
  0x61   : > { %6675 = vmatmul.mubr.msk.f32.gmra.mrb[20].mxu1 %vm276_vm1, %v8169_v20 }
  0x62   : > { %6825 = vmatmul.mubr.msk.f32.gmra.mrb[20].mxu0 %vm276_vm1, %v8165_v19  ;;  %6677 = vmatprep.mubr.msk.f32.mxu1 %vm276_vm1, %v8173_v22 }
  0x63   : > { %6827 = vmatprep.mubr.msk.f32.mxu0 %vm276_vm1, %v8171_v21 }
  0x65   : > { %6678 = vmatmul.mubr.msk.f32.gmra.mrb[22].mxu1 %vm276_vm1, %v8185_v24 }
  0x66   : > { %6828 = vmatmul.mubr.msk.f32.gmra.mrb[22].mxu0 %vm276_vm1, %v8181_v23  ;;  %6680 = vmatprep.mubr.msk.f32.mxu1 %vm276_vm1, %v8189_v26 }
  0x67   : > { %6830 = vmatprep.mubr.msk.f32.mxu0 %vm276_vm1, %v8187_v25 }
  0x69   : > { %6681 = vmatmul.mubr.msk.f32.gmra.mrb[24].mxu1 %vm276_vm1, %v8201_v28 }
  0x6a   : > { %6831 = vmatmul.mubr.msk.f32.gmra.mrb[24].mxu0 %vm276_vm1, %v8197_v27  ;;  %6683 = vmatprep.mubr.msk.f32.mxu1 %vm276_vm1, %v8203_v43 }
  0x6b   : > { %6844 = vmatprep.mubr.msk.f32.mxu0 %vm276_vm1, %v7994_v35  ;;  %v8230_v35 = vld [vmem:[#allocation2 + $0x159] sm:$0xff] }
  0x6c   : > { %9587 = vst [vmem:[#allocation12_spill] sm:$0xff] %v8230_v35 }
  0x6d   : > { %6684 = vmatmul.mubr.msk.f32.gmra.mrb[26].mxu1 %vm276_vm1, %v8213_v44 }
  0x6e   : > { %6845 = vmatmul.mubr.msk.f32.vlgmr.msra.gmra.mrb[0].mxu0 %vm276_vm1, %v8000_v36  ;;  %6686 = vmatprep.mubr.msk.f32.mxu1 %vm276_vm1, %v8215_v46  ;;  %v397_v36 = vld [vmem:[#allocation2] sm:$0xff] }
  0x6f   : > { %6893 = vmatpush3.msk.msra.mxu0 %vm560_vm0, %v7982_v32  ;;  %6847 = vmatprep.mubr.msk.f32.mxu0 %vm276_vm1, %v8006_v37  ;;  %v8246_v32 = vld [vmem:[#allocation2 + $0x171] sm:$0xff] }
  0x70   : > { %6942 = vmatprep.subr.msk.mxu0 %vm560_vm0, %v8220_v47  ;;  %9589 = vst [vmem:[#allocation14_spill] sm:$0xff] %v8246_v32 }
  0x71   : > { %6687 = vmatmul.mubr.msk.f32.gmra.mrb[28].mxu1 %vm276_vm1, %v8230_v35 }
  0x72   : > { %6848 = vmatmul.mubr.msk.f32.gmra.mrb[2].mxu0 %vm276_vm1, %v8014_v39  ;;  %6689 = vmatprep.mubr.msk.f32.mxu1 %vm276_vm1, %v8234_v54 }
  0x73   : > { %6850 = vmatprep.mubr.msk.f32.mxu0 %vm276_vm1, %v8018_v41 }
  0x75   : > { %6690 = vmatmul.mubr.msk.f32.gmra.mrb[30].mxu1 %vm276_vm1, %v8246_v32 }
  0x76   : > { %6851 = vmatmul.mubr.msk.f32.gmra.mrb[4].mxu0 %vm276_vm1, %v8032_v45  ;;  %6694 = vmatprep.mubr.msk.f32.mxu1 %vm276_vm1, %v397_v36  ;;  %v8381_v36 = vld [vmem:[#allocation2 + $0x3a] sm:$0xff] }
  0x77   : > { %6853 = vmatprep.mubr.msk.f32.mxu0 %vm276_vm1, %v8040_v49  ;;  %9592 = vst [vmem:[#allocation17_spill] sm:$0xff] %v8381_v36 }
  0x79   : > { %6695 = vmatmul.mubr.msk.f32.vlgmr.msra.gmra.mrb[0].mxu1 %vm276_vm1, %v398_v55  ;;  %v8383_v55 = vld [vmem:[#allocation2 + $0x158] sm:$0xff] }
  0x7a   : > { %6854 = vmatmul.mubr.msk.f32.gmra.mrb[6].mxu0 %vm276_vm1, %v8056_v52  ;;  %6697 = vmatprep.mubr.msk.f32.mxu1 %vm276_vm1, %v7968_v29  ;;  %v8346_v29 = vld [vmem:[#allocation2 + $0x181] sm:$0xff] }
  0x7b   : > { %6856 = vmatprep.mubr.msk.f32.mxu0 %vm276_vm1, %v8058_v53  ;;  %6743 = vmatpush3.msk.msra.mxu1 %vm560_vm0, %v8135_v12  ;;  %9590 = vst [vmem:[#allocation15_spill] sm:$0xff] %v8346_v29  ;;  %v8372_v12 = vld [vmem:[%s9544_s1 + $0x1c] sm:$0x7] }
  0x7c   : > { %7250 = vmatprep.subr.msk.mxu1 %vm560_vm0, %v7785_v0 }
  0x7d   : > { %6698 = vmatmul.mubr.msk.f32.gmra.mrb[2].mxu1 %vm276_vm1, %v7970_v30  ;;  %v8354_v30 = vld [vmem:[#allocation2 + $0x189] sm:$0xff] }
  0x7e   : > { %6857 = vmatmul.mubr.msk.f32.gmra.mrb[8].mxu0 %vm276_vm1, %v8078_v59  ;;  %6700 = vmatprep.mubr.msk.f32.mxu1 %vm276_vm1, %v7972_v31  ;;  %9591 = vst [vmem:[#allocation16_spill] sm:$0xff] %v8354_v30 }
  0x7f   : > { %6859 = vmatprep.mubr.msk.f32.mxu0 %vm276_vm1, %v8082_v61 }
  0x81   : > { %6701 = vmatmul.mubr.msk.f32.gmra.mrb[4].mxu1 %vm276_vm1, %v7990_v33 }
  0x82   : > { %6860 = vmatmul.mubr.msk.f32.gmra.mrb[10].mxu0 %vm276_vm1, %v8098_v3  ;;  %6703 = vmatprep.mubr.msk.f32.mxu1 %vm276_vm1, %v7992_v34 }
  0x83   : > { %6862 = vmatprep.mubr.msk.f32.mxu0 %vm276_vm1, %v8102_v5 }
  0x85   : > { %6704 = vmatmul.mubr.msk.f32.gmra.mrb[6].mxu1 %vm276_vm1, %v8010_v38 }
  0x86   : > { %6863 = vmatmul.mubr.msk.f32.gmra.mrb[12].mxu0 %vm276_vm1, %v8114_v7  ;;  %6706 = vmatprep.mubr.msk.f32.mxu1 %vm276_vm1, %v8016_v40 }
  0x87   : > { %6865 = vmatprep.mubr.msk.f32.mxu0 %vm276_vm1, %v8118_v9 }
  0x89   : > { %6707 = vmatmul.mubr.msk.f32.gmra.mrb[8].mxu1 %vm276_vm1, %v8022_v42 }
  0x8a   : > { %6866 = vmatmul.mubr.msk.f32.gmra.mrb[14].mxu0 %vm276_vm1, %v8130_v11  ;;  %6709 = vmatprep.mubr.msk.f32.mxu1 %vm276_vm1, %v8038_v48 }
  0x8b   : > { %6868 = vmatprep.mubr.msk.f32.mxu0 %vm276_vm1, %v8139_v14 }
  0x8d   : > { %6710 = vmatmul.mubr.msk.f32.gmra.mrb[10].mxu1 %vm276_vm1, %v8046_v50 }
  0x8e   : > { %6869 = vmatmul.mubr.msk.f32.gmra.mrb[16].mxu0 %vm276_vm1, %v8153_v16  ;;  %6712 = vmatprep.mubr.msk.f32.mxu1 %vm276_vm1, %v8052_v51 }
  0x8f   : > { %6871 = vmatprep.mubr.msk.f32.mxu0 %vm276_vm1, %v8157_v18 }
  0x91   : > { %6713 = vmatmul.mubr.msk.f32.gmra.mrb[12].mxu1 %vm276_vm1, %v8074_v58 }
  0x92   : > { %6872 = vmatmul.mubr.msk.f32.gmra.mrb[18].mxu0 %vm276_vm1, %v8169_v20  ;;  %6715 = vmatprep.mubr.msk.f32.mxu1 %vm276_vm1, %v8080_v60 }
  0x93   : > { %6874 = vmatprep.mubr.msk.f32.mxu0 %vm276_vm1, %v8173_v22 }
  0x95   : > { %6716 = vmatmul.mubr.msk.f32.gmra.mrb[14].mxu1 %vm276_vm1, %v8094_v2 }
  0x96   : > { %6875 = vmatmul.mubr.msk.f32.gmra.mrb[20].mxu0 %vm276_vm1, %v8185_v24  ;;  %6718 = vmatprep.mubr.msk.f32.mxu1 %vm276_vm1, %v8100_v4 }
  0x97   : > { %6877 = vmatprep.mubr.msk.f32.mxu0 %vm276_vm1, %v8189_v26 }
  0x99   : > { %6719 = vmatmul.mubr.msk.f32.gmra.mrb[16].mxu1 %vm276_vm1, %v8110_v6 }
  0x9a   : > { %6878 = vmatmul.mubr.msk.f32.gmra.mrb[22].mxu0 %vm276_vm1, %v8201_v28  ;;  %6721 = vmatprep.mubr.msk.f32.mxu1 %vm276_vm1, %v8116_v8  ;;  %v8426_v28 = vld [vmem:[#allocation2 + $0x92] sm:$0xff] }
  0x9b   : > { %6880 = vmatprep.mubr.msk.f32.mxu0 %vm276_vm1, %v8203_v43  ;;  %v8423_v43 = vld [vmem:[#allocation2 + $0x82] sm:$0xff]  ;;  %9599 = vst [vmem:[#allocation24_spill] sm:$0xff] %v8426_v28 }
  0x9c   : > { %9598 = vst [vmem:[#allocation23_spill] sm:$0xff] %v8423_v43 }
  0x9d   : > { %6722 = vmatmul.mubr.msk.f32.gmra.mrb[18].mxu1 %vm276_vm1, %v8126_v10 }
  0x9e   : > { %6881 = vmatmul.mubr.msk.f32.gmra.mrb[24].mxu0 %vm276_vm1, %v8213_v44  ;;  %6724 = vmatprep.mubr.msk.f32.mxu1 %vm276_vm1, %v8137_v13  ;;  %v8416_v44 = vld [vmem:[#allocation2 + $0x7a] sm:$0xff] }
  0x9f   : > { %6883 = vmatprep.mubr.msk.f32.mxu0 %vm276_vm1, %v8215_v46  ;;  %v1114_v46 = vld [vmem:[#allocation2 + $0xa] sm:$0xff]  ;;  %9597 = vst [vmem:[#allocation22_spill] sm:$0xff] %v8416_v44 }
  0xa1   : > { %6725 = vmatmul.mubr.msk.f32.gmra.mrb[20].mxu1 %vm276_vm1, %v8149_v15 }
  0xa2   : > { %6884 = vmatmul.mubr.msk.f32.gmra.mrb[26].mxu0 %vm276_vm1, %v8230_v35  ;;  %6727 = vmatprep.mubr.msk.f32.mxu1 %vm276_vm1, %v8155_v17  ;;  %v8413_v35 = vld [vmem:[#allocation2 + $0x6a] sm:$0xff] }
  0xa3   : > { %6886 = vmatprep.mubr.msk.f32.mxu0 %vm276_vm1, %v8234_v54  ;;  %v1113_v54 = vld [vmem:[#allocation2 + $0x2] sm:$0xff]  ;;  %9596 = vst [vmem:[#allocation21_spill] sm:$0xff] %v8413_v35 }
  0xa5   : > { %6728 = vmatmul.mubr.msk.f32.gmra.mrb[22].mxu1 %vm276_vm1, %v8165_v19 }
  0xa6   : > { %6887 = vmatmul.mubr.msk.f32.gmra.mrb[28].mxu0 %vm276_vm1, %v8246_v32  ;;  %6730 = vmatprep.mubr.msk.f32.mxu1 %vm276_vm1, %v8171_v21  ;;  %v8405_v32 = vld [vmem:[#allocation2 + $0x62] sm:$0xff] }
  0xa7   : > { %6889 = vmatprep.mubr.msk.f32.mxu0 %vm276_vm1, %v8346_v29  ;;  %v8403_v29 = vld [vmem:[#allocation2 + $0x170] sm:$0xff]  ;;  %9595 = vst [vmem:[#allocation20_spill] sm:$0xff] %v8405_v32 }
  0xa9   : > { %6731 = vmatmul.mubr.msk.f32.gmra.mrb[24].mxu1 %vm276_vm1, %v8181_v23 }
  0xaa   : > { %6890 = vmatmul.mubr.msk.f32.gmra.mrb[30].mxu0 %vm276_vm1, %v8354_v30  ;;  %6733 = vmatprep.mubr.msk.f32.mxu1 %vm276_vm1, %v8187_v25  ;;  %v8389_v30 = vld [vmem:[#allocation2 + $0x168] sm:$0xff] }
  0xab   : > { %6894 = vmatprep.mubr.msk.f32.mxu0 %vm276_vm1, %v2283_v56 }
  0xad   : > { %6734 = vmatmul.mubr.msk.f32.gmra.mrb[26].mxu1 %vm276_vm1, %v8197_v27 }
  0xae   : > { %6895 = vmatmul.mubr.msk.f32.vlgmr.msra.gmra.mrb[0].mxu0 %vm276_vm1, %v2284_v57  ;;  %6736 = vmatprep.mubr.msk.f32.mxu1 %vm276_vm1, %v8367_v63 }
  0xaf   : > { %6943 = vmatpush3.msk.msra.mxu0 %vm560_vm0, %v8220_v47  ;;  %6897 = vmatprep.mubr.msk.f32.mxu0 %vm276_vm1, %v8365_v62  ;;  %v8399_v47 = vld [vmem:[#allocation2 + $0x52] sm:$0xff] }
  0xb0   : > { %6992 = vmatprep.subr.msk.mxu0 %vm560_vm0, %v8372_v12  ;;  %9594 = vst [vmem:[#allocation19_spill] sm:$0xff] %v8399_v47 }
  0xb1   : > { %6737 = vmatmul.mubr.msk.f32.gmra.mrb[28].mxu1 %vm276_vm1, %v8383_v55 }
  0xb2   : > { %6898 = vmatmul.mubr.msk.f32.gmra.mrb[2].mxu0 %vm276_vm1, %v8381_v36  ;;  %6739 = vmatprep.mubr.msk.f32.mxu1 %vm276_vm1, %v8389_v30 }
  0xb3   : > { %6900 = vmatprep.mubr.msk.f32.mxu0 %vm276_vm1, %v8385_v1 }
  0xb5   : > { %6740 = vmatmul.mubr.msk.f32.gmra.mrb[30].mxu1 %vm276_vm1, %v8403_v29 }
  0xb6   : > { %6901 = vmatmul.mubr.msk.f32.gmra.mrb[4].mxu0 %vm276_vm1, %v8399_v47  ;;  %6744 = vmatprep.mubr.msk.f32.mxu1 %vm276_vm1, %v1113_v54  ;;  %v8439_v54 = vld [vmem:[#allocation2 + $0xaa] sm:$0xff] }
  0xb7   : > { %6903 = vmatprep.mubr.msk.f32.mxu0 %vm276_vm1, %v8405_v32  ;;  %9601 = vst [vmem:[#allocation26_spill] sm:$0xff] %v8439_v54 }
  0xb9   : > { %6745 = vmatmul.mubr.msk.f32.vlgmr.msra.gmra.mrb[0].mxu1 %vm276_vm1, %v1114_v46  ;;  %v8435_v46 = vld [vmem:[#allocation2 + $0x9a] sm:$0xff] }
  0xba   : > { %6904 = vmatmul.mubr.msk.f32.gmra.mrb[6].mxu0 %vm276_vm1, %v8413_v35  ;;  %6747 = vmatprep.mubr.msk.f32.mxu1 %vm276_vm1, %v2283_v56  ;;  %9600 = vst [vmem:[#allocation25_spill] sm:$0xff] %v8435_v46  ;;  %v8451_v56 = vld [vmem:[#allocation2 + $0xc2] sm:$0xff] }
  0xbb   : > { %6906 = vmatprep.mubr.msk.f32.mxu0 %vm276_vm1, %v8416_v44  ;;  %7251 = vmatpush3.msk.msra.mxu1 %vm560_vm0, %v7785_v0  ;;  %v8447_v0 = vld [vmem:[#allocation2 + $0xb2] sm:$0xff]  ;;  %9603 = vst [vmem:[#allocation28_spill] sm:$0xff] %v8451_v56 }
  0xbc   : > { %9602 = vst [vmem:[#allocation27_spill] sm:$0xff] %v8447_v0 }
  0xbd   : > { %6748 = vmatmul.mubr.msk.f32.gmra.mrb[2].mxu1 %vm276_vm1, %v2284_v57  ;;  %v8459_v57 = vld [vmem:[#allocation2 + $0xca] sm:$0xff] }
  0xbe   : > { %6907 = vmatmul.mubr.msk.f32.gmra.mrb[8].mxu0 %vm276_vm1, %v8423_v43  ;;  %6750 = vmatprep.mubr.msk.f32.mxu1 %vm276_vm1, %v8365_v62  ;;  %9604 = vst [vmem:[#allocation29_spill] sm:$0xff] %v8459_v57 }
  0xbf   : > { %6909 = vmatprep.mubr.msk.f32.mxu0 %vm276_vm1, %v8426_v28 }
  0xc1   : > { %6751 = vmatmul.mubr.msk.f32.gmra.mrb[4].mxu1 %vm276_vm1, %v8381_v36  ;;  %v8463_v36 = vld [vmem:[#allocation2 + $0xda] sm:$0xff] }
  0xc2   : > { %6910 = vmatmul.mubr.msk.f32.gmra.mrb[10].mxu0 %vm276_vm1, %v8435_v46  ;;  %6753 = vmatprep.mubr.msk.f32.mxu1 %vm276_vm1, %v8385_v1  ;;  %9605 = vst [vmem:[#allocation30_spill] sm:$0xff] %v8463_v36  ;;  %v8475_v1 = vld [vmem:[#allocation2 + $0xf2] sm:$0xff] }
  0xc3   : > { %6912 = vmatprep.mubr.msk.f32.mxu0 %vm276_vm1, %v8439_v54 }
  0xc5   : > { %6754 = vmatmul.mubr.msk.f32.gmra.mrb[6].mxu1 %vm276_vm1, %v8399_v47  ;;  %v8471_v47 = vld [vmem:[#allocation2 + $0xe2] sm:$0xff] }
  0xc6   : > { %6913 = vmatmul.mubr.msk.f32.gmra.mrb[12].mxu0 %vm276_vm1, %v8447_v0  ;;  %6756 = vmatprep.mubr.msk.f32.mxu1 %vm276_vm1, %v8405_v32  ;;  %9606 = vst [vmem:[#allocation31_spill] sm:$0xff] %v8471_v47  ;;  %v8487_v32 = vld [vmem:[#allocation2 + $0x10a] sm:$0xff] }
  0xc7   : > { %6915 = vmatprep.mubr.msk.f32.mxu0 %vm276_vm1, %v8451_v56 }
  0xc9   : > { %6757 = vmatmul.mubr.msk.f32.gmra.mrb[8].mxu1 %vm276_vm1, %v8413_v35  ;;  %v8483_v35 = vld [vmem:[#allocation2 + $0xfa] sm:$0xff] }
  0xca   : > { %6916 = vmatmul.mubr.msk.f32.gmra.mrb[14].mxu0 %vm276_vm1, %v8459_v57  ;;  %6759 = vmatprep.mubr.msk.f32.mxu1 %vm276_vm1, %v8416_v44  ;;  %9607 = vst [vmem:[#allocation32_spill] sm:$0xff] %v8483_v35  ;;  %v8499_v44 = vld [vmem:[#allocation2 + $0x122] sm:$0xff] }
  0xcb   : > { %6918 = vmatprep.mubr.msk.f32.mxu0 %vm276_vm1, %v8463_v36 }
  0xcd   : > { %6760 = vmatmul.mubr.msk.f32.gmra.mrb[10].mxu1 %vm276_vm1, %v8423_v43  ;;  %v8495_v43 = vld [vmem:[#allocation2 + $0x112] sm:$0xff] }
  0xce   : > { %6919 = vmatmul.mubr.msk.f32.gmra.mrb[16].mxu0 %vm276_vm1, %v8471_v47  ;;  %6762 = vmatprep.mubr.msk.f32.mxu1 %vm276_vm1, %v8426_v28  ;;  %v8511_v28 = vld [vmem:[#allocation2 + $0x13a] sm:$0xff] }
  0xcf   : > { %6921 = vmatprep.mubr.msk.f32.mxu0 %vm276_vm1, %v8475_v1 }
  0xd1   : > { %6763 = vmatmul.mubr.msk.f32.gmra.mrb[12].mxu1 %vm276_vm1, %v8435_v46  ;;  %v8507_v46 = vld [vmem:[#allocation2 + $0x12a] sm:$0xff] }
  0xd2   : > { %6922 = vmatmul.mubr.msk.f32.gmra.mrb[18].mxu0 %vm276_vm1, %v8483_v35  ;;  %6765 = vmatprep.mubr.msk.f32.mxu1 %vm276_vm1, %v8439_v54  ;;  %v8523_v54 = vld [vmem:[#allocation2 + $0x152] sm:$0xff] }
  0xd3   : > { %6924 = vmatprep.mubr.msk.f32.mxu0 %vm276_vm1, %v8487_v32 }
  0xd5   : > { %6766 = vmatmul.mubr.msk.f32.gmra.mrb[14].mxu1 %vm276_vm1, %v8447_v0  ;;  %v8519_v0 = vld [vmem:[#allocation2 + $0x142] sm:$0xff] }
  0xd6   : > { %6925 = vmatmul.mubr.msk.f32.gmra.mrb[20].mxu0 %vm276_vm1, %v8495_v43  ;;  %6768 = vmatprep.mubr.msk.f32.mxu1 %vm276_vm1, %v8451_v56  ;;  %v8535_v56 = vld [vmem:[#allocation2 + $0x16a] sm:$0xff] }
  0xd7   : > { %6927 = vmatprep.mubr.msk.f32.mxu0 %vm276_vm1, %v8499_v44 }
  0xd9   : > { %6769 = vmatmul.mubr.msk.f32.gmra.mrb[16].mxu1 %vm276_vm1, %v8459_v57  ;;  %v8531_v57 = vld [vmem:[#allocation2 + $0x15a] sm:$0xff] }
  0xda   : > { %6928 = vmatmul.mubr.msk.f32.gmra.mrb[22].mxu0 %vm276_vm1, %v8507_v46  ;;  %6771 = vmatprep.mubr.msk.f32.mxu1 %vm276_vm1, %v8463_v36  ;;  %v8547_v36 = vld [vmem:[#allocation2 + $0x182] sm:$0xff] }
  0xdb   : > { %6930 = vmatprep.mubr.msk.f32.mxu0 %vm276_vm1, %v8511_v28  ;;  %9608 = vst [vmem:[#allocation33_spill] sm:$0xff] %v8547_v36 }
  0xdd   : > { %6772 = vmatmul.mubr.msk.f32.gmra.mrb[18].mxu1 %vm276_vm1, %v8471_v47  ;;  %v8543_v47 = vld [vmem:[#allocation2 + $0x172] sm:$0xff] }
  0xde   : > { %6931 = vmatmul.mubr.msk.f32.gmra.mrb[24].mxu0 %vm276_vm1, %v8519_v0  ;;  %6774 = vmatprep.mubr.msk.f32.mxu1 %vm276_vm1, %v8475_v1 }
  0xdf   : > { %6933 = vmatprep.mubr.msk.f32.mxu0 %vm276_vm1, %v8523_v54 }
  0xe1   : > { %6775 = vmatmul.mubr.msk.f32.gmra.mrb[20].mxu1 %vm276_vm1, %v8483_v35  ;;  %v8555_v35 = vld [vmem:[#allocation2 + $0x18a] sm:$0xff] }
  0xe2   : > { %6934 = vmatmul.mubr.msk.f32.gmra.mrb[26].mxu0 %vm276_vm1, %v8531_v57  ;;  %6777 = vmatprep.mubr.msk.f32.mxu1 %vm276_vm1, %v8487_v32 }
  0xe3   : > { %6936 = vmatprep.mubr.msk.f32.mxu0 %vm276_vm1, %v8535_v56 }
  0xe5   : > { %6778 = vmatmul.mubr.msk.f32.gmra.mrb[22].mxu1 %vm276_vm1, %v8495_v43 }
  0xe6   : > { %6937 = vmatmul.mubr.msk.f32.gmra.mrb[28].mxu0 %vm276_vm1, %v8543_v47  ;;  %6780 = vmatprep.mubr.msk.f32.mxu1 %vm276_vm1, %v8499_v44 }
  0xe7   : > { %6939 = vmatprep.mubr.msk.f32.mxu0 %vm276_vm1, %v8547_v36  ;;  %v6109_v36 = vld [vmem:[%s9544_s1 + $0x20] sm:$0x7] }
  0xe9   : > { %6781 = vmatmul.mubr.msk.f32.gmra.mrb[24].mxu1 %vm276_vm1, %v8507_v46 }
  0xea   : > { %6940 = vmatmul.mubr.msk.f32.gmra.mrb[30].mxu0 %vm276_vm1, %v8555_v35  ;;  %6783 = vmatprep.mubr.msk.f32.mxu1 %vm276_vm1, %v8511_v28 }
  0xeb   : > { %6944 = vmatprep.mubr.msk.f32.mxu0 %vm276_vm1, %v7972_v31  ;;  %v1533_v31 = vld [vmem:[#allocation2 + $0x180] sm:$0xff] }
  0xed   : > { %6784 = vmatmul.mubr.msk.f32.gmra.mrb[26].mxu1 %vm276_vm1, %v8519_v0 }
  0xee   : > { %6945 = vmatmul.mubr.msk.f32.vlgmr.msra.gmra.mrb[0].mxu0 %vm276_vm1, %v7990_v33  ;;  %6786 = vmatprep.mubr.msk.f32.mxu1 %vm276_vm1, %v8523_v54  ;;  %v1534_v33 = vld [vmem:[#allocation2 + $0x188] sm:$0xff] }
  0xef   : > { %6993 = vmatpush3.msk.msra.mxu0 %vm560_vm0, %v8372_v12  ;;  %6947 = vmatprep.mubr.msk.f32.mxu0 %vm276_vm1, %v7992_v34  ;;  %v2704_v34 = vld [vmem:[#allocation2 + $0x198] sm:$0xff] }
  0xf0   : > { %7042 = vmatprep.subr.msk.mxu0 %vm560_vm0, %v6109_v36 }
  0xf1   : > { %6787 = vmatmul.mubr.msk.f32.gmra.mrb[28].mxu1 %vm276_vm1, %v8531_v57 }
  0xf2   : > { %6948 = vmatmul.mubr.msk.f32.gmra.mrb[2].mxu0 %vm276_vm1, %v8010_v38  ;;  %6789 = vmatprep.mubr.msk.f32.mxu1 %vm276_vm1, %v8535_v56  ;;  %v2705_v38 = vld [vmem:[#allocation2 + $0x1a0] sm:$0xff] }
  0xf3   : > { %6950 = vmatprep.mubr.msk.f32.mxu0 %vm276_vm1, %v8016_v40  ;;  %v9611_v40 = vld [vmem:[#allocation10_spill] sm:$0xff] }
  0xf5   : > { %6790 = vmatmul.mubr.msk.f32.gmra.mrb[30].mxu1 %vm276_vm1, %v8543_v47 }
  0xf6   : > { %6951 = vmatmul.mubr.msk.f32.gmra.mrb[4].mxu0 %vm276_vm1, %v8022_v42  ;;  %6833 = vmatprep.mubr.msk.f32.mxu1 %vm276_vm1, %v8367_v63  ;;  %v9613_v42 = vld [vmem:[#allocation12_spill] sm:$0xff] }
  0xf7   : > { %6953 = vmatprep.mubr.msk.f32.mxu0 %vm276_vm1, %v8038_v48  ;;  %v9615_v48 = vld [vmem:[#allocation14_spill] sm:$0xff] }
  0xf9   : > { %6834 = vmatmul.mubr.msk.f32.vlgmr.msra.gmra.mrb[26].mxu1 %vm276_vm1, %v8383_v55 }
  0xfa   : > { %6954 = vmatmul.mubr.msk.f32.gmra.mrb[6].mxu0 %vm276_vm1, %v8046_v50  ;;  %6836 = vmatprep.mubr.msk.f32.mxu1 %vm276_vm1, %v8389_v30  ;;  %v3094_v50 = vld [vmem:[#allocation2 + $0x199] sm:$0xff] }
  0xfb   : > { %6956 = vmatprep.mubr.msk.f32.mxu0 %vm276_vm1, %v8052_v51  ;;  %v9617_v51 = vld [vmem:[#allocation16_spill] sm:$0xff] }
  0xfd   : > { %6837 = vmatmul.mubr.msk.f32.gmra.mrb[28].mxu1 %vm276_vm1, %v8403_v29 }
  0xfe   : > { %6957 = vmatmul.mubr.msk.f32.gmra.mrb[8].mxu0 %vm276_vm1, %v8074_v58  ;;  %6839 = vmatprep.mubr.msk.f32.mxu1 %vm276_vm1, %v1533_v31  ;;  %v9619_v58 = vld [vmem:[#allocation18_spill] sm:$0xff] }
  0xff   : > { %6959 = vmatprep.mubr.msk.f32.mxu0 %vm276_vm1, %v8080_v60  ;;  %v9621_v60 = vld [vmem:[#allocation20_spill] sm:$0xff] }
 0x101   : > { %6840 = vmatmul.mubr.msk.f32.gmra.mrb[30].mxu1 %vm276_vm1, %v1534_v33 }
 0x102   : > { %6960 = vmatmul.mubr.msk.f32.gmra.mrb[10].mxu0 %vm276_vm1, %v8094_v2  ;;  %v9623_v2 = vld [vmem:[#allocation22_spill] sm:$0xff] }
 0x103   : > { %6962 = vmatprep.mubr.msk.f32.mxu0 %vm276_vm1, %v8100_v4  ;;  %v9625_v4 = vld [vmem:[#allocation24_spill] sm:$0xff] }
 0x106   : > { %6963 = vmatmul.mubr.msk.f32.gmra.mrb[12].mxu0 %vm276_vm1, %v8110_v6  ;;  %v9627_v6 = vld [vmem:[#allocation26_spill] sm:$0xff] }
 0x107   : > { %6965 = vmatprep.mubr.msk.f32.mxu0 %vm276_vm1, %v8116_v8  ;;  %v9629_v8 = vld [vmem:[#allocation28_spill] sm:$0xff] }
 0x10a   : > { %6966 = vmatmul.mubr.msk.f32.gmra.mrb[14].mxu0 %vm276_vm1, %v8126_v10  ;;  %v9631_v10 = vld [vmem:[#allocation30_spill] sm:$0xff] }
 0x10b   : > { %6968 = vmatprep.mubr.msk.f32.mxu0 %vm276_vm1, %v8137_v13 }
 0x10e   : > { %6969 = vmatmul.mubr.msk.f32.gmra.mrb[16].mxu0 %vm276_vm1, %v8149_v15 }
 0x10f   : > { %6971 = vmatprep.mubr.msk.f32.mxu0 %vm276_vm1, %v8155_v17 }
 0x112   : > { %6972 = vmatmul.mubr.msk.f32.gmra.mrb[18].mxu0 %vm276_vm1, %v8165_v19 }
 0x113   : > { %6974 = vmatprep.mubr.msk.f32.mxu0 %vm276_vm1, %v8171_v21 }
 0x116   : > { %6975 = vmatmul.mubr.msk.f32.gmra.mrb[20].mxu0 %vm276_vm1, %v8181_v23 }
 0x117   : > { %6977 = vmatprep.mubr.msk.f32.mxu0 %vm276_vm1, %v8187_v25  ;;  %v9634_v25 = vld [vmem:[#allocation33_spill] sm:$0xff] }
 0x11a   : > { %6978 = vmatmul.mubr.msk.f32.gmra.mrb[22].mxu0 %vm276_vm1, %v8197_v27 }
 0x11b   : > { %6980 = vmatprep.mubr.msk.f32.mxu0 %vm276_vm1, %v8367_v63 }
 0x11e   : > { %6981 = vmatmul.mubr.msk.f32.gmra.mrb[24].mxu0 %vm276_vm1, %v8383_v55 }
 0x11f   : > { %6983 = vmatprep.mubr.msk.f32.mxu0 %vm276_vm1, %v8389_v30 }
 0x122   : > { %6984 = vmatmul.mubr.msk.f32.gmra.mrb[26].mxu0 %vm276_vm1, %v8403_v29 }
 0x123   : > { %6986 = vmatprep.mubr.msk.f32.mxu0 %vm276_vm1, %v1533_v31 }
 0x126   : > { %6987 = vmatmul.mubr.msk.f32.gmra.mrb[28].mxu0 %vm276_vm1, %v1534_v33 }
 0x127   : > { %6989 = vmatprep.mubr.msk.f32.mxu0 %vm276_vm1, %v2704_v34 }
 0x12a   : > { %6990 = vmatmul.mubr.msk.f32.gmra.mrb[30].mxu0 %vm276_vm1, %v2705_v38  ;;  %v6144_v38 = vld [vmem:[%s9546_s3 + $0x8] sm:$0xff] }
 0x12b   : > { %6994 = vmatprep.mubr.msk.f32.mxu0 %vm276_vm1, %v8006_v37  ;;  %v9609_v37 = vld [vmem:[#allocation8_spill] sm:$0xff]  ;;  %7092 = vmatprep.subr.mxu1 %v6144_v38 }
 0x12c   : > { %7093 = vmatpush3.msra.mxu1 %v6144_v38 }
 0x12e   : > { %6995 = vmatmul.mubr.msk.f32.vlgmr.msra.gmra.mrb[0].mxu0 %vm276_vm1, %v8014_v39  ;;  %v9610_v39 = vld [vmem:[#allocation9_spill] sm:$0xff] }
 0x12f   : > { %7043 = vmatpush3.msk.msra.mxu0 %vm560_vm0, %v6109_v36  ;;  %6997 = vmatprep.mubr.msk.f32.mxu0 %vm276_vm1, %v8018_v41  ;;  %v9612_v41 = vld [vmem:[#allocation11_spill] sm:$0xff] }
 0x132   : > { %6998 = vmatmul.mubr.msk.f32.gmra.mrb[2].mxu0 %vm276_vm1, %v8032_v45  ;;  %v9614_v45 = vld [vmem:[#allocation13_spill] sm:$0xff] }
 0x133   : > { %7000 = vmatprep.mubr.msk.f32.mxu0 %vm276_vm1, %v8040_v49  ;;  %v9616_v49 = vld [vmem:[#allocation15_spill] sm:$0xff] }
 0x136   : > { %7001 = vmatmul.mubr.msk.f32.gmra.mrb[4].mxu0 %vm276_vm1, %v8056_v52  ;;  %v3095_v52 = vld [vmem:[#allocation2 + $0x1a1] sm:$0xff] }
 0x137   : > { %7003 = vmatprep.mubr.msk.f32.mxu0 %vm276_vm1, %v8058_v53  ;;  %v9618_v53 = vld [vmem:[#allocation17_spill] sm:$0xff] }
 0x13a   : > { %7004 = vmatmul.mubr.msk.f32.gmra.mrb[6].mxu0 %vm276_vm1, %v8078_v59  ;;  %v9620_v59 = vld [vmem:[#allocation19_spill] sm:$0xff] }
 0x13b   : > { %7006 = vmatprep.mubr.msk.f32.mxu0 %vm276_vm1, %v8082_v61  ;;  %v9622_v61 = vld [vmem:[#allocation21_spill] sm:$0xff] }
 0x13e   : > { %7007 = vmatmul.mubr.msk.f32.gmra.mrb[8].mxu0 %vm276_vm1, %v8098_v3  ;;  %v9624_v3 = vld [vmem:[#allocation23_spill] sm:$0xff] }
 0x13f   : > { %7009 = vmatprep.mubr.msk.f32.mxu0 %vm276_vm1, %v8102_v5  ;;  %v9626_v5 = vld [vmem:[#allocation25_spill] sm:$0xff] }
 0x142   : > { %7010 = vmatmul.mubr.msk.f32.gmra.mrb[10].mxu0 %vm276_vm1, %v8114_v7  ;;  %v9628_v7 = vld [vmem:[#allocation27_spill] sm:$0xff] }
 0x143   : > { %7012 = vmatprep.mubr.msk.f32.mxu0 %vm276_vm1, %v8118_v9  ;;  %v9630_v9 = vld [vmem:[#allocation29_spill] sm:$0xff] }
 0x146   : > { %7013 = vmatmul.mubr.msk.f32.gmra.mrb[12].mxu0 %vm276_vm1, %v8130_v11  ;;  %v9632_v11 = vld [vmem:[#allocation31_spill] sm:$0xff] }
 0x147   : > { %7015 = vmatprep.mubr.msk.f32.mxu0 %vm276_vm1, %v8139_v14  ;;  %v9633_v14 = vld [vmem:[#allocation32_spill] sm:$0xff] }
 0x14a   : > { %7016 = vmatmul.mubr.msk.f32.gmra.mrb[14].mxu0 %vm276_vm1, %v8153_v16 }
 0x14b   : > { %7018 = vmatprep.mubr.msk.f32.mxu0 %vm276_vm1, %v8157_v18 }
 0x14e   : > { %7019 = vmatmul.mubr.msk.f32.gmra.mrb[16].mxu0 %vm276_vm1, %v8169_v20 }
 0x14f   : > { %7021 = vmatprep.mubr.msk.f32.mxu0 %vm276_vm1, %v8173_v22 }
 0x152   : > { %7022 = vmatmul.mubr.msk.f32.gmra.mrb[18].mxu0 %vm276_vm1, %v8185_v24 }
 0x153   : > { %7024 = vmatprep.mubr.msk.f32.mxu0 %vm276_vm1, %v8189_v26  ;;  %v3484_v26 = vld [vmem:[#allocation2 + $0x19a] sm:$0xff] }
 0x156   : > { %7025 = vmatmul.mubr.msk.f32.gmra.mrb[20].mxu0 %vm276_vm1, %v9609_v37 }
 0x157   : > { %7027 = vmatprep.mubr.msk.f32.mxu0 %vm276_vm1, %v9610_v39  ;;  %v8887_v39 = vld [vmem:[%s9546_s3] sm:$0xff] }
 0x158   : > { %7106 = vmatprep.subr.mxu1 %v8887_v39 }
 0x15a   : > { %7028 = vmatmul.mubr.msk.f32.gmra.mrb[22].mxu0 %vm276_vm1, %v9611_v40 }
 0x15b   : > { %7030 = vmatprep.mubr.msk.f32.mxu0 %vm276_vm1, %v9612_v41 }
 0x15e   : > { %7031 = vmatmul.mubr.msk.f32.gmra.mrb[24].mxu0 %vm276_vm1, %v9613_v42 }
 0x15f   : > { %7033 = vmatprep.mubr.msk.f32.mxu0 %vm276_vm1, %v9614_v45  ;;  %v8894_v45 = vld [vmem:[%s9545_s2] ss:$0 sm:$0xff] }
 0x162   : > { %7034 = vmatmul.mubr.msk.f32.gmra.mrb[26].mxu0 %vm276_vm1, %v9615_v48 }
 0x163   : > { %7036 = vmatprep.mubr.msk.f32.mxu0 %vm276_vm1, %v9616_v49 }
 0x166   : > { %7037 = vmatmul.mubr.msk.f32.gmra.mrb[28].mxu0 %vm276_vm1, %v9617_v51 }
 0x167   : > { %7039 = vmatprep.mubr.msk.f32.mxu0 %vm276_vm1, %v3094_v50 }
 0x16a   : > { %7040 = vmatmul.mubr.msk.f32.gmra.mrb[30].mxu0 %vm276_vm1, %v3095_v52 }
 0x16b   : > { %7044 = vmatprep.mubr.msk.f32.mxu0 %vm276_vm1, %v8365_v62 }
 0x16e   : > { %7045 = vmatmul.mubr.msk.f32.vlgmr.msra.gmra.mrb[0].mxu0 %vm276_vm1, %v9618_v53 }
 0x16f   : > { %7047 = vmatprep.mubr.msk.f32.mxu0 %vm276_vm1, %v9619_v58 }
 0x172   : > { %7048 = vmatmul.mubr.msk.f32.gmra.mrb[2].mxu0 %vm276_vm1, %v9620_v59 }
 0x173   : > { %7050 = vmatprep.mubr.msk.f32.mxu0 %vm276_vm1, %v9621_v60 }
 0x176   : > { %7051 = vmatmul.mubr.msk.f32.gmra.mrb[4].mxu0 %vm276_vm1, %v9622_v61 }
 0x177   : > { %7053 = vmatprep.mubr.msk.f32.mxu0 %vm276_vm1, %v9623_v2 }
 0x17a   : > { %7054 = vmatmul.mubr.msk.f32.gmra.mrb[6].mxu0 %vm276_vm1, %v9624_v3 }
 0x17b   : > { %7056 = vmatprep.mubr.msk.f32.mxu0 %vm276_vm1, %v9625_v4 }
 0x17e   : > { %7057 = vmatmul.mubr.msk.f32.gmra.mrb[8].mxu0 %vm276_vm1, %v9626_v5 }
 0x17f   : > { %7059 = vmatprep.mubr.msk.f32.mxu0 %vm276_vm1, %v9627_v6 }
 0x182   : > { %7060 = vmatmul.mubr.msk.f32.gmra.mrb[10].mxu0 %vm276_vm1, %v9628_v7 }
 0x183   : > { %7062 = vmatprep.mubr.msk.f32.mxu0 %vm276_vm1, %v9629_v8 }
 0x186   : > { %7063 = vmatmul.mubr.msk.f32.gmra.mrb[12].mxu0 %vm276_vm1, %v9630_v9 }
 0x187   : > { %7065 = vmatprep.mubr.msk.f32.mxu0 %vm276_vm1, %v9631_v10 }
 0x18a   : > { %7066 = vmatmul.mubr.msk.f32.gmra.mrb[14].mxu0 %vm276_vm1, %v9632_v11 }
 0x18b   : > { %7068 = vmatprep.mubr.msk.f32.mxu0 %vm276_vm1, %v8475_v1 }
 0x18c   : > { %v8748_v13 = vpop.f32.mrb[0].mxu1 }
 0x18d   : > { %v8752_v15 = vpop.f32.mrb[1].mxu1 }
 0x18e   : > { %7069 = vmatmul.mubr.msk.f32.gmra.mrb[16].mxu0 %vm276_vm1, %v9633_v14 }
 0x18f   : > { %7071 = vmatprep.mubr.msk.f32.mxu0 %vm276_vm1, %v8487_v32 }
 0x190   : > { %v8756_v16 = vpop.f32.mrb[2].mxu1 }
 0x191   : > { %v8760_v17 = vpop.f32.mrb[3].mxu1 }
 0x192   : > { %7072 = vmatmul.mubr.msk.f32.gmra.mrb[18].mxu0 %vm276_vm1, %v8495_v43  ;;  %v3485_v43 = vld [vmem:[#allocation2 + $0x1a2] sm:$0xff] }
 0x193   : > { %7074 = vmatprep.mubr.msk.f32.mxu0 %vm276_vm1, %v8499_v44 }
 0x194   : > { %v8764_v1 = vpop.f32.mrb[4].mxu1 }
 0x195   : > { %v8768_v18 = vpop.f32.mrb[5].mxu1 }
 0x196   : > { %7075 = vmatmul.mubr.msk.f32.gmra.mrb[20].mxu0 %vm276_vm1, %v8507_v46 }
 0x197   : > { %7077 = vmatprep.mubr.msk.f32.mxu0 %vm276_vm1, %v8511_v28 }
 0x198   : > { %v8772_v19 = vpop.f32.mrb[6].mxu1 }
 0x199   : > { %v8776_v20 = vpop.f32.mrb[7].mxu1 }
 0x19a   : > { %7078 = vmatmul.mubr.msk.f32.gmra.mrb[22].mxu0 %vm276_vm1, %v8519_v0  ;;  %v9635_v0 = vmov 0.0  }
 0x19b   : > { %7080 = vmatprep.mubr.msk.f32.mxu0 %vm276_vm1, %v8523_v54  ;;  %3935 = vst.msk [vmem:[#allocation3 + $0x10] sm:$0xff] %vm3931_vm3, %v9635_v0  ;;  %3932 = vst.msk [vmem:[#allocation3] sm:$0xff] %vm3931_vm3, %v9635_v0 }
 0x19c   : > { %v8780_v21 = vpop.f32.mrb[8].mxu1  ;;  %3936 = vst.msk [vmem:[#allocation3 + $0x18] sm:$0x3] %vm3933_vm4, %v9635_v0  ;;  %3934 = vst.msk [vmem:[#allocation3 + $0x8] sm:$0x3] %vm3933_vm4, %v9635_v0 }
 0x19d   : > { %v8784_v22 = vpop.f32.mrb[9].mxu1  ;;  %3937 = vst.msk [vmem:[#allocation3 + $0x20] sm:$0xff] %vm3931_vm3, %v9635_v0  ;;  %3939 = vst.msk [vmem:[#allocation3 + $0x30] sm:$0xff] %vm3931_vm3, %v9635_v0 }
 0x19e   : > { %7081 = vmatmul.mubr.msk.f32.gmra.mrb[24].mxu0 %vm276_vm1, %v8531_v57  ;;  %3938 = vst.msk [vmem:[#allocation3 + $0x28] sm:$0x3] %vm3933_vm4, %v9635_v0  ;;  %3940 = vst.msk [vmem:[#allocation3 + $0x38] sm:$0x3] %vm3933_vm4, %v9635_v0 }
 0x19f   : > { %7083 = vmatprep.mubr.msk.f32.mxu0 %vm276_vm1, %v8535_v56  ;;  %3941 = vst.msk [vmem:[#allocation3 + $0x40] sm:$0xff] %vm3931_vm3, %v9635_v0  ;;  %3943 = vst.msk [vmem:[#allocation3 + $0x50] sm:$0xff] %vm3931_vm3, %v9635_v0 }
 0x1a0   : > { %v8788_v23 = vpop.f32.mrb[10].mxu1  ;;  %3942 = vst.msk [vmem:[#allocation3 + $0x48] sm:$0x3] %vm3933_vm4, %v9635_v0  ;;  %3944 = vst.msk [vmem:[#allocation3 + $0x58] sm:$0x3] %vm3933_vm4, %v9635_v0 }
 0x1a1   : > { %v8792_v24 = vpop.f32.mrb[11].mxu1  ;;  %3945 = vst.msk [vmem:[#allocation3 + $0x60] sm:$0xff] %vm3931_vm3, %v9635_v0  ;;  %3947 = vst.msk [vmem:[#allocation3 + $0x70] sm:$0xff] %vm3931_vm3, %v9635_v0 }
 0x1a2   : > { %7084 = vmatmul.mubr.msk.f32.gmra.mrb[26].mxu0 %vm276_vm1, %v8543_v47  ;;  %3946 = vst.msk [vmem:[#allocation3 + $0x68] sm:$0x3] %vm3933_vm4, %v9635_v0  ;;  %3948 = vst.msk [vmem:[#allocation3 + $0x78] sm:$0x3] %vm3933_vm4, %v9635_v0 }
 0x1a3   : > { %7086 = vmatprep.mubr.msk.f32.mxu0 %vm276_vm1, %v9634_v25  ;;  %3949 = vst.msk [vmem:[#allocation3 + $0x80] sm:$0xff] %vm3931_vm3, %v9635_v0  ;;  %3951 = vst.msk [vmem:[#allocation3 + $0x90] sm:$0xff] %vm3931_vm3, %v9635_v0  ;;  %v4095_v37 = vld [vmem:[#allocation3 + $0x1] sm:$0xff] }
 0x1a4   : > { %v8796_v27 = vpop.f32.mrb[12].mxu1  ;;  %3950 = vst.msk [vmem:[#allocation3 + $0x88] sm:$0x3] %vm3933_vm4, %v9635_v0  ;;  %3952 = vst.msk [vmem:[#allocation3 + $0x98] sm:$0x3] %vm3933_vm4, %v9635_v0  ;;  %7094 = vmatprep.mubr.msk.f32.mxu1 %vm3931_vm3, %v4095_v37 }
 0x1a5   : > { %v8800_v28 = vpop.f32.mrb[13].mxu1 }
 0x1a6   : > { %7087 = vmatmul.mubr.msk.f32.gmra.mrb[28].mxu0 %vm276_vm1, %v8555_v35 }
 0x1a7   : > { %7089 = vmatprep.mubr.msk.f32.mxu0 %vm276_vm1, %v3484_v26 }
 0x1a8   : > { %v8803_v44 = vpop.f32.mrb[14].mxu1 }
 0x1a9   : > { %v8806_v32 = vpop.f32.mrb[15].mxu1 }
 0x1aa   : > { %7090 = vmatmul.mubr.msk.f32.gmra.mrb[30].mxu0 %vm276_vm1, %v3485_v43 }
 0x1ac   : > { %v8808_v29 = vpop.f32.mrb[16].mxu1 }
 0x1ad   : > { %v8810_v30 = vpop.f32.mrb[17].mxu1 }
 0x1b0   : > { %v8812_v62 = vpop.f32.mrb[18].mxu1 }
 0x1b1   : > { %v8814_v63 = vpop.f32.mrb[19].mxu1 }
 0x1b4   : > { %v8816_v35 = vpop.f32.mrb[20].mxu1 }
 0x1b5   : > { %v8818_v12 = vpop.f32.mrb[21].mxu1 }
 0x1b8   : > { %v8820_v36 = vpop.f32.mrb[22].mxu1 }
 0x1b9   : > { %v8822_v55 = vpop.f32.mrb[23].mxu1 }
 0x1bc   : > { %v8824_v47 = vpop.f32.mrb[24].mxu1 }
 0x1bd   : > { %v8826_v46 = vpop.f32.mrb[25].mxu1 }
 0x1cc   : > { %v8828_v54 = vpop.f32.mrb[26].mxu1 }
 0x1cd   : > { %v8870_v56 = vpop.f32.mrb[27].mxu1 }
 0x1d0   : > { %v8872_v57 = vpop.f32.mrb[28].mxu1 }
 0x1d1   : > { %v8874_v31 = vpop.f32.mrb[29].mxu1 }
 0x1d4   : > { %v8876_v33 = vpop.f32.mrb[30].mxu1 }
 0x1d5   : > { %v8878_v34 = vpop.f32.mrb[31].mxu1 }
 0x241   : > { %v7046_v40 = vpop.f32.mrb[0].mxu0 }
 0x242   : > { %v7252_v41 = vadd.f32 %v7046_v40, %v8748_v13  ;;  %v3653_v42 = vpop.f32.mrb[1].mxu0 }
 0x243   : > { %v7253_v48 = vadd.f32 %v3653_v42, %v8752_v15 }
 0x244   : > { %v3852_v50 = vadd.f32 %v7252_v41, %v8894_v45 }
 0x245   : > { %v7049_v49 = vpop.f32.mrb[2].mxu0  ;;  %v3851_v53 = vadd.f32 %v7253_v48, %v8894_v45 }
 0x246   : > { %v7254_v51 = vadd.f32 %v7049_v49, %v8756_v16  ;;  %v3663_v52 = vpop.f32.mrb[3].mxu0  ;;  %v3884_v2 = vmax.f32 %v3852_v50, 0.0 }
 0x247   : > { %v7255_v58 = vadd.f32 %v3663_v52, %v8760_v17  ;;  %v3883_v6 = vmax.f32 %v3851_v53, 0.0 }
 0x248   : > { %v3854_v59 = vadd.f32 %v7254_v51, %v8894_v45 }
 0x249   : > { %v3853_v60 = vadd.f32 %v7255_v58, %v8894_v45  ;;  %v7052_v61 = vpop.f32.mrb[4].mxu0 }
 0x24a   : > { %v3886_v3 = vmax.f32 %v3854_v59, 0.0  ;;  %v7256_v4 = vadd.f32 %v7052_v61, %v8764_v1  ;;  %v3673_v5 = vpop.f32.mrb[5].mxu0 }
 0x24b   : > { %v3885_v7 = vmax.f32 %v3853_v60, 0.0  ;;  %v7257_v8 = vadd.f32 %v3673_v5, %v8768_v18 }
 0x24c   : > { %v3916_v9 = vmax.f32 %v3884_v2, %v3886_v3  ;;  %v3856_v14 = vadd.f32 %v7256_v4, %v8894_v45 }
 0x24d   : > { %v3915_v10 = vmax.f32 %v3883_v6, %v3885_v7  ;;  %v7055_v11 = vpop.f32.mrb[6].mxu0  ;;  %v3855_v1 = vadd.f32 %v7257_v8, %v8894_v45 }
 0x24e   : > { %v4030_v13 = vrot.slane %v3916_v9, 1  ;;  %v7258_v15 = vadd.f32 %v7055_v11, %v8772_v19  ;;  %v3683_v16 = vpop.f32.mrb[7].mxu0  ;;  %v3888_v19 = vmax.f32 %v3856_v14, 0.0 }
 0x24f   : > { %v3961_v17 = vrot.slane %v3915_v10, 1  ;;  %v7259_v25 = vadd.f32 %v3683_v16, %v8776_v20  ;;  %v3887_v41 = vmax.f32 %v3855_v1, 0.0 }
 0x250   : > { %v4046_v26 = vmax.f32 %v3916_v9, %v4030_v13  ;;  %v3858_v18 = vadd.f32 %v7258_v15, %v8894_v45  ;;  %v8937_v9 = vld [vmem:[%s9546_s3 + $0x10] sm:$0xff] }
 0x251   : > { %v3977_v43 = vmax.f32 %v3915_v10, %v3961_v17  ;;  %v3857_v0 = vadd.f32 %v7259_v25, %v8894_v45  ;;  %v7058_v38 = vpop.f32.mrb[8].mxu0 }
 0x252   : > { %4054 = vst.msk [vmem:[#allocation3 + $0x15] sm:$0x1] %vm3986_vm5, %v4046_v26  ;;  %v3890_v37 = vmax.f32 %v3858_v18, 0.0  ;;  %v7260_v40 = vadd.f32 %v7058_v38, %v8780_v21  ;;  %v3693_v20 = vpop.f32.mrb[9].mxu0 }
 0x253   : > { %4062 = vst.msk [vmem:[#allocation3 + $0x14] sm:$0x4] %vm3995_vm6, %v4046_v26  ;;  %3996 = vst.msk [vmem:[#allocation3 + $0x10] sm:$0x4] %vm3995_vm6, %v3977_v43  ;;  %v3889_v42 = vmax.f32 %v3857_v0, 0.0  ;;  %v7261_v48 = vadd.f32 %v3693_v20, %v8784_v22 }
 0x254   : > { %4070 = vst.msk [vmem:[#allocation3 + $0x13] sm:$0x10] %vm4004_vm7, %v4046_v26  ;;  %4005 = vst.msk [vmem:[#allocation3 + $0xf] sm:$0x10] %vm4004_vm7, %v3977_v43  ;;  %v3918_v49 = vmax.f32 %v3888_v19, %v3890_v37  ;;  %v3860_v53 = vadd.f32 %v7260_v40, %v8894_v45 }
 0x255   : > { %4078 = vst.msk [vmem:[#allocation3 + $0x12] sm:$0x40] %vm4013_vm8, %v4046_v26  ;;  %4014 = vst.msk [vmem:[#allocation3 + $0xe] sm:$0x40] %vm4013_vm8, %v3977_v43  ;;  %v3917_v50 = vmax.f32 %v3887_v41, %v3889_v42  ;;  %v7061_v51 = vpop.f32.mrb[10].mxu0  ;;  %v3859_v60 = vadd.f32 %v7261_v48, %v8894_v45 }
 0x256   : > { %3987 = vst.msk [vmem:[#allocation3 + $0x11] sm:$0x1] %vm3986_vm5, %v3977_v43  ;;  %v4031_v52 = vrot.slane %v3918_v49, 1  ;;  %v7262_v21 = vadd.f32 %v7061_v51, %v8788_v23  ;;  %v3703_v58 = vpop.f32.mrb[11].mxu0  ;;  %v3892_v23 = vmax.f32 %v3860_v53, 0.0 }
 0x257   : > { %v3962_v59 = vrot.slane %v3917_v50, 1  ;;  %v7263_v61 = vadd.f32 %v3703_v58, %v8792_v24  ;;  %v3891_v10 = vmax.f32 %v3859_v60, 0.0 }
 0x258   : > { %v4047_v2 = vmax.f32 %v3918_v49, %v4031_v52  ;;  %v3862_v3 = vadd.f32 %v7262_v21, %v8894_v45 }
 0x259   : > { %v3978_v4 = vmax.f32 %v3917_v50, %v3962_v59  ;;  %v3861_v22 = vadd.f32 %v7263_v61, %v8894_v45  ;;  %v7064_v5 = vpop.f32.mrb[12].mxu0 }
 0x25a   : > { %4055 = vst.msk [vmem:[#allocation3 + $0x25] sm:$0x1] %vm3986_vm5, %v4047_v2  ;;  %v3894_v6 = vmax.f32 %v3862_v3, 0.0  ;;  %v7264_v7 = vadd.f32 %v7064_v5, %v8796_v27  ;;  %v3713_v24 = vpop.f32.mrb[13].mxu0 }
 0x25b   : > { %4063 = vst.msk [vmem:[#allocation3 + $0x24] sm:$0x4] %vm3995_vm6, %v4047_v2  ;;  %3997 = vst.msk [vmem:[#allocation3 + $0x20] sm:$0x4] %vm3995_vm6, %v3978_v4  ;;  %v3893_v11 = vmax.f32 %v3861_v22, 0.0  ;;  %v7265_v27 = vadd.f32 %v3713_v24, %v8800_v28 }
 0x25c   : > { %4071 = vst.msk [vmem:[#allocation3 + $0x23] sm:$0x10] %vm4004_vm7, %v4047_v2  ;;  %4006 = vst.msk [vmem:[#allocation3 + $0x1f] sm:$0x10] %vm4004_vm7, %v3978_v4  ;;  %v3920_v13 = vmax.f32 %v3892_v23, %v3894_v6  ;;  %v3864_v17 = vadd.f32 %v7264_v7, %v8894_v45 }
 0x25d   : > { %4079 = vst.msk [vmem:[#allocation3 + $0x22] sm:$0x40] %vm4013_vm8, %v4047_v2  ;;  %v8932_v8 = vld [vmem:[#allocation3 + $0x11] sm:$0xff]  ;;  %4015 = vst.msk [vmem:[#allocation3 + $0x1e] sm:$0x40] %vm4013_vm8, %v3978_v4  ;;  %v3919_v14 = vmax.f32 %v3891_v10, %v3893_v11  ;;  %v7067_v15 = vpop.f32.mrb[14].mxu0  ;;  %v3863_v18 = vadd.f32 %v7265_v27, %v8894_v45 }
 0x25e   : > { %3988 = vst.msk [vmem:[#allocation3 + $0x21] sm:$0x1] %vm3986_vm5, %v3978_v4  ;;  %7095 = vmatmul.mubr.msk.f32.vlgmr.msra.gmra.mrb[32].mxu1 %vm3931_vm3, %v8932_v8  ;;  %v4032_v16 = vrot.slane %v3920_v13, 1  ;;  %v7266_v1 = vadd.f32 %v7067_v15, %v8803_v44  ;;  %v3723_v25 = vpop.f32.mrb[15].mxu0  ;;  %v3896_v44 = vmax.f32 %v3864_v17, 0.0 }
 0x25f   : > { %7107 = vmatpush3.msra.mxu1 %v8887_v39  ;;  %v3963_v26 = vrot.slane %v3919_v14, 1  ;;  %v7267_v28 = vadd.f32 %v3723_v25, %v8806_v32  ;;  %v3895_v41 = vmax.f32 %v3863_v18, 0.0 }
 0x260   : > { %7120 = vmatprep.subr.mxu1 %v8937_v9  ;;  %v4048_v43 = vmax.f32 %v3920_v13, %v4032_v16  ;;  %v3866_v0 = vadd.f32 %v7266_v1, %v8894_v45 }
 0x261   : > { %v3979_v38 = vmax.f32 %v3919_v14, %v3963_v26  ;;  %v3865_v39 = vadd.f32 %v7267_v28, %v8894_v45  ;;  %v7070_v19 = vpop.f32.mrb[16].mxu0 }
 0x262   : > { %4056 = vst.msk [vmem:[#allocation3 + $0x35] sm:$0x1] %vm3986_vm5, %v4048_v43  ;;  %v3898_v37 = vmax.f32 %v3866_v0, 0.0  ;;  %v7268_v40 = vadd.f32 %v7070_v19, %v8808_v29  ;;  %v3733_v32 = vpop.f32.mrb[17].mxu0 }
 0x263   : > { %4064 = vst.msk [vmem:[#allocation3 + $0x34] sm:$0x4] %vm3995_vm6, %v4048_v43  ;;  %3998 = vst.msk [vmem:[#allocation3 + $0x30] sm:$0x4] %vm3995_vm6, %v3979_v38  ;;  %v3897_v42 = vmax.f32 %v3865_v39, 0.0  ;;  %v7269_v48 = vadd.f32 %v3733_v32, %v8810_v30 }
 0x264   : > { %4072 = vst.msk [vmem:[#allocation3 + $0x33] sm:$0x10] %vm4004_vm7, %v4048_v43  ;;  %4007 = vst.msk [vmem:[#allocation3 + $0x2f] sm:$0x10] %vm4004_vm7, %v3979_v38  ;;  %v3922_v49 = vmax.f32 %v3896_v44, %v3898_v37  ;;  %v3868_v52 = vadd.f32 %v7268_v40, %v8894_v45 }
 0x265   : > { %4080 = vst.msk [vmem:[#allocation3 + $0x32] sm:$0x40] %vm4013_vm8, %v4048_v43  ;;  %v8959_v20 = vld [vmem:[#allocation3 + $0x21] sm:$0xff]  ;;  %4016 = vst.msk [vmem:[#allocation3 + $0x2e] sm:$0x40] %vm4013_vm8, %v3979_v38  ;;  %v3921_v29 = vmax.f32 %v3895_v41, %v3897_v42  ;;  %v7073_v50 = vpop.f32.mrb[18].mxu0  ;;  %v3867_v59 = vadd.f32 %v7269_v48, %v8894_v45 }
 0x266   : > { %3989 = vst.msk [vmem:[#allocation3 + $0x31] sm:$0x1] %vm3986_vm5, %v3979_v38  ;;  %7097 = vmatprep.mubr.msk.f32.mxu1 %vm3931_vm3, %v8959_v20  ;;  %v4033_v51 = vrot.slane %v3922_v49, 1  ;;  %v7270_v53 = vadd.f32 %v7073_v50, %v8812_v62  ;;  %v3743_v21 = vpop.f32.mrb[19].mxu0  ;;  %v3900_v62 = vmax.f32 %v3868_v52, 0.0 }
 0x267   : > { %v3964_v58 = vrot.slane %v3921_v29, 1  ;;  %v7271_v60 = vadd.f32 %v3743_v21, %v8814_v63  ;;  %v3899_v6 = vmax.f32 %v3867_v59, 0.0 }
 0x268   : > { %v4049_v61 = vmax.f32 %v3922_v49, %v4033_v51  ;;  %v3870_v30 = vadd.f32 %v7270_v53, %v8894_v45 }
 0x269   : > { %v3980_v2 = vmax.f32 %v3921_v29, %v3964_v58  ;;  %v3869_v3 = vadd.f32 %v7271_v60, %v8894_v45  ;;  %v7076_v4 = vpop.f32.mrb[20].mxu0 }
 0x26a   : > { %4057 = vst.msk [vmem:[#allocation3 + $0x45] sm:$0x1] %vm3986_vm5, %v4049_v61  ;;  %v3902_v22 = vmax.f32 %v3870_v30, 0.0  ;;  %v7272_v5 = vadd.f32 %v7076_v4, %v8816_v35  ;;  %v3753_v63 = vpop.f32.mrb[21].mxu0 }
 0x26b   : > { %4065 = vst.msk [vmem:[#allocation3 + $0x44] sm:$0x4] %vm3995_vm6, %v4049_v61  ;;  %3999 = vst.msk [vmem:[#allocation3 + $0x40] sm:$0x4] %vm3995_vm6, %v3980_v2  ;;  %v3901_v7 = vmax.f32 %v3869_v3, 0.0  ;;  %v7273_v24 = vadd.f32 %v3753_v63, %v8818_v12 }
 0x26c   : > { %4073 = vst.msk [vmem:[#allocation3 + $0x43] sm:$0x10] %vm4004_vm7, %v4049_v61  ;;  %4008 = vst.msk [vmem:[#allocation3 + $0x3f] sm:$0x10] %vm4004_vm7, %v3980_v2  ;;  %v3924_v10 = vmax.f32 %v3900_v62, %v3902_v22  ;;  %v3872_v13 = vadd.f32 %v7272_v5, %v8894_v45 }
 0x26d   : > { %4081 = vst.msk [vmem:[#allocation3 + $0x42] sm:$0x40] %vm4013_vm8, %v4049_v61  ;;  %v8979_v23 = vld [vmem:[#allocation3 + $0x31] sm:$0xff]  ;;  %4017 = vst.msk [vmem:[#allocation3 + $0x3e] sm:$0x40] %vm4013_vm8, %v3980_v2  ;;  %v3923_v35 = vmax.f32 %v3899_v6, %v3901_v7  ;;  %v7079_v11 = vpop.f32.mrb[22].mxu0  ;;  %v3871_v17 = vadd.f32 %v7273_v24, %v8894_v45 }
 0x26e   : > { %3990 = vst.msk [vmem:[#allocation3 + $0x41] sm:$0x1] %vm3986_vm5, %v3980_v2  ;;  %7098 = vmatmul.mubr.msk.f32.gmra.mrb[34].mxu1 %vm3931_vm3, %v8979_v23  ;;  %v4034_v27 = vrot.slane %v3924_v10, 1  ;;  %v7274_v14 = vadd.f32 %v7079_v11, %v8820_v36  ;;  %v3763_v15 = vpop.f32.mrb[23].mxu0  ;;  %v3904_v36 = vmax.f32 %v3872_v13, 0.0 }
 0x26f   : > { %v3965_v16 = vrot.slane %v3923_v35, 1  ;;  %v7275_v1 = vadd.f32 %v3763_v15, %v8822_v55  ;;  %v3903_v39 = vmax.f32 %v3871_v17, 0.0 }
 0x270   : > { %v4050_v25 = vmax.f32 %v3924_v10, %v4034_v27  ;;  %v3874_v12 = vadd.f32 %v7274_v14, %v8894_v45 }
 0x271   : > { %v3981_v26 = vmax.f32 %v3923_v35, %v3965_v16  ;;  %v3873_v18 = vadd.f32 %v7275_v1, %v8894_v45  ;;  %v7082_v28 = vpop.f32.mrb[24].mxu0 }
 0x272   : > { %4058 = vst.msk [vmem:[#allocation3 + $0x55] sm:$0x1] %vm3986_vm5, %v4050_v25  ;;  %v3906_v43 = vmax.f32 %v3874_v12, 0.0  ;;  %v7276_v0 = vadd.f32 %v7082_v28, %v8824_v47  ;;  %v3773_v55 = vpop.f32.mrb[25].mxu0  ;;  %v4086_v12 = vld [vmem:[#allocation3] sm:$0xff]  ;;  %v6170_v28 = vld [vmem:[%s9546_s3 + $0x18] sm:$0xff] }
 0x273   : > { %4066 = vst.msk [vmem:[#allocation3 + $0x54] sm:$0x4] %vm3995_vm6, %v4050_v25  ;;  %4000 = vst.msk [vmem:[#allocation3 + $0x50] sm:$0x4] %vm3995_vm6, %v3981_v26  ;;  %v3905_v19 = vmax.f32 %v3873_v18, 0.0  ;;  %v7277_v44 = vadd.f32 %v3773_v55, %v8826_v46  ;;  %v4087_v18 = vld [vmem:[#allocation3 + $0x10] sm:$0xff] }
 0x274   : > { %4074 = vst.msk [vmem:[#allocation3 + $0x53] sm:$0x10] %vm4004_vm7, %v4050_v25  ;;  %4009 = vst.msk [vmem:[#allocation3 + $0x4f] sm:$0x10] %vm4004_vm7, %v3981_v26  ;;  %v3926_v37 = vmax.f32 %v3904_v36, %v3906_v43  ;;  %v3876_v41 = vadd.f32 %v7276_v0, %v8894_v45  ;;  %v9063_v36 = vld [vmem:[#allocation3 + $0x20] sm:$0xff]  ;;  %v9068_v43 = vld [vmem:[#allocation3 + $0x30] sm:$0xff] }
 0x275   : > { %4082 = vst.msk [vmem:[#allocation3 + $0x52] sm:$0x40] %vm4013_vm8, %v4050_v25  ;;  %v8999_v38 = vld [vmem:[#allocation3 + $0x41] sm:$0xff]  ;;  %4018 = vst.msk [vmem:[#allocation3 + $0x4e] sm:$0x40] %vm4013_vm8, %v3981_v26  ;;  %v3925_v47 = vmax.f32 %v3903_v39, %v3905_v19  ;;  %v7085_v40 = vpop.f32.mrb[26].mxu0  ;;  %v3875_v29 = vadd.f32 %v7277_v44, %v8894_v45 }
 0x276   : > { %3991 = vst.msk [vmem:[#allocation3 + $0x51] sm:$0x1] %vm3986_vm5, %v3981_v26  ;;  %7100 = vmatprep.mubr.msk.f32.mxu1 %vm3931_vm3, %v8999_v38  ;;  %v4035_v32 = vrot.slane %v3926_v37, 1  ;;  %v7278_v42 = vadd.f32 %v7085_v40, %v8828_v54  ;;  %v3783_v48 = vpop.f32.mrb[27].mxu0  ;;  %v3908_v54 = vmax.f32 %v3876_v41, 0.0  ;;  %v9072_v0 = vld [vmem:[#allocation3 + $0x40] sm:$0xff] }
 0x277   : > { %v3966_v49 = vrot.slane %v3925_v47, 1  ;;  %v7279_v50 = vadd.f32 %v3783_v48, %v8870_v56  ;;  %v3907_v61 = vmax.f32 %v3875_v29, 0.0  ;;  %v4363_v39 = vld [vmem:[#allocation3 + $0x2] sm:$0xff]  ;;  %v4364_v44 = vld [vmem:[#allocation3 + $0x12] sm:$0xff] }
 0x278   : > { %v4051_v51 = vmax.f32 %v3926_v37, %v4035_v32  ;;  %v3878_v46 = vadd.f32 %v7278_v42, %v8894_v45  ;;  %v6179_v37 = vld [vmem:[%s9546_s3 + $0x20] sm:$0xff]  ;;  %v9101_v32 = vld [vmem:[#allocation3 + $0x42] sm:$0xff] }
 0x279   : > { %v3982_v52 = vmax.f32 %v3925_v47, %v3966_v49  ;;  %v3877_v53 = vadd.f32 %v7279_v50, %v8894_v45  ;;  %v7088_v21 = vpop.f32.mrb[28].mxu0  ;;  %v9093_v47 = vld [vmem:[#allocation3 + $0x22] sm:$0xff]  ;;  %v9097_v40 = vld [vmem:[#allocation3 + $0x32] sm:$0xff] }
 0x27a   : > { %4059 = vst.msk [vmem:[#allocation3 + $0x65] sm:$0x1] %vm3986_vm5, %v4051_v51  ;;  %v3910_v58 = vmax.f32 %v3878_v46, 0.0  ;;  %v7280_v59 = vadd.f32 %v7088_v21, %v8872_v57  ;;  %v3793_v56 = vpop.f32.mrb[29].mxu0  ;;  %v6188_v49 = vld [vmem:[%s9546_s3 + $0x28] sm:$0xff]  ;;  %v6197_v50 = vld [vmem:[%s9546_s3 + $0x30] sm:$0xff] }
 0x27b   : > { %4067 = vst.msk [vmem:[#allocation3 + $0x64] sm:$0x4] %vm3995_vm6, %v4051_v51  ;;  %4001 = vst.msk [vmem:[#allocation3 + $0x60] sm:$0x4] %vm3995_vm6, %v3982_v52  ;;  %v3909_v30 = vmax.f32 %v3877_v53, 0.0  ;;  %v7281_v2 = vadd.f32 %v3793_v56, %v8874_v31  ;;  %v4959_v53 = vld [vmem:[#allocation3 + $0x90] sm:$0xff] }
 0x27c   : > { %4075 = vst.msk [vmem:[#allocation3 + $0x63] sm:$0x10] %vm4004_vm7, %v4051_v51  ;;  %4010 = vst.msk [vmem:[#allocation3 + $0x5f] sm:$0x10] %vm4004_vm7, %v3982_v52  ;;  %v3928_v3 = vmax.f32 %v3908_v54, %v3910_v58  ;;  %v3880_v22 = vadd.f32 %v7280_v59, %v8894_v45  ;;  %v9105_v41 = vld [vmem:[#allocation3 + $0x52] sm:$0xff]  ;;  %v5424_v54 = vlaneseq }
 0x27d   : > { %4083 = vst.msk [vmem:[#allocation3 + $0x62] sm:$0x40] %vm4013_vm8, %v4051_v51  ;;  %v9019_v60 = vld [vmem:[#allocation3 + $0x51] sm:$0xff]  ;;  %4019 = vst.msk [vmem:[#allocation3 + $0x5e] sm:$0x40] %vm4013_vm8, %v3982_v52  ;;  %v3927_v57 = vmax.f32 %v3907_v61, %v3909_v30  ;;  %v7091_v4 = vpop.f32.mrb[30].mxu0  ;;  %v3879_v7 = vadd.f32 %v7281_v2, %v8894_v45 }
 0x27e   : > { %3992 = vst.msk [vmem:[#allocation3 + $0x61] sm:$0x1] %vm3986_vm5, %v3982_v52  ;;  %7101 = vmatmul.mubr.msk.f32.gmra.mrb[36].mxu1 %vm3931_vm3, %v9019_v60  ;;  %v4036_v62 = vrot.slane %v3928_v3, 1  ;;  %v7282_v5 = vadd.f32 %v7091_v4, %v8876_v33  ;;  %v3803_v63 = vpop.f32.mrb[31].mxu0  ;;  %v3912_v33 = vmax.f32 %v3880_v22, 0.0  ;;  %v9076_v55 = vld [vmem:[#allocation3 + $0x50] sm:$0xff] }
 0x27f   : > { %v3967_v6 = vrot.slane %v3927_v57, 1  ;;  %v7283_v24 = vadd.f32 %v3803_v63, %v8878_v34  ;;  %v3911_v34 = vmax.f32 %v3879_v7, 0.0  ;;  %v6206_v51 = vld [vmem:[%s9546_s3 + $0x38] sm:$0xff]  ;;  %v6215_v52 = vld [vmem:[%s9546_s3 + $0x40] sm:$0xff]  ;;  %v7685_v58 = vmov 1966171168  }
 0x280   : > { %v4052_v10 = vmax.f32 %v3928_v3, %v4036_v62  ;;  %v3882_v31 = vadd.f32 %v7282_v5, %v8894_v45  ;;  %v5106_v21 = vld [vmem:[#allocation3 + $0x91] sm:$0xff]  ;;  %v5431_v59 = vunpack.c.l.s4 %v7685_v58  ;;  %v9218_v4 = vshrl.u32 %v5424_v54, 7 }
 0x281   : > { %v3983_v35 = vmax.f32 %v3927_v57, %v3967_v6  ;;  %v3881_v11 = vadd.f32 %v7283_v24, %v8894_v45  ;;  %vm9224_vm9 = vcmp.lt.s32.totalorder %v5424_v54, 16  ;;  %vm9356_vm10 = vcmp.ge.s32.totalorder %v5424_v54, 16 }
 0x282   : > { %4060 = vst.msk [vmem:[#allocation3 + $0x75] sm:$0x1] %vm3986_vm5, %v4052_v10  ;;  %v3914_v27 = vmax.f32 %v3882_v31, 0.0  ;;  %v5432_v57 = vunpack.c.0.s8 %v5431_v59  ;;  %vm9361_vm11 = vcmp.lt.s32.totalorder %v5424_v54, 32  ;;  %vm9366_vm12 = vcmp.ge.s32.totalorder %v5424_v54, 32 }
 0x283   : > { %4068 = vst.msk [vmem:[#allocation3 + $0x74] sm:$0x4] %vm3995_vm6, %v4052_v10  ;;  %4002 = vst.msk [vmem:[#allocation3 + $0x70] sm:$0x4] %vm3995_vm6, %v3983_v35  ;;  %v3913_v45 = vmax.f32 %v3881_v11, 0.0  ;;  %vm9371_vm13 = vcmp.lt.s32.totalorder %v5424_v54, 48 }
 0x284   : > { %4076 = vst.msk [vmem:[#allocation3 + $0x73] sm:$0x10] %vm4004_vm7, %v4052_v10  ;;  %4011 = vst.msk [vmem:[#allocation3 + $0x6f] sm:$0x10] %vm4004_vm7, %v3983_v35  ;;  %v3930_v14 = vmax.f32 %v3912_v33, %v3914_v27  ;;  %v9109_v42 = vld [vmem:[#allocation3 + $0x62] sm:$0xff]  ;;  %v9221_v31 = vsub.s32 %v5432_v57, %v9218_v4  ;;  %v5657_v33 = vld [vmem:[%s9548_s5 + $0x48] sm:$0xff] }
 0x285   : > { %4084 = vst.msk [vmem:[#allocation3 + $0x72] sm:$0x40] %vm4013_vm8, %v4052_v10  ;;  %v9038_v13 = vld [vmem:[#allocation3 + $0x61] sm:$0xff]  ;;  %4020 = vst.msk [vmem:[#allocation3 + $0x6e] sm:$0x40] %vm4013_vm8, %v3983_v35  ;;  %v3929_v15 = vmax.f32 %v3911_v34, %v3913_v45  ;;  %v5664_v45 = vld [vmem:[%s9548_s5 + $0x80] sm:$0xff] }
 0x286   : > { %3993 = vst.msk [vmem:[#allocation3 + $0x71] sm:$0x1] %vm3986_vm5, %v3983_v35  ;;  %7103 = vmatprep.mubr.msk.f32.mxu1 %vm3931_vm3, %v9038_v13  ;;  %v4037_v16 = vrot.slane %v3930_v14, 1  ;;  %v5654_v57 = vld [vmem:[%s9548_s5 + $0x30] sm:$0xff]  ;;  %vm5450_vm14 = vmand %vm9356_vm10, %vm9361_vm11  ;;  %vm9384_vm0 = vcmp.ge.s32.totalorder %v5424_v54, 48  ;;  %vm9389_vm1 = vcmp.lt.s32.totalorder %v5424_v54, 64 }
 0x287   : > { %v3968_v17 = vrot.slane %v3929_v15, 1  ;;  %vm5472_vm15 = vmand %vm9366_vm12, %vm9371_vm13  ;;  %vm9413_vm4 = vcmp.lt.s32.totalorder %v5424_v54, 80  ;;  %vm5542_vm10 = vcmp.ge.s32.totalorder %v5424_v54, 112  ;;  %vm5543_vm11 = vcmp.lt.s32.totalorder %v5424_v54, 128 }
 0x288   : > { %v4053_v1 = vmax.f32 %v3930_v14, %v4037_v16  ;;  %v5665_v14 = vld [vmem:[%s9548_s5 + $0x88] sm:$0xff]  ;;  %vm5480_vm2 = vmand %vm9384_vm0, %vm9389_vm1 }
 0x289   : > { %v3984_v25 = vmax.f32 %v3929_v15, %v3968_v17  ;;  %v7218_v16 = vpack.c.bf16 %v5665_v14, %v5664_v45  ;;  %v5648_v17 = vld [vmem:[%s9548_s5] sm:$0xff] }
 0x28a   : > { %4061 = vst.msk [vmem:[#allocation3 + $0x85] sm:$0x1] %vm3986_vm5, %v4053_v1 }
 0x28b   : > { %4069 = vst.msk [vmem:[#allocation3 + $0x84] sm:$0x4] %vm3995_vm6, %v4053_v1  ;;  %4003 = vst.msk [vmem:[#allocation3 + $0x80] sm:$0x4] %vm3995_vm6, %v3984_v25  ;;  %vm9427_vm6 = vcmp.ge.s32.totalorder %v5424_v54, 80 }
 0x28c   : > { %4077 = vst.msk [vmem:[#allocation3 + $0x83] sm:$0x10] %vm4004_vm7, %v4053_v1  ;;  %4012 = vst.msk [vmem:[#allocation3 + $0x7f] sm:$0x10] %vm4004_vm7, %v3984_v25  ;;  %v9113_v48 = vld [vmem:[#allocation3 + $0x72] sm:$0xff]  ;;  %vm9432_vm7 = vcmp.lt.s32.totalorder %v5424_v54, 96 }
 0x28d   : > { %4085 = vst.msk [vmem:[#allocation3 + $0x82] sm:$0x40] %vm4013_vm8, %v4053_v1  ;;  %v9050_v26 = vld [vmem:[#allocation3 + $0x71] sm:$0xff]  ;;  %4021 = vst.msk [vmem:[#allocation3 + $0x7e] sm:$0x40] %vm4013_vm8, %v3984_v25 }
 0x28e   : > { %3994 = vst.msk [vmem:[#allocation3 + $0x81] sm:$0x1] %vm3986_vm5, %v3984_v25  ;;  %7104 = vmatmul.mubr.msk.f32.gmra.mrb[38].mxu1 %vm3931_vm3, %v9050_v26  ;;  %v9084_v19 = vld [vmem:[#allocation3 + $0x70] sm:$0xff]  ;;  %v5649_v1 = vld [vmem:[%s9548_s5 + $0x8] sm:$0xff]  ;;  %vm9580_vm8 = vmand %vm9427_vm6, %vm9432_vm7 }
 0x28f   : > { %7108 = vmatprep.mubr.msk.f32.mxu1 %vm3931_vm3, %v4086_v12  ;;  %vm9663_vm13 = vmand %vm9427_vm6, %vm9432_vm7 }
 0x292   : > { %7109 = vmatmul.mubr.msk.f32.vlgmr.msra.gmra.mrb[32].mxu1 %vm3931_vm3, %v4087_v18 }
 0x293   : > { %7121 = vmatpush3.msra.mxu1 %v8937_v9  ;;  %7111 = vmatprep.mubr.msk.f32.mxu1 %vm3931_vm3, %v9063_v36  ;;  %v9080_v9 = vld [vmem:[#allocation3 + $0x60] sm:$0xff] }
 0x294   : > { %7134 = vmatprep.subr.mxu1 %v6170_v28  ;;  %v4811_v46 = vld [vmem:[#allocation3 + $0x82] sm:$0xff] }
 0x295   : > { %v4517_v29 = vld [vmem:[#allocation3 + $0x80] sm:$0xff] }
 0x296   : > { %7112 = vmatmul.mubr.msk.f32.gmra.mrb[34].mxu1 %vm3931_vm3, %v9068_v43 }
 0x297   : > { %7114 = vmatprep.mubr.msk.f32.mxu1 %vm3931_vm3, %v9072_v0 }
 0x29a   : > { %7115 = vmatmul.mubr.msk.f32.gmra.mrb[36].mxu1 %vm3931_vm3, %v9076_v55 }
 0x29b   : > { %7117 = vmatprep.mubr.msk.f32.mxu1 %vm3931_vm3, %v9080_v9 }
 0x29e   : > { %7118 = vmatmul.mubr.msk.f32.gmra.mrb[38].mxu1 %vm3931_vm3, %v9084_v19 }
 0x29f   : > { %7122 = vmatprep.mubr.msk.f32.mxu1 %vm3931_vm3, %v4363_v39 }
 0x2a2   : > { %7123 = vmatmul.mubr.msk.f32.vlgmr.msra.gmra.mrb[32].mxu1 %vm3931_vm3, %v4364_v44 }
 0x2a3   : > { %7135 = vmatpush3.msra.mxu1 %v6170_v28  ;;  %7125 = vmatprep.mubr.msk.f32.mxu1 %vm3931_vm3, %v9093_v47 }
 0x2a4   : > { %7148 = vmatprep.subr.mxu1 %v6179_v37 }
 0x2a6   : > { %7126 = vmatmul.mubr.msk.f32.gmra.mrb[34].mxu1 %vm3931_vm3, %v9097_v40 }
 0x2a7   : > { %7128 = vmatprep.mubr.msk.f32.mxu1 %vm3931_vm3, %v9101_v32 }
 0x2aa   : > { %7129 = vmatmul.mubr.msk.f32.gmra.mrb[36].mxu1 %vm3931_vm3, %v9105_v41 }
 0x2ab   : > { %7131 = vmatprep.mubr.msk.f32.mxu1 %vm3931_vm3, %v9109_v42 }
 0x2ae   : > { %7132 = vmatmul.mubr.msk.f32.gmra.mrb[38].mxu1 %vm3931_vm3, %v9113_v48 }
 0x2af   : > { %7136 = vmatprep.mubr.msk.f32.mxu1 %vm3931_vm3, %v4087_v18 }
 0x2b2   : > { %7137 = vmatmul.mubr.msk.f32.vlgmr.msra.gmra.mrb[32].mxu1 %vm3931_vm3, %v9063_v36 }
 0x2b3   : > { %7149 = vmatpush3.msra.mxu1 %v6179_v37  ;;  %7139 = vmatprep.mubr.msk.f32.mxu1 %vm3931_vm3, %v9068_v43 }
 0x2b4   : > { %7162 = vmatprep.subr.mxu1 %v6188_v49 }
 0x2b6   : > { %7140 = vmatmul.mubr.msk.f32.gmra.mrb[34].mxu1 %vm3931_vm3, %v9072_v0 }
 0x2b7   : > { %7142 = vmatprep.mubr.msk.f32.mxu1 %vm3931_vm3, %v9076_v55 }
 0x2ba   : > { %7143 = vmatmul.mubr.msk.f32.gmra.mrb[36].mxu1 %vm3931_vm3, %v9080_v9 }
 0x2bb   : > { %7145 = vmatprep.mubr.msk.f32.mxu1 %vm3931_vm3, %v9084_v19 }
 0x2be   : > { %7146 = vmatmul.mubr.msk.f32.gmra.mrb[38].mxu1 %vm3931_vm3, %v4517_v29 }
 0x2bf   : > { %7150 = vmatprep.mubr.msk.f32.mxu1 %vm3931_vm3, %v8932_v8  ;;  %v4664_v8 = vld [vmem:[#allocation3 + $0x81] sm:$0xff] }
 0x2c2   : > { %7151 = vmatmul.mubr.msk.f32.vlgmr.msra.gmra.mrb[32].mxu1 %vm3931_vm3, %v8959_v20 }
 0x2c3   : > { %7163 = vmatpush3.msra.mxu1 %v6188_v49  ;;  %7153 = vmatprep.mubr.msk.f32.mxu1 %vm3931_vm3, %v8979_v23 }
 0x2c4   : > { %7176 = vmatprep.subr.mxu1 %v6197_v50 }
 0x2c6   : > { %7154 = vmatmul.mubr.msk.f32.gmra.mrb[34].mxu1 %vm3931_vm3, %v8999_v38 }
 0x2c7   : > { %7156 = vmatprep.mubr.msk.f32.mxu1 %vm3931_vm3, %v9019_v60 }
 0x2ca   : > { %7157 = vmatmul.mubr.msk.f32.gmra.mrb[36].mxu1 %vm3931_vm3, %v9038_v13 }
 0x2cb   : > { %7159 = vmatprep.mubr.msk.f32.mxu1 %vm3931_vm3, %v9050_v26 }
 0x2ce   : > { %7160 = vmatmul.mubr.msk.f32.gmra.mrb[38].mxu1 %vm3931_vm3, %v4664_v8 }
 0x2cf   : > { %7164 = vmatprep.mubr.msk.f32.mxu1 %vm3931_vm3, %v4364_v44  ;;  %v5667_v44 = vld [vmem:[%s9548_s5 + $0x98] sm:$0xff] }
 0x2d2   : > { %7165 = vmatmul.mubr.msk.f32.vlgmr.msra.gmra.mrb[32].mxu1 %vm3931_vm3, %v9093_v47 }
 0x2d3   : > { %7177 = vmatpush3.msra.mxu1 %v6197_v50  ;;  %7167 = vmatprep.mubr.msk.f32.mxu1 %vm3931_vm3, %v9097_v40 }
 0x2d4   : > { %7190 = vmatprep.subr.mxu1 %v6206_v51 }
 0x2d6   : > { %7168 = vmatmul.mubr.msk.f32.gmra.mrb[34].mxu1 %vm3931_vm3, %v9101_v32 }
 0x2d7   : > { %7170 = vmatprep.mubr.msk.f32.mxu1 %vm3931_vm3, %v9105_v41 }
 0x2da   : > { %7171 = vmatmul.mubr.msk.f32.gmra.mrb[36].mxu1 %vm3931_vm3, %v9109_v42 }
 0x2db   : > { %7173 = vmatprep.mubr.msk.f32.mxu1 %vm3931_vm3, %v9113_v48 }
 0x2de   : > { %7174 = vmatmul.mubr.msk.f32.gmra.mrb[38].mxu1 %vm3931_vm3, %v4811_v46 }
 0x2df   : > { %7178 = vmatprep.mubr.msk.f32.mxu1 %vm3931_vm3, %v9063_v36 }
 0x2e2   : > { %7179 = vmatmul.mubr.msk.f32.vlgmr.msra.gmra.mrb[32].mxu1 %vm3931_vm3, %v9068_v43 }
 0x2e3   : > { %7191 = vmatpush3.msra.mxu1 %v6206_v51  ;;  %7181 = vmatprep.mubr.msk.f32.mxu1 %vm3931_vm3, %v9072_v0  ;;  %v7220_v0 = vpack.c.bf16 %v5649_v1, %v5648_v17  ;;  %v5675_v17 = vld [vmem:[%s9548_s5 + $0xd8] sm:$0xff] }
 0x2e4   : > { %7204 = vmatprep.subr.mxu1 %v6215_v52 }
 0x2e6   : > { %7182 = vmatmul.mubr.msk.f32.gmra.mrb[34].mxu1 %vm3931_vm3, %v9076_v55 }
 0x2e7   : > { %7184 = vmatprep.mubr.msk.f32.mxu1 %vm3931_vm3, %v9080_v9 }
 0x2ea   : > { %7185 = vmatmul.mubr.msk.f32.gmra.mrb[36].mxu1 %vm3931_vm3, %v9084_v19  ;;  %v5666_v19 = vld [vmem:[%s9548_s5 + $0x90] sm:$0xff] }
 0x2eb   : > { %7187 = vmatprep.mubr.msk.f32.mxu1 %vm3931_vm3, %v4517_v29 }
 0x2ee   : > { %7188 = vmatmul.mubr.msk.f32.gmra.mrb[38].mxu1 %vm3931_vm3, %v4959_v53  ;;  %v5669_v53 = vld [vmem:[%s9548_s5 + $0xa8] sm:$0xff] }
 0x2ef   : > { %7192 = vmatprep.mubr.msk.f32.mxu1 %vm3931_vm3, %v8959_v20  ;;  %v5253_v20 = vld [vmem:[#allocation3 + $0x92] sm:$0xff] }
 0x2f2   : > { %7193 = vmatmul.mubr.msk.f32.vlgmr.msra.gmra.mrb[32].mxu1 %vm3931_vm3, %v8979_v23  ;;  %v6224_v23 = vld [vmem:[%s9547_s4] ss:$0 sm:$0xff] }
 0x2f3   : > { %7205 = vmatpush3.msra.mxu1 %v6215_v52  ;;  %7195 = vmatprep.mubr.msk.f32.mxu1 %vm3931_vm3, %v8999_v38  ;;  %v5668_v52 = vld [vmem:[%s9548_s5 + $0xa0] sm:$0xff] }
 0x2f4   : > { %7219 = vmatprep.subr.bf16.mxu1 %v7218_v16  ;;  %v5674_v16 = vld [vmem:[%s9548_s5 + $0xd0] sm:$0xff] }
 0x2f5   : > { %v7238_v1 = vpack.c.bf16 %v5675_v17, %v5674_v16 }
 0x2f6   : > { %7196 = vmatmul.mubr.msk.f32.gmra.mrb[34].mxu1 %vm3931_vm3, %v9019_v60 }
 0x2f7   : > { %7198 = vmatprep.mubr.msk.f32.mxu1 %vm3931_vm3, %v9038_v13 }
 0x2fa   : > { %7199 = vmatmul.mubr.msk.f32.gmra.mrb[36].mxu1 %vm3931_vm3, %v9050_v26 }
 0x2fb   : > { %7201 = vmatprep.mubr.msk.f32.mxu1 %vm3931_vm3, %v4664_v8 }
 0x2fe   : > { %7202 = vmatmul.mubr.msk.f32.gmra.mrb[38].mxu1 %vm3931_vm3, %v5106_v21  ;;  %v7226_v21 = vpack.c.bf16 %v5669_v53, %v5668_v52 }
 0x2ff   : > { %7206 = vmatprep.mubr.msk.f32.mxu1 %vm3931_vm3, %v9093_v47 }
 0x302   : > { %7207 = vmatmul.mubr.msk.f32.vlgmr.msra.gmra.mrb[32].mxu1 %vm3931_vm3, %v9097_v40  ;;  %v7222_v40 = vpack.c.bf16 %v5667_v44, %v5666_v19  ;;  %v5661_v19 = vld [vmem:[%s9548_s5 + $0x68] sm:$0xff]  ;;  %v5678_v44 = vld [vmem:[%s9548_s5 + $0xf0] sm:$0xff] }
 0x303   : > { %7209 = vmatprep.mubr.msk.f32.mxu1 %vm3931_vm3, %v9101_v32  ;;  %7221 = vmatpush3.bf16.msra.mxu1 %v7220_v0  ;;  %v5650_v32 = vld [vmem:[%s9548_s5 + $0x10] sm:$0xff]  ;;  %v5676_v0 = vld [vmem:[%s9548_s5 + $0xe0] sm:$0xff] }
 0x304   : > { %7223 = vmatprep.subr.bf16.mxu1 %v7222_v40 }
 0x306   : > { %7210 = vmatmul.mubr.msk.f32.gmra.mrb[34].mxu1 %vm3931_vm3, %v9105_v41  ;;  %v5651_v41 = vld [vmem:[%s9548_s5 + $0x18] sm:$0xff] }
 0x307   : > { %7212 = vmatprep.mubr.msk.f32.mxu1 %vm3931_vm3, %v9109_v42  ;;  %v7224_v8 = vpack.c.bf16 %v5651_v41, %v5650_v32 }
 0x309   : > { %7225 = vmatpush3.bf16.msra.mxu1 %v7224_v8 }
 0x30a   : > { %7213 = vmatmul.mubr.msk.f32.gmra.mrb[36].mxu1 %vm3931_vm3, %v9113_v48  ;;  %7227 = vmatprep.subr.bf16.mxu1 %v7226_v21 }
 0x30b   : > { %7215 = vmatprep.mubr.msk.f32.mxu1 %vm3931_vm3, %v4811_v46 }
 0x30e   : > { %7216 = vmatmul.mubr.msk.f32.gmra.mrb[38].mxu1 %vm3931_vm3, %v5253_v20  ;;  %v5652_v20 = vld [vmem:[%s9548_s5 + $0x20] sm:$0xff]  ;;  %vm9408_vm3 = vcmp.ge.s32.totalorder %v5424_v54, 64 }
 0x30f   : > { %vm9579_vm5 = vmand %vm9408_vm3, %vm9413_vm4 }
 0x310   : > { %vm9662_vm12 = vmand %vm9408_vm3, %vm9413_vm4 }
 0x3d5   : > { %v7208_v38 = vpop.f32.mrb[32].mxu1 }
 0x3d6   : > { %v5401_v56 = vadd.f32 %v7208_v38, %v6224_v23  ;;  %v5346_v60 = vpop.f32.mrb[33].mxu1 }
 0x3d7   : > { %v5400_v61 = vadd.f32 %v6224_v23, %v5346_v60 }
 0x3d8   : > { %v5409_v30 = vmax.f32 %v5401_v56, 0.0 }
 0x3d9   : > { %v5408_v2 = vmax.f32 %v5400_v61, 0.0  ;;  %v7211_v3 = vpop.f32.mrb[34].mxu1 }
 0x3da   : > { %v5403_v62 = vadd.f32 %v7211_v3, %v6224_v23  ;;  %v5356_v22 = vpop.f32.mrb[35].mxu1 }
 0x3db   : > { %v5416_v5 = vmax.f32 %v5408_v2, %v5409_v30  ;;  %v5402_v63 = vadd.f32 %v6224_v23, %v5356_v22  ;;  %v5670_v30 = vld [vmem:[%s9548_s5 + $0xb0] sm:$0xff]  ;;  %v5671_v2 = vld [vmem:[%s9548_s5 + $0xb8] sm:$0xff] }
 0x3dc   : > { %v5411_v6 = vmax.f32 %v5403_v62, 0.0  ;;  %v7230_v3 = vpack.c.bf16 %v5671_v2, %v5670_v30  ;;  %v5655_v62 = vld [vmem:[%s9548_s5 + $0x38] sm:$0xff] }
 0x3dd   : > { %v5421_v7 = vrot.slane %v5416_v5, 1  ;;  %v5410_v24 = vmax.f32 %v5402_v63, 0.0  ;;  %v7214_v10 = vpop.f32.mrb[36].mxu1 }
 0x3de   : > { %v5405_v35 = vadd.f32 %v7214_v10, %v6224_v23  ;;  %v5366_v11 = vpop.f32.mrb[37].mxu1  ;;  %v5673_v10 = vld [vmem:[%s9548_s5 + $0xc8] sm:$0xff] }
 0x3df   : > { %v5423_v27 = vmax.f32 %v5416_v5, %v5421_v7  ;;  %v5417_v13 = vmax.f32 %v5410_v24, %v5411_v6  ;;  %v5404_v34 = vadd.f32 %v6224_v23, %v5366_v11  ;;  %v7232_v7 = vpack.c.bf16 %v5655_v62, %v5654_v57  ;;  %v5672_v24 = vld [vmem:[%s9548_s5 + $0xc0] sm:$0xff] }
 0x3e0   : > { %v5413_v15 = vmax.f32 %v5405_v35, 0.0  ;;  %v7234_v35 = vpack.c.bf16 %v5673_v10, %v5672_v24  ;;  %v5656_v11 = vld [vmem:[%s9548_s5 + $0x40] sm:$0xff] }
 0x3e1   : > { %v5412_v25 = vmax.f32 %v5404_v34, 0.0  ;;  %v7217_v12 = vpop.f32.mrb[38].mxu1  ;;  %v5452_v26 = vcombine.high %v5423_v27, %v5423_v27  ;;  %v5436_v18 = vrot.slane %v5423_v27, %v9221_v31  ;;  %5428 = vst.msk [vmem:[#allocation4] sm:$0x1] %vm9224_vm9, %v5423_v27  ;;  %v5483_v28 = vrot.slane %v5417_v13, 1 }
 0x3e2   : > { %v5407_v36 = vadd.f32 %v7217_v12, %v6224_v23  ;;  %v5376_v43 = vpop.f32.mrb[39].mxu1  ;;  %v7236_v34 = vpack.c.bf16 %v5657_v33, %v5656_v11  ;;  %v5659_v12 = vld [vmem:[%s9548_s5 + $0x58] sm:$0xff]  ;;  %v5688_v11 = vsub.s32 1, %v9218_v4 }
 0x3e3   : > { %v5418_v55 = vmax.f32 %v5412_v25, %v5413_v15  ;;  %v5406_v9 = vadd.f32 %v6224_v23, %v5376_v43  ;;  %v5459_v39 = vrot.slane %v5452_v26, %v9221_v31  ;;  %v5443_v47 = vrot.slane %v5436_v18, %v9221_v31  ;;  %v5653_v23 = vld [vmem:[%s9548_s5 + $0x28] sm:$0xff]  ;;  %v5658_v25 = vld [vmem:[%s9548_s5 + $0x50] sm:$0xff] }
 0x3e4   : > { %v5415_v37 = vmax.f32 %v5407_v36, 0.0  ;;  %v9258_v29 = vmax.f32 %v5417_v13, %v5483_v28  ;;  %v7228_v60 = vpack.c.bf16 %v5653_v23, %v5652_v20  ;;  %v7240_v28 = vpack.c.bf16 %v5659_v12, %v5658_v25 }
 0x3e5   : > { %v5547_v42 = vrot.slane %v5418_v55, 1  ;;  %v5414_v48 = vmax.f32 %v5406_v9, 0.0  ;;  %v5466_v49 = vrot.slane %v5459_v39, %v9221_v31  ;;  %v5444_v50 = vcombine.high %v5443_v47, %v5443_v47  ;;  %v5660_v9 = vld [vmem:[%s9548_s5 + $0x60] sm:$0xff] }
 0x3e6   : > { %v5493_v56 = vrot.slane %v9258_v29, %v9221_v31  ;;  %7229 = vmatpush3.bf16.msra.mxu1 %v7228_v60  ;;  %v5516_v45 = vcombine.high %v9258_v29, %v9258_v29  ;;  %v7244_v47 = vpack.c.bf16 %v5661_v19, %v5660_v9 }
 0x3e7   : > { %v5549_v51 = vmax.f32 %v5418_v55, %v5547_v42  ;;  %v5419_v46 = vmax.f32 %v5414_v48, %v5415_v37  ;;  %5467 = vrot.lane.b32.xlu1 %v5466_v49, %s7686_s18  ;;  %5445 = vrot.lane.b32.xlu0 %v5444_v50, %s7687_s23  ;;  %v5474_v59 = vcombine.high %v5466_v49, %v5466_v49  ;;  %v5677_v55 = vld [vmem:[%s9548_s5 + $0xe8] sm:$0xff]  ;;  %v5679_v37 = vld [vmem:[%s9548_s5 + $0xf8] sm:$0xff] }
 0x3e8   : > { %v5500_v63 = vrot.slane %v5493_v56, %v9221_v31  ;;  %7231 = vmatprep.subr.bf16.mxu1 %v7230_v3  ;;  %v5523_v43 = vrot.slane %v5516_v45, %v9221_v31  ;;  %v7242_v39 = vpack.c.bf16 %v5677_v55, %v5676_v0  ;;  %v7246_v41 = vpack.c.bf16 %v5679_v37, %v5678_v44  ;;  %v5662_v42 = vld [vmem:[%s9548_s5 + $0x70] sm:$0xff]  ;;  %v5663_v48 = vld [vmem:[%s9548_s5 + $0x78] sm:$0xff]  ;;  %v5680_v45 = vld [vmem:[%s9549_s6] sm:$0x1] }
 0x3e9   : > { %v5596_v38 = vrot.slane %v5419_v46, 1  ;;  %v5571_v58 = vcombine.high %v5549_v51, %v5549_v51  ;;  %5550 = vst.msk [vmem:[#allocation4 + $0x1] sm:$0x1] %vm9224_vm9, %v5549_v51  ;;  %v5558_v6 = vrot.slane %v5549_v51, %v9221_v31  ;;  %v7248_v29 = vpack.c.bf16 %v5663_v48, %v5662_v42 }
 0x3ea   : > { %7233 = vmatpush3.bf16.msra.mxu1 %v7232_v7  ;;  %v5508_v14 = vcombine.high %v5500_v63, %v5500_v63  ;;  %v5530_v49 = vrot.slane %v5523_v43, %v9221_v31  ;;  %vm9451_vm9 = vcmp.ge.s32.totalorder %v5424_v54, 96 }
 0x3eb   : > { %v5578_v61 = vrot.slane %v5571_v58, %v9221_v31  ;;  %5475 = vrot.lane.b32.xlu0 %v5474_v59, %s7688_s19  ;;  %v5598_v22 = vmax.f32 %v5419_v46, %v5596_v38  ;;  %v5565_v15 = vrot.slane %v5558_v6, %v9221_v31  ;;  %7235 = vmatprep.subr.bf16.mxu1 %v7234_v35  ;;  %v5684_v35 = vsub.s32 0, %v9218_v4 }
 0x3ec   : > { %v5538_v8 = vcombine.high %v5530_v49, %v5530_v49 }
 0x3ed   : > { %v5585_v5 = vrot.slane %v5578_v61, %v9221_v31  ;;  %v5606_v13 = vrot.slane %v5598_v22, %v9221_v31  ;;  %v5623_v26 = vcombine.high %v5598_v22, %v5598_v22  ;;  %v5566_v36 = vcombine.high %v5565_v15, %v5565_v15 }
 0x3ee   : > { %7237 = vmatpush3.bf16.msra.mxu1 %v7236_v34 }
 0x3ef   : > { %5586 = vrot.lane.b32.xlu1 %v5585_v5, %s7686_s18  ;;  %5501 = vrot.lane.b32.xlu0 %v5500_v63, %s7689_s15  ;;  %v5590_v27 = vcombine.high %v5585_v5, %v5585_v5  ;;  %v5613_v18 = vrot.slane %v5606_v13, %v9221_v31  ;;  %v5630_v32 = vrot.slane %v5623_v26, %v9221_v31  ;;  %s7624_s18 = sshll.u32 %s7693_s28, 4  ;;  %s7625_s18 = int_to_ptr.vmem [resolvable:$false] %s7624_s18 }
 0x3f0   : > { %7239 = vmatprep.subr.bf16.mxu1 %v7238_v1 }
 0x3f1   : > { %v5618_v40 = vcombine.high %v5613_v18, %v5613_v18  ;;  %v5637_v50 = vrot.slane %v5630_v32, %v9221_v31 }
 0x3f2   : > { %7241 = vmatpush3.bf16.msra.mxu1 %v7240_v28 }
 0x3f3   : > { %5591 = vrot.lane.b32.xlu1 %v5590_v27, %s7688_s19  ;;  %5509 = vrot.lane.b32.xlu0 %v5508_v14, %s7690_s9  ;;  %v5642_v51 = vcombine.high %v5637_v50, %v5637_v50 }
 0x3f4   : > { %7243 = vmatprep.subr.bf16.mxu1 %v7242_v39 }
 0x3f6   : > { %7245 = vmatpush3.bf16.msra.mxu1 %v7244_v47 }
 0x3f7   : > { %5614 = vrot.lane.b32.xlu1 %v5613_v18, %s7689_s15  ;;  %5567 = vrot.lane.b32.xlu0 %v5566_v36, %s7687_s23  ;;  %s7692_s23 = smov 112   ;;  %s9501_s15 = scalar_lea.hbm %s9550_s7, %s6225_s13 }
 0x3f8   : > { %7247 = vmatprep.subr.bf16.mxu1 %v7246_v41 }
 0x3fa   : > { %7249 = vmatpush3.bf16.msra.mxu1 %v7248_v29 }
 0x3fb   : > { %5619 = vrot.lane.b32.xlu1 %v5618_v40, %s7690_s9  ;;  %5531 = vrot.lane.b32.xlu0 %v5530_v49, %s7691_s22  ;;  %s269_s9 = sand.u32 1, %s7674_s25  }
 0x3fc   : > { %s270_s14 = scalar_lea.vmem [#allocation5], %s269_s9  ;;  %s5765_s20 = scalar_lea.sflag [#allocation6], %s269_s9 }
 0x3fd   : > { %s5777_s16 = sshll.u32 %s270_s14, 4  ;;  %s9503_s16 = int_to_ptr.vmem [resolvable:$true] %s5777_s16 }
 0x3fe   : > { %s7620_s21 = scalar_lea.vmem %s9503_s16, 16  ;;  %p7627_p0 = scmp.lt.s32.totalorder %s9503_s16, %s7625_s18 }
 0x3ff   : > { %5638 = vrot.lane.b32.xlu1 %v5637_v50, %s7691_s22  ;;  %5539 = vrot.lane.b32.xlu0 %v5538_v8, %s7692_s23  ;;  %p7621_p11 = scmp.ne.s32.totalorder %s9503_s16, %s7620_s21  ;;  %s7626_s22 = scalar_lea.vmem %s7625_s18, 32 }
 0x400   : > { %p7628_p1 = scmp.lt.s32.totalorder %s7626_s22, %s7620_s21 }
 0x401   : > { %p7622_p12 = pnand %p7621_p11, %p7772_p5 }
 0x402   : > { %p7629_p2 = por %p7628_p1, %p7627_p0 }
 0x403   : > { %5643 = vrot.lane.b32.xlu1 %v5642_v51, %s7692_s23  ;;  %p7623_p13 = pneg %p7622_p12 }
 0x405   : > { %p7630_p3 = pnand %p7629_p2, %p7623_p13 }
 0x459   : > { %v5468_v21 = vpop.permute.xlu1 %5467  ;;  %v5446_v38 = vpop.permute.xlu0 %5445 }
 0x45a   : > { %5451 = vst.msk [vmem:[#allocation4] sm:$0x1] %vm5450_vm14, %v5446_v38 }
 0x45b   : > { %5473 = vst.msk [vmem:[#allocation4] sm:$0x1] %vm5472_vm15, %v5468_v21 }
 0x45d   : > { %v5476_v56 = vpop.permute.xlu0 %5475 }
 0x45e   : > { %5481 = vst.msk [vmem:[#allocation4] sm:$0x1] %vm5480_vm2, %v5476_v56 }
 0x461   : > { %v5587_v60 = vpop.permute.xlu1 %5586  ;;  %v5502_v2 = vpop.permute.xlu0 %5501 }
 0x462   : > { %5507 = vst.msk [vmem:[#allocation4] sm:$0x1] %vm9579_vm5, %v5502_v2  ;;  %vm9456_vm5 = vcmp.lt.s32.totalorder %v5424_v54, 112 }
 0x465   : > { %v5592_v3 = vpop.permute.xlu1 %5591  ;;  %v5510_v57 = vpop.permute.xlu0 %5509 }
 0x466   : > { %5515 = vst.msk [vmem:[#allocation4] sm:$0x1] %vm9580_vm8, %v5510_v57  ;;  %vm5536_vm8 = vmand %vm9451_vm9, %vm9456_vm5 }
 0x469   : > { %v5615_v62 = vpop.permute.xlu1 %5614  ;;  %v5568_v63 = vpop.permute.xlu0 %5567 }
 0x46a   : > { %5570 = vst.msk [vmem:[#allocation4 + $0x1] sm:$0x1] %vm5450_vm14, %v5568_v63  ;;  %vm5544_vm14 = vmand %vm5542_vm10, %vm5543_vm11 }
 0x46b   : > { %5589 = vst.msk [vmem:[#allocation4 + $0x1] sm:$0x1] %vm5472_vm15, %v5587_v60  ;;  %vm5762_vm15 = vcmask 73728  }
 0x46c   : > { %5594 = vst.msk [vmem:[#allocation4 + $0x1] sm:$0x1] %vm5480_vm2, %v5592_v3 }
 0x46d   : > { %v5620_v6 = vpop.permute.xlu1 %5619  ;;  %5617 = vst.msk [vmem:[#allocation4 + $0x1] sm:$0x1] %vm9662_vm12, %v5615_v62  ;;  %v5532_v7 = vpop.permute.xlu0 %5531 }
 0x46e   : > { %5537 = vst.msk [vmem:[#allocation4] sm:$0x1] %vm5536_vm8, %v5532_v7 }
 0x46f   : > { %5622 = vst.msk [vmem:[#allocation4 + $0x1] sm:$0x1] %vm9663_vm13, %v5620_v6 }
 0x471   : > { %v5639_v24 = vpop.permute.xlu1 %5638  ;;  %v5540_v10 = vpop.permute.xlu0 %5539 }
 0x472   : > { %5641 = vst.msk [vmem:[#allocation4 + $0x1] sm:$0x1] %vm5536_vm8, %v5639_v24 }
 0x473   : > { %5545 = vst.msk [vmem:[#allocation4] sm:$0x1] %vm5544_vm14, %v5540_v10 }
 0x475   : > { %v5644_v54 = vpop.permute.xlu1 %5643 }
 0x476   : > { %5646 = vst.msk [vmem:[#allocation4 + $0x1] sm:$0x1] %vm5544_vm14, %v5644_v54 }
 0x47d   : > { %v5647_v33 = vld [vmem:[#allocation4] sm:$0x3] }
 0x47e   : > { %v5685_v27 = vrot.slane %v5647_v33, %v5684_v35  ;;  %v5689_v13 = vrot.slane %v5647_v33, %v5688_v11 }
 0x480   : > { %5756 = vmatprep.mubr.f32.mxu1 %v5689_v13 }
 0x481   : > { %5757 = vmatmul.mubr.f32.vlgmr.msra.gmra.mrb[40].mxu1 %v5685_v27 }
 0x554   : > { %v6639_v34 = vpop.f32.mrb[40].mxu1 }
 0x555   : > { %v6640_v14 = vpop.f32.mrb[41].mxu1 }
 0x556   : > { %v6641_v15 = vadd.f32 %v6640_v14, %v6639_v34 }
 0x558   : > { %v5759_v16 = vadd.f32 %v6641_v15, %v5680_v45 }
 0x55a   : > { %5763 = vst.msk [vmem:[%s270_s14] sm:$0x1] %vm5762_vm15, %v5759_v16 }
 0x55b   : > { %7633 = shalt.err (!%p7630_p3)
}
 0x55c   : > { %s7634_s23 = scalar_lea.hbm %s9501_s15, 16  ;;  %s7638_s8 = scalar_lea.hbm %s9550_s7, 32 }
 0x55d   : > { %p7635_p4 = scmp.ne.s32.totalorder %s9501_s15, %s7634_s23  ;;  %p7639_p9 = scmp.lt.u32.totalorder %s9501_s15, %s9550_s7 }
 0x55e   : > { %p7640_p10 = scmp.lt.u32.totalorder %s7638_s8, %s7634_s23  ;;  %p7642_p12 = scmp.lt.u32.totalorder %s7634_s23, %s9501_s15 }
 0x55f   : > { %p7636_p7 = pnand %p7635_p4, %p7772_p5 }
 0x560   : > { %p7641_p11 = por %p7640_p10, %p7639_p9 }
 0x561   : > { %p7637_p8 = pneg %p7636_p7 }
 0x562   : > { %p7643_p13 = por %p7642_p12, %p7641_p11 }
 0x564   : > { %p7644_p0 = pnand %p7643_p13, %p7637_p8 }
 0x566   : > { %7647 = shalt.err (!%p7644_p0)
}
 0x567   : > { %7572 = dma.vmem_to_hbm [thread:$0]  (%p7772_p5), %s9503_s16, 16, %s9501_s15, %s5765_s20  }
 0x568 PF: > { %p7578_p1 = scmp.ge.s32.totalorder %s7682_s27, 2  ;;  %s5789_s17 = sand.u32 1, %s7670_s24  }
 0x569   : > { %s5790_s19 = scalar_lea.sflag [#allocation6], %s5789_s17 }
 0x56a   : > { %p7575_p2 = pnand %p7578_p1, %p7776_p6 }
 0x56c   : > { %7665 = dma.done.wait (!%p7575_p2), %s5790_s19, 16  }
 0x56d   : > { %7667 = vsyncadd (!%p7575_p2), %s5790_s19, 4294967280  ;;  %p17_p3 = scmp.ge.s32.totalorder %s7759_s30, 4   ;;  %s9664_s24 = smov %s7674_s25 }
 0x56e   : > { %s9665_s25 = smov %s7678_s26  ;;  %s9666_s26 = smov %s7770_s10 }
 0x56f   : > { %s9667_s27 = smov %s7759_s30  ;;  %19 = sbr.rel (!%p17_p3) target bundleno = 3 (0x3), region = 103 }
 0x576   :  { %5794 = vsyncpa [#allocation6], 1 }
 0x577   :  { %5796 = vsyncpa [#allocation6 + $0x1], 1 }

</bundles_post_ra>
